<compile_context>
chip_gen: v7x
topology: tpu7x:2x2x1
jax: 0.10.0
libtpu: 0.0.40
codegen_flags: <defaults>
</compile_context>

<pallas_src>
import math
import functools

import jax
import jax.numpy as jnp
from jax.experimental import pallas as pl
from jax.experimental.pallas import tpu as pltpu


def _layernorm(y, gamma, beta, eps=1e-5):
    mu = jnp.mean(y, axis=-1, keepdims=True)
    var = jnp.mean((y - mu) * (y - mu), axis=-1, keepdims=True)
    return (y - mu) * jax.lax.rsqrt(var + eps) * gamma + beta


def _pick_vmem_limit_bytes():
    """Per-generation VMEM cap: ~7/8 of physical, never above 112 MiB."""
    try:
        cap = int(pltpu.get_tpu_info().vmem_capacity_bytes)
    except Exception:
        cap = 128 * 1024 * 1024
    return max(32 * 1024 * 1024, min(cap * 7 // 8, 112 * 1024 * 1024))


def _pick_block_q(S, D):
    """Query-block size: ~256 rows, multiple of 8, or the full S for small models."""
    if S <= 256 or D % 128 != 0:
        return S
    for tq in (256, 512, 128, 64, 32, 16, 8):
        if tq < S and S % tq == 0:
            return tq
    return S


def encoder_layer_kernel(
    x_ref, kmask_ref,
    wq_ref, bq_ref, wkv_ref, bkv_ref, wo_ref, bo_ref,
    g1_ref, be1_ref, w1_ref, b1_ref, w2_ref, b2_ref, g2_ref, be2_ref,
    o_ref,
    k_scr, v_scr, attn_scr,
    *, num_heads: int, block_q: int,
):
    qb = pl.program_id(1)
    _, S, D = x_ref.shape
    H = num_heads
    dk = D // H
    TQ = block_q

    # Additive attention bias, computed ONCE for all heads / query rows:
    # 0 where attend (mask==1), -1e9 where masked (mask==0).
    km = kmask_ref[0]                                   # (1, S) f32
    mask_bias = (km - 1.0) * jnp.float32(1e9)           # broadcasts over query rows

    # ---- K / V projections for the whole sequence, once per batch item -----
    @pl.when(qb == 0)
    def _():
        xb = x_ref[0].astype(jnp.bfloat16)              # (S, D)
        kv = jnp.dot(xb, wkv_ref[...],
                     preferred_element_type=jnp.float32) + bkv_ref[...]   # (S, 2D) f32
        k_scr[...] = kv[:, :D].astype(jnp.bfloat16)
        v_scr[...] = kv[:, D:].astype(jnp.bfloat16)

    # ---- Q projection for this query block (1/sqrt(dk) folded into wq/bq) ---
    row0 = pl.multiple_of(qb * TQ, TQ)
    x_blk = x_ref[0, pl.ds(row0, TQ), :]                # (TQ, D) f32
    q = jnp.dot(x_blk.astype(jnp.bfloat16), wq_ref[...],
                preferred_element_type=jnp.float32) + bq_ref[...]         # (TQ, D) f32
    q = q.astype(jnp.bfloat16)

    # ---- multi-head self attention: each head writes into attn_scr ---------
    for h in range(H):                                   # static, fully unrolled
        sl = slice(h * dk, (h + 1) * dk)
        # Q . K^T via dot_general contracting on dk of both -> no transpose.
        s = jax.lax.dot_general(
            q[:, sl], k_scr[:, sl],
            dimension_numbers=(((1,), (1,)), ((), ())),
            preferred_element_type=jnp.float32)          # (TQ, S) f32
        s = s + mask_bias
        s_max = jnp.max(s, axis=-1, keepdims=True)
        p = jnp.exp(s - s_max)
        rs = jnp.sum(p, axis=-1, keepdims=True)          # (TQ, 1)
        o_h = jnp.dot(p.astype(jnp.bfloat16), v_scr[:, sl],
                      preferred_element_type=jnp.float32)  # (TQ, dk) f32
        # Normalize AFTER P.V: (TQ, dk) multiplies instead of (TQ, S).
        attn_scr[:, sl] = o_h * pl.reciprocal(rs, approx=True)

    attn = jnp.dot(attn_scr[...].astype(jnp.bfloat16), wo_ref[...],
                   preferred_element_type=jnp.float32) + bo_ref[...]

    # ---- residual + layernorm 1 --------------------------------------------
    y = _layernorm(x_blk + attn, g1_ref[...], be1_ref[...])

    # ---- position-wise feed forward ------------------------------------------
    h1 = jnp.dot(y.astype(jnp.bfloat16), w1_ref[...],
                 preferred_element_type=jnp.float32) + b1_ref[...]
    h1 = jnp.maximum(h1, 0.0).astype(jnp.bfloat16)       # drop f32 copy immediately
    ff = jnp.dot(h1, w2_ref[...],
                 preferred_element_type=jnp.float32) + b2_ref[...]

    # ---- residual + layernorm 2 ----------------------------------------------
    o_ref[0] = _layernorm(y + ff, g2_ref[...], be2_ref[...]).astype(o_ref.dtype)


def prepare_params(params, *, num_heads):
    """One-time parameter prep (hoisted out of the per-call path):
    fuse W_k/W_v, cast matmul weights to bf16, fold 1/sqrt(dk) into W_q/b_q (in f32)."""
    D = params["wq"].shape[0]
    dk = D // num_heads
    scale = jnp.float32(1.0 / math.sqrt(dk))
    return {
        "wq": (params["wq"] * scale).astype(jnp.bfloat16),
        "bq": params["bq"] * scale,
        "wkv": jnp.concatenate([params["wk"], params["wv"]], axis=1).astype(jnp.bfloat16),
        "bkv": jnp.concatenate([params["bk"], params["bv"]], axis=1),
        "wo": params["wo"].astype(jnp.bfloat16), "bo": params["bo"],
        "w1": params["w1"].astype(jnp.bfloat16), "b1": params["b1"],
        "w2": params["w2"].astype(jnp.bfloat16), "b2": params["b2"],
        "g1": params["g1"], "be1": params["be1"],
        "g2": params["g2"], "be2": params["be2"],
    }


def encoder_layer(x, key_mask, prep, *, num_heads, block_q=None, out_dtype=jnp.float32):
    """x: (B,S,D) f32, key_mask: (B,1,S) f32 (1=attend, 0=masked), prep = prepare_params(...)."""
    B, S, D = x.shape
    d_ff = prep["w1"].shape[1]
    assert D % num_heads == 0

    TQ = block_q if block_q is not None else _pick_block_q(S, D)
    assert S % TQ == 0
    n_qb = S // TQ

    kernel = functools.partial(encoder_layer_kernel, num_heads=num_heads, block_q=TQ)

    def run(single_buffer_weights):
        def const2d(shape):
            # Constant block index across the whole grid -> the block stays
            # resident (no re-DMA); single-buffer it to halve weight VMEM.
            if single_buffer_weights:
                return pl.BlockSpec(shape, lambda b, qb: (0, 0),
                                    pipeline_mode=pl.Buffered(1))
            return pl.BlockSpec(shape, lambda b, qb: (0, 0))

        in_specs = [
            pl.BlockSpec((1, S, D), lambda b, qb: (b, 0, 0)),   # x (full sequence)
            pl.BlockSpec((1, 1, S), lambda b, qb: (b, 0, 0)),   # key mask (B,1,S)
            const2d((D, D)), const2d((1, D)),                   # wq (pre-scaled), bq
            const2d((D, 2 * D)), const2d((1, 2 * D)),           # wkv, bkv
            const2d((D, D)), const2d((1, D)),                   # wo, bo
            const2d((1, D)), const2d((1, D)),                   # norm1 gamma, beta
            const2d((D, d_ff)), const2d((1, d_ff)),             # fc1
            const2d((d_ff, D)), const2d((1, D)),                # fc2
            const2d((1, D)), const2d((1, D)),                   # norm2 gamma, beta
        ]

        return pl.pallas_call(
            kernel,
            out_shape=jax.ShapeDtypeStruct((B, S, D), out_dtype),
            grid_spec=pltpu.PrefetchScalarGridSpec(
                num_scalar_prefetch=0,
                grid=(B, n_qb),
                in_specs=in_specs,
                out_specs=pl.BlockSpec((1, TQ, D), lambda b, qb: (b, qb, 0)),
                scratch_shapes=[
                    pltpu.VMEM((S, D), jnp.bfloat16),   # K, whole sequence (persists over qb)
                    pltpu.VMEM((S, D), jnp.bfloat16),   # V, whole sequence (persists over qb)
                    pltpu.VMEM((TQ, D), jnp.float32),   # concatenated head outputs
                ],
            ),
            compiler_params=pltpu.CompilerParams(
                dimension_semantics=("parallel", "arbitrary"),
                vmem_limit_bytes=_pick_vmem_limit_bytes(),
            ),
        )(
            x, key_mask,
            prep["wq"], prep["bq"], prep["wkv"], prep["bkv"],
            prep["wo"], prep["bo"], prep["g1"], prep["be1"],
            prep["w1"], prep["b1"], prep["w2"], prep["b2"],
            prep["g2"], prep["be2"],
        )

    try:
        return run(single_buffer_weights=True)
    except Exception:
        # pl.Buffered(1) not supported by this jax/Mosaic build -> default buffering.
        return run(single_buffer_weights=False)


def init_params(key, d_model, d_ff):
    ks = jax.random.split(key, 6)
    s = 1.0 / math.sqrt(d_model)
    sf = 1.0 / math.sqrt(d_ff)
    return {
        # linear weights stored as (in, out): y = x @ W + b
        "wq": jax.random.normal(ks[0], (d_model, d_model), jnp.float32) * s,
        "wk": jax.random.normal(ks[1], (d_model, d_model), jnp.float32) * s,
        "wv": jax.random.normal(ks[2], (d_model, d_model), jnp.float32) * s,
        "wo": jax.random.normal(ks[3], (d_model, d_model), jnp.float32) * s,
        "bq": jnp.zeros((1, d_model), jnp.float32),
        "bk": jnp.zeros((1, d_model), jnp.float32),
        "bv": jnp.zeros((1, d_model), jnp.float32),
        "bo": jnp.zeros((1, d_model), jnp.float32),
        "w1": jax.random.normal(ks[4], (d_model, d_ff), jnp.float32) * s,
        "b1": jnp.zeros((1, d_ff), jnp.float32),
        "w2": jax.random.normal(ks[5], (d_ff, d_model), jnp.float32) * sf,
        "b2": jnp.zeros((1, d_model), jnp.float32),
        "g1": jnp.ones((1, d_model), jnp.float32),
        "be1": jnp.zeros((1, d_model), jnp.float32),
        "g2": jnp.ones((1, d_model), jnp.float32),
        "be2": jnp.zeros((1, d_model), jnp.float32),
    }


def ref_encoder_layer(x, key_mask, p, num_heads):
    """Pure-JAX f32 reference (mirrors the PyTorch module, eval mode)."""
    B, S, D = x.shape
    dk = D // num_heads

    def ln(y, g, b, eps=1e-5):
        mu = y.mean(-1, keepdims=True)
        var = ((y - mu) ** 2).mean(-1, keepdims=True)
        return (y - mu) / jnp.sqrt(var + eps) * g + b

    def split(t):
        return t.reshape(B, S, num_heads, dk).transpose(0, 2, 1, 3)  # (B,H,S,dk)

    q = split(x @ p["wq"] + p["bq"])
    k = split(x @ p["wk"] + p["bk"])
    v = split(x @ p["wv"] + p["bv"])
    s = jnp.einsum("bhqd,bhkd->bhqk", q, k) / math.sqrt(dk)
    mask = key_mask[:, :, None, :]                       # (B,1,1,S)
    s = jnp.where(mask == 0.0, jnp.float32(-1e9), s)
    pa = jax.nn.softmax(s, axis=-1)
    o = jnp.einsum("bhqk,bhkd->bhqd", pa, v).transpose(0, 2, 1, 3).reshape(B, S, D)
    attn = o @ p["wo"] + p["bo"]
    y = ln(x + attn, p["g1"], p["be1"])
    ff = jnp.maximum(y @ p["w1"] + p["b1"], 0.0) @ p["w2"] + p["b2"]
    return ln(y + ff, p["g2"], p["be2"])


if __name__ == "__main__":
    B, S, D, H, D_FF = 2, 8, 32, 4, 64

    key = jax.random.PRNGKey(0)
    kx, kp = jax.random.split(key)

    x = jax.random.normal(kx, (B, S, D), jnp.float32)
    # key mask: attend to first 6 positions for batch 0, all 8 for batch 1
    valid = jnp.array([6, 8], jnp.int32)
    key_mask = (jnp.arange(S)[None, :] < valid[:, None]).astype(jnp.float32)   # (B, S)
    key_mask = key_mask[:, None, :]                                            # (B, 1, S)

    params = init_params(kp, D, D_FF)
    prep = prepare_params(params, num_heads=H)          # one-time weight fuse / bf16 cast

    out = encoder_layer(x, key_mask, prep, num_heads=H)
    jax.block_until_ready(out)

    assert out.shape == (B, S, D) and out.dtype == jnp.float32
    assert bool(jnp.all(jnp.isfinite(out)))

    # Correctness vs. f32 reference (kernel uses bf16 MXU inputs -> loose tol).
    ref = ref_encoder_layer(x, key_mask, params, H)
    max_err = float(jnp.max(jnp.abs(out - ref)))
    assert max_err < 0.15, f"max abs err vs reference too large: {max_err}"

    print("KERNEL_OK")
</pallas_src>

<mosaic_0001>
module attributes {stable_mosaic.version = 11 : i64} {
  func.func @encoder_layer_kernel(%arg0: i32, %arg1: i32, %arg2: memref<1x8x32xf32, #tpu.memory_space<vmem>>, %arg3: memref<1x1x8xf32, #tpu.memory_space<vmem>>, %arg4: memref<32x32xbf16, #tpu.memory_space<vmem>>, %arg5: memref<1x32xf32, #tpu.memory_space<vmem>>, %arg6: memref<32x64xbf16, #tpu.memory_space<vmem>>, %arg7: memref<1x64xf32, #tpu.memory_space<vmem>>, %arg8: memref<32x32xbf16, #tpu.memory_space<vmem>>, %arg9: memref<1x32xf32, #tpu.memory_space<vmem>>, %arg10: memref<1x32xf32, #tpu.memory_space<vmem>>, %arg11: memref<1x32xf32, #tpu.memory_space<vmem>>, %arg12: memref<32x64xbf16, #tpu.memory_space<vmem>>, %arg13: memref<1x64xf32, #tpu.memory_space<vmem>>, %arg14: memref<64x32xbf16, #tpu.memory_space<vmem>>, %arg15: memref<1x32xf32, #tpu.memory_space<vmem>>, %arg16: memref<1x32xf32, #tpu.memory_space<vmem>>, %arg17: memref<1x32xf32, #tpu.memory_space<vmem>>, %arg18: memref<1x8x32xf32, #tpu.memory_space<vmem>>, %arg19: memref<8x32xbf16, #tpu.memory_space<vmem>>, %arg20: memref<8x32xbf16, #tpu.memory_space<vmem>>, %arg21: memref<8x32xf32, #tpu.memory_space<vmem>>) attributes {dimension_semantics = [#tpu.dimension_semantics<parallel>, #tpu.dimension_semantics<arbitrary>], iteration_bounds = array<i64: 2, 1>, scalar_prefetch = 0 : i64, scratch_operands = 3 : i64, tpu.core_type = #tpu.core_type<tc>, window_params = [{transform_indices = @transform_0, window_bounds = array<i64: 1, 8, 32>}, {transform_indices = @transform_1, window_bounds = array<i64: 1, 1, 8>}, {pipeline_mode = #tpu.pipeline_mode<synchronous>, transform_indices = @transform_2, window_bounds = array<i64: 32, 32>}, {pipeline_mode = #tpu.pipeline_mode<synchronous>, transform_indices = @transform_3, window_bounds = array<i64: 1, 32>}, {pipeline_mode = #tpu.pipeline_mode<synchronous>, transform_indices = @transform_4, window_bounds = array<i64: 32, 64>}, {pipeline_mode = #tpu.pipeline_mode<synchronous>, transform_indices = @transform_5, window_bounds = array<i64: 1, 64>}, {pipeline_mode = #tpu.pipeline_mode<synchronous>, transform_indices = @transform_6, window_bounds = array<i64: 32, 32>}, {pipeline_mode = #tpu.pipeline_mode<synchronous>, transform_indices = @transform_7, window_bounds = array<i64: 1, 32>}, {pipeline_mode = #tpu.pipeline_mode<synchronous>, transform_indices = @transform_8, window_bounds = array<i64: 1, 32>}, {pipeline_mode = #tpu.pipeline_mode<synchronous>, transform_indices = @transform_9, window_bounds = array<i64: 1, 32>}, {pipeline_mode = #tpu.pipeline_mode<synchronous>, transform_indices = @transform_10, window_bounds = array<i64: 32, 64>}, {pipeline_mode = #tpu.pipeline_mode<synchronous>, transform_indices = @transform_11, window_bounds = array<i64: 1, 64>}, {pipeline_mode = #tpu.pipeline_mode<synchronous>, transform_indices = @transform_12, window_bounds = array<i64: 64, 32>}, {pipeline_mode = #tpu.pipeline_mode<synchronous>, transform_indices = @transform_13, window_bounds = array<i64: 1, 32>}, {pipeline_mode = #tpu.pipeline_mode<synchronous>, transform_indices = @transform_14, window_bounds = array<i64: 1, 32>}, {pipeline_mode = #tpu.pipeline_mode<synchronous>, transform_indices = @transform_15, window_bounds = array<i64: 1, 32>}, {transform_indices = @transform_16, window_bounds = array<i64: 1, 8, 32>}]} {
    %c0 = arith.constant 0 : index
    %c0_0 = arith.constant 0 : index
    %c0_1 = arith.constant 0 : index
    %0 = vector.load %arg3[%c0, %c0_0, %c0_1] : memref<1x1x8xf32, #tpu.memory_space<vmem>>, vector<1x1x8xf32>
    %1 = vector.shape_cast %0 : vector<1x1x8xf32> to vector<1x8xf32>
    %cst = arith.constant 1.000000e+00 : f32
    %2 = vector.broadcast %cst : f32 to vector<1x8xf32>
    %3 = arith.subf %1, %2 : vector<1x8xf32>
    %cst_2 = arith.constant 1.000000e+09 : f32
    %4 = vector.broadcast %cst_2 : f32 to vector<1x8xf32>
    %5 = arith.mulf %3, %4 : vector<1x8xf32>
    %c0_i32 = arith.constant 0 : i32
    %6 = arith.cmpi eq, %arg1, %c0_i32 : i32
    %7 = arith.extui %6 : i1 to i32
    %c0_i32_3 = arith.constant 0 : i32
    %8 = arith.cmpi ne, %7, %c0_i32_3 : i32
    scf.if %8 {
      %c0_87 = arith.constant 0 : index
      %c0_88 = arith.constant 0 : index
      %c0_89 = arith.constant 0 : index
      %175 = vector.load %arg2[%c0_87, %c0_88, %c0_89] : memref<1x8x32xf32, #tpu.memory_space<vmem>>, vector<1x8x32xf32>
      %176 = vector.shape_cast %175 : vector<1x8x32xf32> to vector<8x32xf32>
      %177 = arith.truncf %176 : vector<8x32xf32> to vector<8x32xbf16>
      %c0_90 = arith.constant 0 : index
      %c0_91 = arith.constant 0 : index
      %178 = vector.load %arg6[%c0_90, %c0_91] : memref<32x64xbf16, #tpu.memory_space<vmem>>, vector<32x64xbf16>
      %cst_92 = arith.constant dense<0.000000e+00> : vector<8x64xf32>
      %179 = tpu.matmul %177, %178, %cst_92 {dimension_numbers = #tpu.dot_dimension_numbers<[1], [0], [0], [1], [0, 0, 1, 1], [], []>} : vector<8x32xbf16>, vector<32x64xbf16>, vector<8x64xf32> -> vector<8x64xf32>
      %c0_93 = arith.constant 0 : index
      %c0_94 = arith.constant 0 : index
      %180 = vector.load %arg7[%c0_93, %c0_94] : memref<1x64xf32, #tpu.memory_space<vmem>>, vector<1x64xf32>
      %181 = vector.broadcast %180 : vector<1x64xf32> to vector<8x64xf32>
      %182 = arith.addf %179, %181 : vector<8x64xf32>
      %183 = vector.extract_strided_slice %182 {offsets = [0, 0], sizes = [8, 32], strides = [1, 1]} : vector<8x64xf32> to vector<8x32xf32>
      %184 = arith.truncf %183 : vector<8x32xf32> to vector<8x32xbf16>
      %c0_95 = arith.constant 0 : index
      %c0_96 = arith.constant 0 : index
      %185 = vector.load %arg19[%c0_95, %c0_96] : memref<8x32xbf16, #tpu.memory_space<vmem>>, vector<8x32xbf16>
      tpu.vector_store %arg19[%c0_95, %c0_96], %184 {strides = array<i32>} : memref<8x32xbf16, #tpu.memory_space<vmem>>, vector<8x32xbf16>,
      %186 = vector.extract_strided_slice %182 {offsets = [0, 32], sizes = [8, 32], strides = [1, 1]} : vector<8x64xf32> to vector<8x32xf32>
      %187 = arith.truncf %186 : vector<8x32xf32> to vector<8x32xbf16>
      %c0_97 = arith.constant 0 : index
      %c0_98 = arith.constant 0 : index
      %188 = vector.load %arg20[%c0_97, %c0_98] : memref<8x32xbf16, #tpu.memory_space<vmem>>, vector<8x32xbf16>
      tpu.vector_store %arg20[%c0_97, %c0_98], %187 {strides = array<i32>} : memref<8x32xbf16, #tpu.memory_space<vmem>>, vector<8x32xbf16>,
    } else {
    }
    %c8_i32 = arith.constant 8 : i32
    %9 = arith.muli %arg1, %c8_i32 : i32
    %10 = tpu.assume_multiple %9, 8 : i32
    %c0_4 = arith.constant 0 : index
    %11 = arith.index_cast %10 : i32 to index
    %c0_5 = arith.constant 0 : index
    %12 = vector.load %arg2[%c0_4, %11, %c0_5] : memref<1x8x32xf32, #tpu.memory_space<vmem>>, vector<1x8x32xf32>
    %13 = vector.shape_cast %12 : vector<1x8x32xf32> to vector<8x32xf32>
    %14 = arith.truncf %13 : vector<8x32xf32> to vector<8x32xbf16>
    %c0_6 = arith.constant 0 : index
    %c0_7 = arith.constant 0 : index
    %15 = vector.load %arg4[%c0_6, %c0_7] : memref<32x32xbf16, #tpu.memory_space<vmem>>, vector<32x32xbf16>
    %cst_8 = arith.constant dense<0.000000e+00> : vector<8x32xf32>
    %16 = tpu.matmul %14, %15, %cst_8 {dimension_numbers = #tpu.dot_dimension_numbers<[1], [0], [0], [1], [0, 0, 1, 1], [], []>} : vector<8x32xbf16>, vector<32x32xbf16>, vector<8x32xf32> -> vector<8x32xf32>
    %c0_9 = arith.constant 0 : index
    %c0_10 = arith.constant 0 : index
    %17 = vector.load %arg5[%c0_9, %c0_10] : memref<1x32xf32, #tpu.memory_space<vmem>>, vector<1x32xf32>
    %18 = vector.broadcast %17 : vector<1x32xf32> to vector<8x32xf32>
    %19 = arith.addf %16, %18 : vector<8x32xf32>
    %20 = arith.truncf %19 : vector<8x32xf32> to vector<8x32xbf16>
    %21 = vector.extract_strided_slice %20 {offsets = [0, 0], sizes = [8, 8], strides = [1, 1]} : vector<8x32xbf16> to vector<8x8xbf16>
    %c0_11 = arith.constant 0 : index
    %c0_12 = arith.constant 0 : index
    %22 = vector.load %arg19[%c0_11, %c0_12] : memref<8x32xbf16, #tpu.memory_space<vmem>>, vector<8x8xbf16>
    %cst_13 = arith.constant dense<0.000000e+00> : vector<8x8xf32>
    %23 = tpu.matmul %21, %22, %cst_13 {dimension_numbers = #tpu.dot_dimension_numbers<[1], [1], [0], [0], [0, 0, 1, 0], [], []>} : vector<8x8xbf16>, vector<8x8xbf16>, vector<8x8xf32> -> vector<8x8xf32>
    %24 = vector.broadcast %5 : vector<1x8xf32> to vector<8x8xf32>
    %25 = arith.addf %23, %24 : vector<8x8xf32>
    %cst_14 = arith.constant dense<0xFF800000> : vector<8xf32>
    %26 = vector.multi_reduction <maximumf>, %25, %cst_14 [1] : vector<8x8xf32> to vector<8xf32>
    %27 = vector.shape_cast %26 : vector<8xf32> to vector<8x1xf32>
    %28 = vector.broadcast %27 : vector<8x1xf32> to vector<8x8xf32>
    %29 = arith.subf %25, %28 : vector<8x8xf32>
    %30 = math.exp %29 : vector<8x8xf32>
    %cst_15 = arith.constant dense<0.000000e+00> : vector<8xf32>
    %31 = vector.multi_reduction <add>, %30, %cst_15 [1] : vector<8x8xf32> to vector<8xf32>
    %32 = vector.shape_cast %31 : vector<8xf32> to vector<8x1xf32>
    %33 = arith.truncf %30 : vector<8x8xf32> to vector<8x8xbf16>
    %c0_16 = arith.constant 0 : index
    %c0_17 = arith.constant 0 : index
    %34 = vector.load %arg20[%c0_16, %c0_17] : memref<8x32xbf16, #tpu.memory_space<vmem>>, vector<8x8xbf16>
    %cst_18 = arith.constant dense<0.000000e+00> : vector<8x8xf32>
    %35 = tpu.matmul %33, %34, %cst_18 {dimension_numbers = #tpu.dot_dimension_numbers<[1], [0], [0], [1], [0, 0, 1, 1], [], []>} : vector<8x8xbf16>, vector<8x8xbf16>, vector<8x8xf32> -> vector<8x8xf32>
    %36 = tpu.reciprocal %32 {approx = true} : vector<8x1xf32> -> vector<8x1xf32>
    %37 = vector.broadcast %36 : vector<8x1xf32> to vector<8x8xf32>
    %38 = arith.mulf %35, %37 : vector<8x8xf32>
    %c0_19 = arith.constant 0 : index
    %c0_20 = arith.constant 0 : index
    %39 = vector.load %arg21[%c0_19, %c0_20] : memref<8x32xf32, #tpu.memory_space<vmem>>, vector<8x8xf32>
    tpu.vector_store %arg21[%c0_19, %c0_20], %38 {strides = array<i32>} : memref<8x32xf32, #tpu.memory_space<vmem>>, vector<8x8xf32>,
    %40 = vector.extract_strided_slice %20 {offsets = [0, 8], sizes = [8, 8], strides = [1, 1]} : vector<8x32xbf16> to vector<8x8xbf16>
    %c0_21 = arith.constant 0 : index
    %c8 = arith.constant 8 : index
    %41 = vector.load %arg19[%c0_21, %c8] : memref<8x32xbf16, #tpu.memory_space<vmem>>, vector<8x8xbf16>
    %cst_22 = arith.constant dense<0.000000e+00> : vector<8x8xf32>
    %42 = tpu.matmul %40, %41, %cst_22 {dimension_numbers = #tpu.dot_dimension_numbers<[1], [1], [0], [0], [0, 0, 1, 0], [], []>} : vector<8x8xbf16>, vector<8x8xbf16>, vector<8x8xf32> -> vector<8x8xf32>
    %43 = vector.broadcast %5 : vector<1x8xf32> to vector<8x8xf32>
    %44 = arith.addf %42, %43 : vector<8x8xf32>
    %cst_23 = arith.constant dense<0xFF800000> : vector<8xf32>
    %45 = vector.multi_reduction <maximumf>, %44, %cst_23 [1] : vector<8x8xf32> to vector<8xf32>
    %46 = vector.shape_cast %45 : vector<8xf32> to vector<8x1xf32>
    %47 = vector.broadcast %46 : vector<8x1xf32> to vector<8x8xf32>
    %48 = arith.subf %44, %47 : vector<8x8xf32>
    %49 = math.exp %48 : vector<8x8xf32>
    %cst_24 = arith.constant dense<0.000000e+00> : vector<8xf32>
    %50 = vector.multi_reduction <add>, %49, %cst_24 [1] : vector<8x8xf32> to vector<8xf32>
    %51 = vector.shape_cast %50 : vector<8xf32> to vector<8x1xf32>
    %52 = arith.truncf %49 : vector<8x8xf32> to vector<8x8xbf16>
    %c0_25 = arith.constant 0 : index
    %c8_26 = arith.constant 8 : index
    %53 = vector.load %arg20[%c0_25, %c8_26] : memref<8x32xbf16, #tpu.memory_space<vmem>>, vector<8x8xbf16>
    %cst_27 = arith.constant dense<0.000000e+00> : vector<8x8xf32>
    %54 = tpu.matmul %52, %53, %cst_27 {dimension_numbers = #tpu.dot_dimension_numbers<[1], [0], [0], [1], [0, 0, 1, 1], [], []>} : vector<8x8xbf16>, vector<8x8xbf16>, vector<8x8xf32> -> vector<8x8xf32>
    %55 = tpu.reciprocal %51 {approx = true} : vector<8x1xf32> -> vector<8x1xf32>
    %56 = vector.broadcast %55 : vector<8x1xf32> to vector<8x8xf32>
    %57 = arith.mulf %54, %56 : vector<8x8xf32>
    %c0_28 = arith.constant 0 : index
    %c8_29 = arith.constant 8 : index
    %58 = vector.load %arg21[%c0_28, %c8_29] : memref<8x32xf32, #tpu.memory_space<vmem>>, vector<8x8xf32>
    tpu.vector_store %arg21[%c0_28, %c8_29], %57 {strides = array<i32>} : memref<8x32xf32, #tpu.memory_space<vmem>>, vector<8x8xf32>,
    %59 = vector.extract_strided_slice %20 {offsets = [0, 16], sizes = [8, 8], strides = [1, 1]} : vector<8x32xbf16> to vector<8x8xbf16>
    %c0_30 = arith.constant 0 : index
    %c16 = arith.constant 16 : index
    %60 = vector.load %arg19[%c0_30, %c16] : memref<8x32xbf16, #tpu.memory_space<vmem>>, vector<8x8xbf16>
    %cst_31 = arith.constant dense<0.000000e+00> : vector<8x8xf32>
    %61 = tpu.matmul %59, %60, %cst_31 {dimension_numbers = #tpu.dot_dimension_numbers<[1], [1], [0], [0], [0, 0, 1, 0], [], []>} : vector<8x8xbf16>, vector<8x8xbf16>, vector<8x8xf32> -> vector<8x8xf32>
    %62 = vector.broadcast %5 : vector<1x8xf32> to vector<8x8xf32>
    %63 = arith.addf %61, %62 : vector<8x8xf32>
    %cst_32 = arith.constant dense<0xFF800000> : vector<8xf32>
    %64 = vector.multi_reduction <maximumf>, %63, %cst_32 [1] : vector<8x8xf32> to vector<8xf32>
    %65 = vector.shape_cast %64 : vector<8xf32> to vector<8x1xf32>
    %66 = vector.broadcast %65 : vector<8x1xf32> to vector<8x8xf32>
    %67 = arith.subf %63, %66 : vector<8x8xf32>
    %68 = math.exp %67 : vector<8x8xf32>
    %cst_33 = arith.constant dense<0.000000e+00> : vector<8xf32>
    %69 = vector.multi_reduction <add>, %68, %cst_33 [1] : vector<8x8xf32> to vector<8xf32>
    %70 = vector.shape_cast %69 : vector<8xf32> to vector<8x1xf32>
    %71 = arith.truncf %68 : vector<8x8xf32> to vector<8x8xbf16>
    %c0_34 = arith.constant 0 : index
    %c16_35 = arith.constant 16 : index
    %72 = vector.load %arg20[%c0_34, %c16_35] : memref<8x32xbf16, #tpu.memory_space<vmem>>, vector<8x8xbf16>
    %cst_36 = arith.constant dense<0.000000e+00> : vector<8x8xf32>
    %73 = tpu.matmul %71, %72, %cst_36 {dimension_numbers = #tpu.dot_dimension_numbers<[1], [0], [0], [1], [0, 0, 1, 1], [], []>} : vector<8x8xbf16>, vector<8x8xbf16>, vector<8x8xf32> -> vector<8x8xf32>
    %74 = tpu.reciprocal %70 {approx = true} : vector<8x1xf32> -> vector<8x1xf32>
    %75 = vector.broadcast %74 : vector<8x1xf32> to vector<8x8xf32>
    %76 = arith.mulf %73, %75 : vector<8x8xf32>
    %c0_37 = arith.constant 0 : index
    %c16_38 = arith.constant 16 : index
    %77 = vector.load %arg21[%c0_37, %c16_38] : memref<8x32xf32, #tpu.memory_space<vmem>>, vector<8x8xf32>
    tpu.vector_store %arg21[%c0_37, %c16_38], %76 {strides = array<i32>} : memref<8x32xf32, #tpu.memory_space<vmem>>, vector<8x8xf32>,
    %78 = vector.extract_strided_slice %20 {offsets = [0, 24], sizes = [8, 8], strides = [1, 1]} : vector<8x32xbf16> to vector<8x8xbf16>
    %c0_39 = arith.constant 0 : index
    %c24 = arith.constant 24 : index
    %79 = vector.load %arg19[%c0_39, %c24] : memref<8x32xbf16, #tpu.memory_space<vmem>>, vector<8x8xbf16>
    %cst_40 = arith.constant dense<0.000000e+00> : vector<8x8xf32>
    %80 = tpu.matmul %78, %79, %cst_40 {dimension_numbers = #tpu.dot_dimension_numbers<[1], [1], [0], [0], [0, 0, 1, 0], [], []>} : vector<8x8xbf16>, vector<8x8xbf16>, vector<8x8xf32> -> vector<8x8xf32>
    %81 = vector.broadcast %5 : vector<1x8xf32> to vector<8x8xf32>
    %82 = arith.addf %80, %81 : vector<8x8xf32>
    %cst_41 = arith.constant dense<0xFF800000> : vector<8xf32>
    %83 = vector.multi_reduction <maximumf>, %82, %cst_41 [1] : vector<8x8xf32> to vector<8xf32>
    %84 = vector.shape_cast %83 : vector<8xf32> to vector<8x1xf32>
    %85 = vector.broadcast %84 : vector<8x1xf32> to vector<8x8xf32>
    %86 = arith.subf %82, %85 : vector<8x8xf32>
    %87 = math.exp %86 : vector<8x8xf32>
    %cst_42 = arith.constant dense<0.000000e+00> : vector<8xf32>
    %88 = vector.multi_reduction <add>, %87, %cst_42 [1] : vector<8x8xf32> to vector<8xf32>
    %89 = vector.shape_cast %88 : vector<8xf32> to vector<8x1xf32>
    %90 = arith.truncf %87 : vector<8x8xf32> to vector<8x8xbf16>
    %c0_43 = arith.constant 0 : index
    %c24_44 = arith.constant 24 : index
    %91 = vector.load %arg20[%c0_43, %c24_44] : memref<8x32xbf16, #tpu.memory_space<vmem>>, vector<8x8xbf16>
    %cst_45 = arith.constant dense<0.000000e+00> : vector<8x8xf32>
    %92 = tpu.matmul %90, %91, %cst_45 {dimension_numbers = #tpu.dot_dimension_numbers<[1], [0], [0], [1], [0, 0, 1, 1], [], []>} : vector<8x8xbf16>, vector<8x8xbf16>, vector<8x8xf32> -> vector<8x8xf32>
    %93 = tpu.reciprocal %89 {approx = true} : vector<8x1xf32> -> vector<8x1xf32>
    %94 = vector.broadcast %93 : vector<8x1xf32> to vector<8x8xf32>
    %95 = arith.mulf %92, %94 : vector<8x8xf32>
    %c0_46 = arith.constant 0 : index
    %c24_47 = arith.constant 24 : index
    %96 = vector.load %arg21[%c0_46, %c24_47] : memref<8x32xf32, #tpu.memory_space<vmem>>, vector<8x8xf32>
    tpu.vector_store %arg21[%c0_46, %c24_47], %95 {strides = array<i32>} : memref<8x32xf32, #tpu.memory_space<vmem>>, vector<8x8xf32>,
    %c0_48 = arith.constant 0 : index
    %c0_49 = arith.constant 0 : index
    %97 = vector.load %arg21[%c0_48, %c0_49] : memref<8x32xf32, #tpu.memory_space<vmem>>, vector<8x32xf32>
    %98 = arith.truncf %97 : vector<8x32xf32> to vector<8x32xbf16>
    %c0_50 = arith.constant 0 : index
    %c0_51 = arith.constant 0 : index
    %99 = vector.load %arg8[%c0_50, %c0_51] : memref<32x32xbf16, #tpu.memory_space<vmem>>, vector<32x32xbf16>
    %cst_52 = arith.constant dense<0.000000e+00> : vector<8x32xf32>
    %100 = tpu.matmul %98, %99, %cst_52 {dimension_numbers = #tpu.dot_dimension_numbers<[1], [0], [0], [1], [0, 0, 1, 1], [], []>} : vector<8x32xbf16>, vector<32x32xbf16>, vector<8x32xf32> -> vector<8x32xf32>
    %c0_53 = arith.constant 0 : index
    %c0_54 = arith.constant 0 : index
    %101 = vector.load %arg9[%c0_53, %c0_54] : memref<1x32xf32, #tpu.memory_space<vmem>>, vector<1x32xf32>
    %102 = vector.broadcast %101 : vector<1x32xf32> to vector<8x32xf32>
    %103 = arith.addf %100, %102 : vector<8x32xf32>
    %104 = arith.addf %13, %103 : vector<8x32xf32>
    %c0_55 = arith.constant 0 : index
    %c0_56 = arith.constant 0 : index
    %105 = vector.load %arg10[%c0_55, %c0_56] : memref<1x32xf32, #tpu.memory_space<vmem>>, vector<1x32xf32>
    %c0_57 = arith.constant 0 : index
    %c0_58 = arith.constant 0 : index
    %106 = vector.load %arg11[%c0_57, %c0_58] : memref<1x32xf32, #tpu.memory_space<vmem>>, vector<1x32xf32>
    %cst_59 = arith.constant dense<0.000000e+00> : vector<8xf32>
    %107 = vector.multi_reduction <add>, %104, %cst_59 [1] : vector<8x32xf32> to vector<8xf32>
    %108 = vector.shape_cast %107 : vector<8xf32> to vector<8x1xf32>
    %cst_60 = arith.constant 3.200000e+01 : f32
    %109 = vector.broadcast %cst_60 : f32 to vector<8x1xf32>
    %110 = arith.divf %108, %109 : vector<8x1xf32>
    %111 = vector.broadcast %110 : vector<8x1xf32> to vector<8x32xf32>
    %112 = arith.subf %104, %111 : vector<8x32xf32>
    %113 = vector.broadcast %110 : vector<8x1xf32> to vector<8x32xf32>
    %114 = arith.subf %104, %113 : vector<8x32xf32>
    %115 = arith.mulf %112, %114 : vector<8x32xf32>
    %cst_61 = arith.constant dense<0.000000e+00> : vector<8xf32>
    %116 = vector.multi_reduction <add>, %115, %cst_61 [1] : vector<8x32xf32> to vector<8xf32>
    %117 = vector.shape_cast %116 : vector<8xf32> to vector<8x1xf32>
    %cst_62 = arith.constant 3.200000e+01 : f32
    %118 = vector.broadcast %cst_62 : f32 to vector<8x1xf32>
    %119 = arith.divf %117, %118 : vector<8x1xf32>
    %120 = vector.broadcast %110 : vector<8x1xf32> to vector<8x32xf32>
    %121 = arith.subf %104, %120 : vector<8x32xf32>
    %cst_63 = arith.constant 9.99999974E-6 : f32
    %122 = vector.broadcast %cst_63 : f32 to vector<8x1xf32>
    %123 = arith.addf %119, %122 : vector<8x1xf32>
    %124 = math.rsqrt %123 : vector<8x1xf32>
    %125 = vector.broadcast %124 : vector<8x1xf32> to vector<8x32xf32>
    %126 = arith.mulf %121, %125 : vector<8x32xf32>
    %127 = vector.broadcast %105 : vector<1x32xf32> to vector<8x32xf32>
    %128 = arith.mulf %126, %127 : vector<8x32xf32>
    %129 = vector.broadcast %106 : vector<1x32xf32> to vector<8x32xf32>
    %130 = arith.addf %128, %129 : vector<8x32xf32>
    %131 = arith.truncf %130 : vector<8x32xf32> to vector<8x32xbf16>
    %c0_64 = arith.constant 0 : index
    %c0_65 = arith.constant 0 : index
    %132 = vector.load %arg12[%c0_64, %c0_65] : memref<32x64xbf16, #tpu.memory_space<vmem>>, vector<32x64xbf16>
    %cst_66 = arith.constant dense<0.000000e+00> : vector<8x64xf32>
    %133 = tpu.matmul %131, %132, %cst_66 {dimension_numbers = #tpu.dot_dimension_numbers<[1], [0], [0], [1], [0, 0, 1, 1], [], []>} : vector<8x32xbf16>, vector<32x64xbf16>, vector<8x64xf32> -> vector<8x64xf32>
    %c0_67 = arith.constant 0 : index
    %c0_68 = arith.constant 0 : index
    %134 = vector.load %arg13[%c0_67, %c0_68] : memref<1x64xf32, #tpu.memory_space<vmem>>, vector<1x64xf32>
    %135 = vector.broadcast %134 : vector<1x64xf32> to vector<8x64xf32>
    %136 = arith.addf %133, %135 : vector<8x64xf32>
    %cst_69 = arith.constant 0.000000e+00 : f32
    %137 = vector.broadcast %cst_69 : f32 to vector<8x64xf32>
    %138 = arith.maximumf %136, %137 : vector<8x64xf32>
    %139 = arith.truncf %138 : vector<8x64xf32> to vector<8x64xbf16>
    %c0_70 = arith.constant 0 : index
    %c0_71 = arith.constant 0 : index
    %140 = vector.load %arg14[%c0_70, %c0_71] : memref<64x32xbf16, #tpu.memory_space<vmem>>, vector<64x32xbf16>
    %cst_72 = arith.constant dense<0.000000e+00> : vector<8x32xf32>
    %141 = tpu.matmul %139, %140, %cst_72 {dimension_numbers = #tpu.dot_dimension_numbers<[1], [0], [0], [1], [0, 0, 1, 1], [], []>} : vector<8x64xbf16>, vector<64x32xbf16>, vector<8x32xf32> -> vector<8x32xf32>
    %c0_73 = arith.constant 0 : index
    %c0_74 = arith.constant 0 : index
    %142 = vector.load %arg15[%c0_73, %c0_74] : memref<1x32xf32, #tpu.memory_space<vmem>>, vector<1x32xf32>
    %143 = vector.broadcast %142 : vector<1x32xf32> to vector<8x32xf32>
    %144 = arith.addf %141, %143 : vector<8x32xf32>
    %145 = arith.addf %130, %144 : vector<8x32xf32>
    %c0_75 = arith.constant 0 : index
    %c0_76 = arith.constant 0 : index
    %146 = vector.load %arg16[%c0_75, %c0_76] : memref<1x32xf32, #tpu.memory_space<vmem>>, vector<1x32xf32>
    %c0_77 = arith.constant 0 : index
    %c0_78 = arith.constant 0 : index
    %147 = vector.load %arg17[%c0_77, %c0_78] : memref<1x32xf32, #tpu.memory_space<vmem>>, vector<1x32xf32>
    %cst_79 = arith.constant dense<0.000000e+00> : vector<8xf32>
    %148 = vector.multi_reduction <add>, %145, %cst_79 [1] : vector<8x32xf32> to vector<8xf32>
    %149 = vector.shape_cast %148 : vector<8xf32> to vector<8x1xf32>
    %cst_80 = arith.constant 3.200000e+01 : f32
    %150 = vector.broadcast %cst_80 : f32 to vector<8x1xf32>
    %151 = arith.divf %149, %150 : vector<8x1xf32>
    %152 = vector.broadcast %151 : vector<8x1xf32> to vector<8x32xf32>
    %153 = arith.subf %145, %152 : vector<8x32xf32>
    %154 = vector.broadcast %151 : vector<8x1xf32> to vector<8x32xf32>
    %155 = arith.subf %145, %154 : vector<8x32xf32>
    %156 = arith.mulf %153, %155 : vector<8x32xf32>
    %cst_81 = arith.constant dense<0.000000e+00> : vector<8xf32>
    %157 = vector.multi_reduction <add>, %156, %cst_81 [1] : vector<8x32xf32> to vector<8xf32>
    %158 = vector.shape_cast %157 : vector<8xf32> to vector<8x1xf32>
    %cst_82 = arith.constant 3.200000e+01 : f32
    %159 = vector.broadcast %cst_82 : f32 to vector<8x1xf32>
    %160 = arith.divf %158, %159 : vector<8x1xf32>
    %161 = vector.broadcast %151 : vector<8x1xf32> to vector<8x32xf32>
    %162 = arith.subf %145, %161 : vector<8x32xf32>
    %cst_83 = arith.constant 9.99999974E-6 : f32
    %163 = vector.broadcast %cst_83 : f32 to vector<8x1xf32>
    %164 = arith.addf %160, %163 : vector<8x1xf32>
    %165 = math.rsqrt %164 : vector<8x1xf32>
    %166 = vector.broadcast %165 : vector<8x1xf32> to vector<8x32xf32>
    %167 = arith.mulf %162, %166 : vector<8x32xf32>
    %168 = vector.broadcast %146 : vector<1x32xf32> to vector<8x32xf32>
    %169 = arith.mulf %167, %168 : vector<8x32xf32>
    %170 = vector.broadcast %147 : vector<1x32xf32> to vector<8x32xf32>
    %171 = arith.addf %169, %170 : vector<8x32xf32>
    %c0_84 = arith.constant 0 : index
    %c0_85 = arith.constant 0 : index
    %c0_86 = arith.constant 0 : index
    %172 = vector.load %arg18[%c0_84, %c0_85, %c0_86] : memref<1x8x32xf32, #tpu.memory_space<vmem>>, vector<1x8x32xf32>
    %173 = vector.shape_cast %172 : vector<1x8x32xf32> to vector<8x32xf32>
    %174 = vector.shape_cast %171 : vector<8x32xf32> to vector<1x8x32xf32>
    tpu.vector_store %arg18[%c0_84, %c0_85, %c0_86], %174 {strides = array<i32>} : memref<1x8x32xf32, #tpu.memory_space<vmem>>, vector<1x8x32xf32>,
    return
  }
  func.func @transform_0(%arg0: i32, %arg1: i32) -> (i32, i32, i32) {
    %c0_i32 = arith.constant 0 : i32
    %c0_i32_0 = arith.constant 0 : i32
    %c0_i32_1 = arith.constant 0 : i32
    return %arg0, %c0_i32, %c0_i32_0 : i32, i32, i32
  }
  func.func @transform_1(%arg0: i32, %arg1: i32) -> (i32, i32, i32) {
    %c0_i32 = arith.constant 0 : i32
    %c0_i32_0 = arith.constant 0 : i32
    %c0_i32_1 = arith.constant 0 : i32
    return %arg0, %c0_i32, %c0_i32_0 : i32, i32, i32
  }
  func.func @transform_2(%arg0: i32, %arg1: i32) -> (i32, i32) {
    %c0_i32 = arith.constant 0 : i32
    %c0_i32_0 = arith.constant 0 : i32
    %c0_i32_1 = arith.constant 0 : i32
    return %c0_i32, %c0_i32_0 : i32, i32
  }
  func.func @transform_3(%arg0: i32, %arg1: i32) -> (i32, i32) {
    %c0_i32 = arith.constant 0 : i32
    %c0_i32_0 = arith.constant 0 : i32
    %c0_i32_1 = arith.constant 0 : i32
    return %c0_i32, %c0_i32_0 : i32, i32
  }
  func.func @transform_4(%arg0: i32, %arg1: i32) -> (i32, i32) {
    %c0_i32 = arith.constant 0 : i32
    %c0_i32_0 = arith.constant 0 : i32
    %c0_i32_1 = arith.constant 0 : i32
    return %c0_i32, %c0_i32_0 : i32, i32
  }
  func.func @transform_5(%arg0: i32, %arg1: i32) -> (i32, i32) {
    %c0_i32 = arith.constant 0 : i32
    %c0_i32_0 = arith.constant 0 : i32
    %c0_i32_1 = arith.constant 0 : i32
    return %c0_i32, %c0_i32_0 : i32, i32
  }
  func.func @transform_6(%arg0: i32, %arg1: i32) -> (i32, i32) {
    %c0_i32 = arith.constant 0 : i32
    %c0_i32_0 = arith.constant 0 : i32
    %c0_i32_1 = arith.constant 0 : i32
    return %c0_i32, %c0_i32_0 : i32, i32
  }
  func.func @transform_7(%arg0: i32, %arg1: i32) -> (i32, i32) {
    %c0_i32 = arith.constant 0 : i32
    %c0_i32_0 = arith.constant 0 : i32
    %c0_i32_1 = arith.constant 0 : i32
    return %c0_i32, %c0_i32_0 : i32, i32
  }
  func.func @transform_8(%arg0: i32, %arg1: i32) -> (i32, i32) {
    %c0_i32 = arith.constant 0 : i32
    %c0_i32_0 = arith.constant 0 : i32
    %c0_i32_1 = arith.constant 0 : i32
    return %c0_i32, %c0_i32_0 : i32, i32
  }
  func.func @transform_9(%arg0: i32, %arg1: i32) -> (i32, i32) {
    %c0_i32 = arith.constant 0 : i32
    %c0_i32_0 = arith.constant 0 : i32
    %c0_i32_1 = arith.constant 0 : i32
    return %c0_i32, %c0_i32_0 : i32, i32
  }
  func.func @transform_10(%arg0: i32, %arg1: i32) -> (i32, i32) {
    %c0_i32 = arith.constant 0 : i32
    %c0_i32_0 = arith.constant 0 : i32
    %c0_i32_1 = arith.constant 0 : i32
    return %c0_i32, %c0_i32_0 : i32, i32
  }
  func.func @transform_11(%arg0: i32, %arg1: i32) -> (i32, i32) {
    %c0_i32 = arith.constant 0 : i32
    %c0_i32_0 = arith.constant 0 : i32
    %c0_i32_1 = arith.constant 0 : i32
    return %c0_i32, %c0_i32_0 : i32, i32
  }
  func.func @transform_12(%arg0: i32, %arg1: i32) -> (i32, i32) {
    %c0_i32 = arith.constant 0 : i32
    %c0_i32_0 = arith.constant 0 : i32
    %c0_i32_1 = arith.constant 0 : i32
    return %c0_i32, %c0_i32_0 : i32, i32
  }
  func.func @transform_13(%arg0: i32, %arg1: i32) -> (i32, i32) {
    %c0_i32 = arith.constant 0 : i32
    %c0_i32_0 = arith.constant 0 : i32
    %c0_i32_1 = arith.constant 0 : i32
    return %c0_i32, %c0_i32_0 : i32, i32
  }
  func.func @transform_14(%arg0: i32, %arg1: i32) -> (i32, i32) {
    %c0_i32 = arith.constant 0 : i32
    %c0_i32_0 = arith.constant 0 : i32
    %c0_i32_1 = arith.constant 0 : i32
    return %c0_i32, %c0_i32_0 : i32, i32
  }
  func.func @transform_15(%arg0: i32, %arg1: i32) -> (i32, i32) {
    %c0_i32 = arith.constant 0 : i32
    %c0_i32_0 = arith.constant 0 : i32
    %c0_i32_1 = arith.constant 0 : i32
    return %c0_i32, %c0_i32_0 : i32, i32
  }
  func.func @transform_16(%arg0: i32, %arg1: i32) -> (i32, i32, i32) {
    %c0_i32 = arith.constant 0 : i32
    %c0_i32_0 = arith.constant 0 : i32
    return %arg0, %arg1, %c0_i32 : i32, i32, i32
  }
}

module attributes {stable_mosaic.version = 11 : i64} {
  func.func @encoder_layer_kernel(%arg0: i32, %arg1: i32, %arg2: memref<1x8x32xf32, #tpu.memory_space<vmem>>, %arg3: memref<1x1x8xf32, #tpu.memory_space<vmem>>, %arg4: memref<32x32xbf16, #tpu.memory_space<vmem>>, %arg5: memref<1x32xf32, #tpu.memory_space<vmem>>, %arg6: memref<32x64xbf16, #tpu.memory_space<vmem>>, %arg7: memref<1x64xf32, #tpu.memory_space<vmem>>, %arg8: memref<32x32xbf16, #tpu.memory_space<vmem>>, %arg9: memref<1x32xf32, #tpu.memory_space<vmem>>, %arg10: memref<1x32xf32, #tpu.memory_space<vmem>>, %arg11: memref<1x32xf32, #tpu.memory_space<vmem>>, %arg12: memref<32x64xbf16, #tpu.memory_space<vmem>>, %arg13: memref<1x64xf32, #tpu.memory_space<vmem>>, %arg14: memref<64x32xbf16, #tpu.memory_space<vmem>>, %arg15: memref<1x32xf32, #tpu.memory_space<vmem>>, %arg16: memref<1x32xf32, #tpu.memory_space<vmem>>, %arg17: memref<1x32xf32, #tpu.memory_space<vmem>>, %arg18: memref<1x8x32xf32, #tpu.memory_space<vmem>>, %arg19: memref<8x32xbf16, #tpu.memory_space<vmem>>, %arg20: memref<8x32xbf16, #tpu.memory_space<vmem>>, %arg21: memref<8x32xf32, #tpu.memory_space<vmem>>) attributes {dimension_semantics = [#tpu.dimension_semantics<parallel>, #tpu.dimension_semantics<arbitrary>], iteration_bounds = array<i64: 2, 1>, scalar_prefetch = 0 : i64, scratch_operands = 3 : i64, tpu.core_type = #tpu.core_type<tc>, window_params = [{transform_indices = @transform_0, window_bounds = array<i64: 1, 8, 32>}, {transform_indices = @transform_1, window_bounds = array<i64: 1, 1, 8>}, {pipeline_mode = #tpu.pipeline_mode<synchronous>, transform_indices = @transform_2, window_bounds = array<i64: 32, 32>}, {pipeline_mode = #tpu.pipeline_mode<synchronous>, transform_indices = @transform_3, window_bounds = array<i64: 1, 32>}, {pipeline_mode = #tpu.pipeline_mode<synchronous>, transform_indices = @transform_4, window_bounds = array<i64: 32, 64>}, {pipeline_mode = #tpu.pipeline_mode<synchronous>, transform_indices = @transform_5, window_bounds = array<i64: 1, 64>}, {pipeline_mode = #tpu.pipeline_mode<synchronous>, transform_indices = @transform_6, window_bounds = array<i64: 32, 32>}, {pipeline_mode = #tpu.pipeline_mode<synchronous>, transform_indices = @transform_7, window_bounds = array<i64: 1, 32>}, {pipeline_mode = #tpu.pipeline_mode<synchronous>, transform_indices = @transform_8, window_bounds = array<i64: 1, 32>}, {pipeline_mode = #tpu.pipeline_mode<synchronous>, transform_indices = @transform_9, window_bounds = array<i64: 1, 32>}, {pipeline_mode = #tpu.pipeline_mode<synchronous>, transform_indices = @transform_10, window_bounds = array<i64: 32, 64>}, {pipeline_mode = #tpu.pipeline_mode<synchronous>, transform_indices = @transform_11, window_bounds = array<i64: 1, 64>}, {pipeline_mode = #tpu.pipeline_mode<synchronous>, transform_indices = @transform_12, window_bounds = array<i64: 64, 32>}, {pipeline_mode = #tpu.pipeline_mode<synchronous>, transform_indices = @transform_13, window_bounds = array<i64: 1, 32>}, {pipeline_mode = #tpu.pipeline_mode<synchronous>, transform_indices = @transform_14, window_bounds = array<i64: 1, 32>}, {pipeline_mode = #tpu.pipeline_mode<synchronous>, transform_indices = @transform_15, window_bounds = array<i64: 1, 32>}, {transform_indices = @transform_16, window_bounds = array<i64: 1, 8, 32>}]} {
    %c0 = arith.constant 0 : index
    %c0_0 = arith.constant 0 : index
    %c0_1 = arith.constant 0 : index
    %0 = vector.load %arg3[%c0, %c0_0, %c0_1] : memref<1x1x8xf32, #tpu.memory_space<vmem>>, vector<1x1x8xf32>
    %1 = vector.shape_cast %0 : vector<1x1x8xf32> to vector<1x8xf32>
    %cst = arith.constant 1.000000e+00 : f32
    %2 = vector.broadcast %cst : f32 to vector<1x8xf32>
    %3 = arith.subf %1, %2 : vector<1x8xf32>
    %cst_2 = arith.constant 1.000000e+09 : f32
    %4 = vector.broadcast %cst_2 : f32 to vector<1x8xf32>
    %5 = arith.mulf %3, %4 : vector<1x8xf32>
    %c0_i32 = arith.constant 0 : i32
    %6 = arith.cmpi eq, %arg1, %c0_i32 : i32
    %7 = arith.extui %6 : i1 to i32
    %c0_i32_3 = arith.constant 0 : i32
    %8 = arith.cmpi ne, %7, %c0_i32_3 : i32
    scf.if %8 {
      %c0_87 = arith.constant 0 : index
      %c0_88 = arith.constant 0 : index
      %c0_89 = arith.constant 0 : index
      %175 = vector.load %arg2[%c0_87, %c0_88, %c0_89] : memref<1x8x32xf32, #tpu.memory_space<vmem>>, vector<1x8x32xf32>
      %176 = vector.shape_cast %175 : vector<1x8x32xf32> to vector<8x32xf32>
      %177 = arith.truncf %176 : vector<8x32xf32> to vector<8x32xbf16>
      %c0_90 = arith.constant 0 : index
      %c0_91 = arith.constant 0 : index
      %178 = vector.load %arg6[%c0_90, %c0_91] : memref<32x64xbf16, #tpu.memory_space<vmem>>, vector<32x64xbf16>
      %cst_92 = arith.constant dense<0.000000e+00> : vector<8x64xf32>
      %179 = tpu.matmul %177, %178, %cst_92 {dimension_numbers = #tpu.dot_dimension_numbers<[1], [0], [0], [1], [0, 0, 1, 1], [], []>} : vector<8x32xbf16>, vector<32x64xbf16>, vector<8x64xf32> -> vector<8x64xf32>
      %c0_93 = arith.constant 0 : index
      %c0_94 = arith.constant 0 : index
      %180 = vector.load %arg7[%c0_93, %c0_94] : memref<1x64xf32, #tpu.memory_space<vmem>>, vector<1x64xf32>
      %181 = vector.broadcast %180 : vector<1x64xf32> to vector<8x64xf32>
      %182 = arith.addf %179, %181 : vector<8x64xf32>
      %183 = vector.extract_strided_slice %182 {offsets = [0, 0], sizes = [8, 32], strides = [1, 1]} : vector<8x64xf32> to vector<8x32xf32>
      %184 = arith.truncf %183 : vector<8x32xf32> to vector<8x32xbf16>
      %c0_95 = arith.constant 0 : index
      %c0_96 = arith.constant 0 : index
      %185 = vector.load %arg19[%c0_95, %c0_96] : memref<8x32xbf16, #tpu.memory_space<vmem>>, vector<8x32xbf16>
      tpu.vector_store %arg19[%c0_95, %c0_96], %184 {strides = array<i32>} : memref<8x32xbf16, #tpu.memory_space<vmem>>, vector<8x32xbf16>,
      %186 = vector.extract_strided_slice %182 {offsets = [0, 32], sizes = [8, 32], strides = [1, 1]} : vector<8x64xf32> to vector<8x32xf32>
      %187 = arith.truncf %186 : vector<8x32xf32> to vector<8x32xbf16>
      %c0_97 = arith.constant 0 : index
      %c0_98 = arith.constant 0 : index
      %188 = vector.load %arg20[%c0_97, %c0_98] : memref<8x32xbf16, #tpu.memory_space<vmem>>, vector<8x32xbf16>
      tpu.vector_store %arg20[%c0_97, %c0_98], %187 {strides = array<i32>} : memref<8x32xbf16, #tpu.memory_space<vmem>>, vector<8x32xbf16>,
    } else {
    }
    %c8_i32 = arith.constant 8 : i32
    %9 = arith.muli %arg1, %c8_i32 : i32
    %10 = tpu.assume_multiple %9, 8 : i32
    %c0_4 = arith.constant 0 : index
    %11 = arith.index_cast %10 : i32 to index
    %c0_5 = arith.constant 0 : index
    %12 = vector.load %arg2[%c0_4, %11, %c0_5] : memref<1x8x32xf32, #tpu.memory_space<vmem>>, vector<1x8x32xf32>
    %13 = vector.shape_cast %12 : vector<1x8x32xf32> to vector<8x32xf32>
    %14 = arith.truncf %13 : vector<8x32xf32> to vector<8x32xbf16>
    %c0_6 = arith.constant 0 : index
    %c0_7 = arith.constant 0 : index
    %15 = vector.load %arg4[%c0_6, %c0_7] : memref<32x32xbf16, #tpu.memory_space<vmem>>, vector<32x32xbf16>
    %cst_8 = arith.constant dense<0.000000e+00> : vector<8x32xf32>
    %16 = tpu.matmul %14, %15, %cst_8 {dimension_numbers = #tpu.dot_dimension_numbers<[1], [0], [0], [1], [0, 0, 1, 1], [], []>} : vector<8x32xbf16>, vector<32x32xbf16>, vector<8x32xf32> -> vector<8x32xf32>
    %c0_9 = arith.constant 0 : index
    %c0_10 = arith.constant 0 : index
    %17 = vector.load %arg5[%c0_9, %c0_10] : memref<1x32xf32, #tpu.memory_space<vmem>>, vector<1x32xf32>
    %18 = vector.broadcast %17 : vector<1x32xf32> to vector<8x32xf32>
    %19 = arith.addf %16, %18 : vector<8x32xf32>
    %20 = arith.truncf %19 : vector<8x32xf32> to vector<8x32xbf16>
    %21 = vector.extract_strided_slice %20 {offsets = [0, 0], sizes = [8, 8], strides = [1, 1]} : vector<8x32xbf16> to vector<8x8xbf16>
    %c0_11 = arith.constant 0 : index
    %c0_12 = arith.constant 0 : index
    %22 = vector.load %arg19[%c0_11, %c0_12] : memref<8x32xbf16, #tpu.memory_space<vmem>>, vector<8x8xbf16>
    %cst_13 = arith.constant dense<0.000000e+00> : vector<8x8xf32>
    %23 = tpu.matmul %21, %22, %cst_13 {dimension_numbers = #tpu.dot_dimension_numbers<[1], [1], [0], [0], [0, 0, 1, 0], [], []>} : vector<8x8xbf16>, vector<8x8xbf16>, vector<8x8xf32> -> vector<8x8xf32>
    %24 = vector.broadcast %5 : vector<1x8xf32> to vector<8x8xf32>
    %25 = arith.addf %23, %24 : vector<8x8xf32>
    %cst_14 = arith.constant dense<0xFF800000> : vector<8xf32>
    %26 = vector.multi_reduction <maximumf>, %25, %cst_14 [1] : vector<8x8xf32> to vector<8xf32>
    %27 = vector.shape_cast %26 : vector<8xf32> to vector<8x1xf32>
    %28 = vector.broadcast %27 : vector<8x1xf32> to vector<8x8xf32>
    %29 = arith.subf %25, %28 : vector<8x8xf32>
    %30 = math.exp %29 : vector<8x8xf32>
    %cst_15 = arith.constant dense<0.000000e+00> : vector<8xf32>
    %31 = vector.multi_reduction <add>, %30, %cst_15 [1] : vector<8x8xf32> to vector<8xf32>
    %32 = vector.shape_cast %31 : vector<8xf32> to vector<8x1xf32>
    %33 = arith.truncf %30 : vector<8x8xf32> to vector<8x8xbf16>
    %c0_16 = arith.constant 0 : index
    %c0_17 = arith.constant 0 : index
    %34 = vector.load %arg20[%c0_16, %c0_17] : memref<8x32xbf16, #tpu.memory_space<vmem>>, vector<8x8xbf16>
    %cst_18 = arith.constant dense<0.000000e+00> : vector<8x8xf32>
    %35 = tpu.matmul %33, %34, %cst_18 {dimension_numbers = #tpu.dot_dimension_numbers<[1], [0], [0], [1], [0, 0, 1, 1], [], []>} : vector<8x8xbf16>, vector<8x8xbf16>, vector<8x8xf32> -> vector<8x8xf32>
    %36 = tpu.reciprocal %32 {approx = true} : vector<8x1xf32> -> vector<8x1xf32>
    %37 = vector.broadcast %36 : vector<8x1xf32> to vector<8x8xf32>
    %38 = arith.mulf %35, %37 : vector<8x8xf32>
    %c0_19 = arith.constant 0 : index
    %c0_20 = arith.constant 0 : index
    %39 = vector.load %arg21[%c0_19, %c0_20] : memref<8x32xf32, #tpu.memory_space<vmem>>, vector<8x8xf32>
    tpu.vector_store %arg21[%c0_19, %c0_20], %38 {strides = array<i32>} : memref<8x32xf32, #tpu.memory_space<vmem>>, vector<8x8xf32>,
    %40 = vector.extract_strided_slice %20 {offsets = [0, 8], sizes = [8, 8], strides = [1, 1]} : vector<8x32xbf16> to vector<8x8xbf16>
    %c0_21 = arith.constant 0 : index
    %c8 = arith.constant 8 : index
    %41 = vector.load %arg19[%c0_21, %c8] : memref<8x32xbf16, #tpu.memory_space<vmem>>, vector<8x8xbf16>
    %cst_22 = arith.constant dense<0.000000e+00> : vector<8x8xf32>
    %42 = tpu.matmul %40, %41, %cst_22 {dimension_numbers = #tpu.dot_dimension_numbers<[1], [1], [0], [0], [0, 0, 1, 0], [], []>} : vector<8x8xbf16>, vector<8x8xbf16>, vector<8x8xf32> -> vector<8x8xf32>
    %43 = vector.broadcast %5 : vector<1x8xf32> to vector<8x8xf32>
    %44 = arith.addf %42, %43 : vector<8x8xf32>
    %cst_23 = arith.constant dense<0xFF800000> : vector<8xf32>
    %45 = vector.multi_reduction <maximumf>, %44, %cst_23 [1] : vector<8x8xf32> to vector<8xf32>
    %46 = vector.shape_cast %45 : vector<8xf32> to vector<8x1xf32>
    %47 = vector.broadcast %46 : vector<8x1xf32> to vector<8x8xf32>
    %48 = arith.subf %44, %47 : vector<8x8xf32>
    %49 = math.exp %48 : vector<8x8xf32>
    %cst_24 = arith.constant dense<0.000000e+00> : vector<8xf32>
    %50 = vector.multi_reduction <add>, %49, %cst_24 [1] : vector<8x8xf32> to vector<8xf32>
    %51 = vector.shape_cast %50 : vector<8xf32> to vector<8x1xf32>
    %52 = arith.truncf %49 : vector<8x8xf32> to vector<8x8xbf16>
    %c0_25 = arith.constant 0 : index
    %c8_26 = arith.constant 8 : index
    %53 = vector.load %arg20[%c0_25, %c8_26] : memref<8x32xbf16, #tpu.memory_space<vmem>>, vector<8x8xbf16>
    %cst_27 = arith.constant dense<0.000000e+00> : vector<8x8xf32>
    %54 = tpu.matmul %52, %53, %cst_27 {dimension_numbers = #tpu.dot_dimension_numbers<[1], [0], [0], [1], [0, 0, 1, 1], [], []>} : vector<8x8xbf16>, vector<8x8xbf16>, vector<8x8xf32> -> vector<8x8xf32>
    %55 = tpu.reciprocal %51 {approx = true} : vector<8x1xf32> -> vector<8x1xf32>
    %56 = vector.broadcast %55 : vector<8x1xf32> to vector<8x8xf32>
    %57 = arith.mulf %54, %56 : vector<8x8xf32>
    %c0_28 = arith.constant 0 : index
    %c8_29 = arith.constant 8 : index
    %58 = vector.load %arg21[%c0_28, %c8_29] : memref<8x32xf32, #tpu.memory_space<vmem>>, vector<8x8xf32>
    tpu.vector_store %arg21[%c0_28, %c8_29], %57 {strides = array<i32>} : memref<8x32xf32, #tpu.memory_space<vmem>>, vector<8x8xf32>,
    %59 = vector.extract_strided_slice %20 {offsets = [0, 16], sizes = [8, 8], strides = [1, 1]} : vector<8x32xbf16> to vector<8x8xbf16>
    %c0_30 = arith.constant 0 : index
    %c16 = arith.constant 16 : index
    %60 = vector.load %arg19[%c0_30, %c16] : memref<8x32xbf16, #tpu.memory_space<vmem>>, vector<8x8xbf16>
    %cst_31 = arith.constant dense<0.000000e+00> : vector<8x8xf32>
    %61 = tpu.matmul %59, %60, %cst_31 {dimension_numbers = #tpu.dot_dimension_numbers<[1], [1], [0], [0], [0, 0, 1, 0], [], []>} : vector<8x8xbf16>, vector<8x8xbf16>, vector<8x8xf32> -> vector<8x8xf32>
    %62 = vector.broadcast %5 : vector<1x8xf32> to vector<8x8xf32>
    %63 = arith.addf %61, %62 : vector<8x8xf32>
    %cst_32 = arith.constant dense<0xFF800000> : vector<8xf32>
    %64 = vector.multi_reduction <maximumf>, %63, %cst_32 [1] : vector<8x8xf32> to vector<8xf32>
    %65 = vector.shape_cast %64 : vector<8xf32> to vector<8x1xf32>
    %66 = vector.broadcast %65 : vector<8x1xf32> to vector<8x8xf32>
    %67 = arith.subf %63, %66 : vector<8x8xf32>
    %68 = math.exp %67 : vector<8x8xf32>
    %cst_33 = arith.constant dense<0.000000e+00> : vector<8xf32>
    %69 = vector.multi_reduction <add>, %68, %cst_33 [1] : vector<8x8xf32> to vector<8xf32>
    %70 = vector.shape_cast %69 : vector<8xf32> to vector<8x1xf32>
    %71 = arith.truncf %68 : vector<8x8xf32> to vector<8x8xbf16>
    %c0_34 = arith.constant 0 : index
    %c16_35 = arith.constant 16 : index
    %72 = vector.load %arg20[%c0_34, %c16_35] : memref<8x32xbf16, #tpu.memory_space<vmem>>, vector<8x8xbf16>
    %cst_36 = arith.constant dense<0.000000e+00> : vector<8x8xf32>
    %73 = tpu.matmul %71, %72, %cst_36 {dimension_numbers = #tpu.dot_dimension_numbers<[1], [0], [0], [1], [0, 0, 1, 1], [], []>} : vector<8x8xbf16>, vector<8x8xbf16>, vector<8x8xf32> -> vector<8x8xf32>
    %74 = tpu.reciprocal %70 {approx = true} : vector<8x1xf32> -> vector<8x1xf32>
    %75 = vector.broadcast %74 : vector<8x1xf32> to vector<8x8xf32>
    %76 = arith.mulf %73, %75 : vector<8x8xf32>
    %c0_37 = arith.constant 0 : index
    %c16_38 = arith.constant 16 : index
    %77 = vector.load %arg21[%c0_37, %c16_38] : memref<8x32xf32, #tpu.memory_space<vmem>>, vector<8x8xf32>
    tpu.vector_store %arg21[%c0_37, %c16_38], %76 {strides = array<i32>} : memref<8x32xf32, #tpu.memory_space<vmem>>, vector<8x8xf32>,
    %78 = vector.extract_strided_slice %20 {offsets = [0, 24], sizes = [8, 8], strides = [1, 1]} : vector<8x32xbf16> to vector<8x8xbf16>
    %c0_39 = arith.constant 0 : index
    %c24 = arith.constant 24 : index
    %79 = vector.load %arg19[%c0_39, %c24] : memref<8x32xbf16, #tpu.memory_space<vmem>>, vector<8x8xbf16>
    %cst_40 = arith.constant dense<0.000000e+00> : vector<8x8xf32>
    %80 = tpu.matmul %78, %79, %cst_40 {dimension_numbers = #tpu.dot_dimension_numbers<[1], [1], [0], [0], [0, 0, 1, 0], [], []>} : vector<8x8xbf16>, vector<8x8xbf16>, vector<8x8xf32> -> vector<8x8xf32>
    %81 = vector.broadcast %5 : vector<1x8xf32> to vector<8x8xf32>
    %82 = arith.addf %80, %81 : vector<8x8xf32>
    %cst_41 = arith.constant dense<0xFF800000> : vector<8xf32>
    %83 = vector.multi_reduction <maximumf>, %82, %cst_41 [1] : vector<8x8xf32> to vector<8xf32>
    %84 = vector.shape_cast %83 : vector<8xf32> to vector<8x1xf32>
    %85 = vector.broadcast %84 : vector<8x1xf32> to vector<8x8xf32>
    %86 = arith.subf %82, %85 : vector<8x8xf32>
    %87 = math.exp %86 : vector<8x8xf32>
    %cst_42 = arith.constant dense<0.000000e+00> : vector<8xf32>
    %88 = vector.multi_reduction <add>, %87, %cst_42 [1] : vector<8x8xf32> to vector<8xf32>
    %89 = vector.shape_cast %88 : vector<8xf32> to vector<8x1xf32>
    %90 = arith.truncf %87 : vector<8x8xf32> to vector<8x8xbf16>
    %c0_43 = arith.constant 0 : index
    %c24_44 = arith.constant 24 : index
    %91 = vector.load %arg20[%c0_43, %c24_44] : memref<8x32xbf16, #tpu.memory_space<vmem>>, vector<8x8xbf16>
    %cst_45 = arith.constant dense<0.000000e+00> : vector<8x8xf32>
    %92 = tpu.matmul %90, %91, %cst_45 {dimension_numbers = #tpu.dot_dimension_numbers<[1], [0], [0], [1], [0, 0, 1, 1], [], []>} : vector<8x8xbf16>, vector<8x8xbf16>, vector<8x8xf32> -> vector<8x8xf32>
    %93 = tpu.reciprocal %89 {approx = true} : vector<8x1xf32> -> vector<8x1xf32>
    %94 = vector.broadcast %93 : vector<8x1xf32> to vector<8x8xf32>
    %95 = arith.mulf %92, %94 : vector<8x8xf32>
    %c0_46 = arith.constant 0 : index
    %c24_47 = arith.constant 24 : index
    %96 = vector.load %arg21[%c0_46, %c24_47] : memref<8x32xf32, #tpu.memory_space<vmem>>, vector<8x8xf32>
    tpu.vector_store %arg21[%c0_46, %c24_47], %95 {strides = array<i32>} : memref<8x32xf32, #tpu.memory_space<vmem>>, vector<8x8xf32>,
    %c0_48 = arith.constant 0 : index
    %c0_49 = arith.constant 0 : index
    %97 = vector.load %arg21[%c0_48, %c0_49] : memref<8x32xf32, #tpu.memory_space<vmem>>, vector<8x32xf32>
    %98 = arith.truncf %97 : vector<8x32xf32> to vector<8x32xbf16>
    %c0_50 = arith.constant 0 : index
    %c0_51 = arith.constant 0 : index
    %99 = vector.load %arg8[%c0_50, %c0_51] : memref<32x32xbf16, #tpu.memory_space<vmem>>, vector<32x32xbf16>
    %cst_52 = arith.constant dense<0.000000e+00> : vector<8x32xf32>
    %100 = tpu.matmul %98, %99, %cst_52 {dimension_numbers = #tpu.dot_dimension_numbers<[1], [0], [0], [1], [0, 0, 1, 1], [], []>} : vector<8x32xbf16>, vector<32x32xbf16>, vector<8x32xf32> -> vector<8x32xf32>
    %c0_53 = arith.constant 0 : index
    %c0_54 = arith.constant 0 : index
    %101 = vector.load %arg9[%c0_53, %c0_54] : memref<1x32xf32, #tpu.memory_space<vmem>>, vector<1x32xf32>
    %102 = vector.broadcast %101 : vector<1x32xf32> to vector<8x32xf32>
    %103 = arith.addf %100, %102 : vector<8x32xf32>
    %104 = arith.addf %13, %103 : vector<8x32xf32>
    %c0_55 = arith.constant 0 : index
    %c0_56 = arith.constant 0 : index
    %105 = vector.load %arg10[%c0_55, %c0_56] : memref<1x32xf32, #tpu.memory_space<vmem>>, vector<1x32xf32>
    %c0_57 = arith.constant 0 : index
    %c0_58 = arith.constant 0 : index
    %106 = vector.load %arg11[%c0_57, %c0_58] : memref<1x32xf32, #tpu.memory_space<vmem>>, vector<1x32xf32>
    %cst_59 = arith.constant dense<0.000000e+00> : vector<8xf32>
    %107 = vector.multi_reduction <add>, %104, %cst_59 [1] : vector<8x32xf32> to vector<8xf32>
    %108 = vector.shape_cast %107 : vector<8xf32> to vector<8x1xf32>
    %cst_60 = arith.constant 3.200000e+01 : f32
    %109 = vector.broadcast %cst_60 : f32 to vector<8x1xf32>
    %110 = arith.divf %108, %109 : vector<8x1xf32>
    %111 = vector.broadcast %110 : vector<8x1xf32> to vector<8x32xf32>
    %112 = arith.subf %104, %111 : vector<8x32xf32>
    %113 = vector.broadcast %110 : vector<8x1xf32> to vector<8x32xf32>
    %114 = arith.subf %104, %113 : vector<8x32xf32>
    %115 = arith.mulf %112, %114 : vector<8x32xf32>
    %cst_61 = arith.constant dense<0.000000e+00> : vector<8xf32>
    %116 = vector.multi_reduction <add>, %115, %cst_61 [1] : vector<8x32xf32> to vector<8xf32>
    %117 = vector.shape_cast %116 : vector<8xf32> to vector<8x1xf32>
    %cst_62 = arith.constant 3.200000e+01 : f32
    %118 = vector.broadcast %cst_62 : f32 to vector<8x1xf32>
    %119 = arith.divf %117, %118 : vector<8x1xf32>
    %120 = vector.broadcast %110 : vector<8x1xf32> to vector<8x32xf32>
    %121 = arith.subf %104, %120 : vector<8x32xf32>
    %cst_63 = arith.constant 9.99999974E-6 : f32
    %122 = vector.broadcast %cst_63 : f32 to vector<8x1xf32>
    %123 = arith.addf %119, %122 : vector<8x1xf32>
    %124 = math.rsqrt %123 : vector<8x1xf32>
    %125 = vector.broadcast %124 : vector<8x1xf32> to vector<8x32xf32>
    %126 = arith.mulf %121, %125 : vector<8x32xf32>
    %127 = vector.broadcast %105 : vector<1x32xf32> to vector<8x32xf32>
    %128 = arith.mulf %126, %127 : vector<8x32xf32>
    %129 = vector.broadcast %106 : vector<1x32xf32> to vector<8x32xf32>
    %130 = arith.addf %128, %129 : vector<8x32xf32>
    %131 = arith.truncf %130 : vector<8x32xf32> to vector<8x32xbf16>
    %c0_64 = arith.constant 0 : index
    %c0_65 = arith.constant 0 : index
    %132 = vector.load %arg12[%c0_64, %c0_65] : memref<32x64xbf16, #tpu.memory_space<vmem>>, vector<32x64xbf16>
    %cst_66 = arith.constant dense<0.000000e+00> : vector<8x64xf32>
    %133 = tpu.matmul %131, %132, %cst_66 {dimension_numbers = #tpu.dot_dimension_numbers<[1], [0], [0], [1], [0, 0, 1, 1], [], []>} : vector<8x32xbf16>, vector<32x64xbf16>, vector<8x64xf32> -> vector<8x64xf32>
    %c0_67 = arith.constant 0 : index
    %c0_68 = arith.constant 0 : index
    %134 = vector.load %arg13[%c0_67, %c0_68] : memref<1x64xf32, #tpu.memory_space<vmem>>, vector<1x64xf32>
    %135 = vector.broadcast %134 : vector<1x64xf32> to vector<8x64xf32>
    %136 = arith.addf %133, %135 : vector<8x64xf32>
    %cst_69 = arith.constant 0.000000e+00 : f32
    %137 = vector.broadcast %cst_69 : f32 to vector<8x64xf32>
    %138 = arith.maximumf %136, %137 : vector<8x64xf32>
    %139 = arith.truncf %138 : vector<8x64xf32> to vector<8x64xbf16>
    %c0_70 = arith.constant 0 : index
    %c0_71 = arith.constant 0 : index
    %140 = vector.load %arg14[%c0_70, %c0_71] : memref<64x32xbf16, #tpu.memory_space<vmem>>, vector<64x32xbf16>
    %cst_72 = arith.constant dense<0.000000e+00> : vector<8x32xf32>
    %141 = tpu.matmul %139, %140, %cst_72 {dimension_numbers = #tpu.dot_dimension_numbers<[1], [0], [0], [1], [0, 0, 1, 1], [], []>} : vector<8x64xbf16>, vector<64x32xbf16>, vector<8x32xf32> -> vector<8x32xf32>
    %c0_73 = arith.constant 0 : index
    %c0_74 = arith.constant 0 : index
    %142 = vector.load %arg15[%c0_73, %c0_74] : memref<1x32xf32, #tpu.memory_space<vmem>>, vector<1x32xf32>
    %143 = vector.broadcast %142 : vector<1x32xf32> to vector<8x32xf32>
    %144 = arith.addf %141, %143 : vector<8x32xf32>
    %145 = arith.addf %130, %144 : vector<8x32xf32>
    %c0_75 = arith.constant 0 : index
    %c0_76 = arith.constant 0 : index
    %146 = vector.load %arg16[%c0_75, %c0_76] : memref<1x32xf32, #tpu.memory_space<vmem>>, vector<1x32xf32>
    %c0_77 = arith.constant 0 : index
    %c0_78 = arith.constant 0 : index
    %147 = vector.load %arg17[%c0_77, %c0_78] : memref<1x32xf32, #tpu.memory_space<vmem>>, vector<1x32xf32>
    %cst_79 = arith.constant dense<0.000000e+00> : vector<8xf32>
    %148 = vector.multi_reduction <add>, %145, %cst_79 [1] : vector<8x32xf32> to vector<8xf32>
    %149 = vector.shape_cast %148 : vector<8xf32> to vector<8x1xf32>
    %cst_80 = arith.constant 3.200000e+01 : f32
    %150 = vector.broadcast %cst_80 : f32 to vector<8x1xf32>
    %151 = arith.divf %149, %150 : vector<8x1xf32>
    %152 = vector.broadcast %151 : vector<8x1xf32> to vector<8x32xf32>
    %153 = arith.subf %145, %152 : vector<8x32xf32>
    %154 = vector.broadcast %151 : vector<8x1xf32> to vector<8x32xf32>
    %155 = arith.subf %145, %154 : vector<8x32xf32>
    %156 = arith.mulf %153, %155 : vector<8x32xf32>
    %cst_81 = arith.constant dense<0.000000e+00> : vector<8xf32>
    %157 = vector.multi_reduction <add>, %156, %cst_81 [1] : vector<8x32xf32> to vector<8xf32>
    %158 = vector.shape_cast %157 : vector<8xf32> to vector<8x1xf32>
    %cst_82 = arith.constant 3.200000e+01 : f32
    %159 = vector.broadcast %cst_82 : f32 to vector<8x1xf32>
    %160 = arith.divf %158, %159 : vector<8x1xf32>
    %161 = vector.broadcast %151 : vector<8x1xf32> to vector<8x32xf32>
    %162 = arith.subf %145, %161 : vector<8x32xf32>
    %cst_83 = arith.constant 9.99999974E-6 : f32
    %163 = vector.broadcast %cst_83 : f32 to vector<8x1xf32>
    %164 = arith.addf %160, %163 : vector<8x1xf32>
    %165 = math.rsqrt %164 : vector<8x1xf32>
    %166 = vector.broadcast %165 : vector<8x1xf32> to vector<8x32xf32>
    %167 = arith.mulf %162, %166 : vector<8x32xf32>
    %168 = vector.broadcast %146 : vector<1x32xf32> to vector<8x32xf32>
    %169 = arith.mulf %167, %168 : vector<8x32xf32>
    %170 = vector.broadcast %147 : vector<1x32xf32> to vector<8x32xf32>
    %171 = arith.addf %169, %170 : vector<8x32xf32>
    %c0_84 = arith.constant 0 : index
    %c0_85 = arith.constant 0 : index
    %c0_86 = arith.constant 0 : index
    %172 = vector.load %arg18[%c0_84, %c0_85, %c0_86] : memref<1x8x32xf32, #tpu.memory_space<vmem>>, vector<1x8x32xf32>
    %173 = vector.shape_cast %172 : vector<1x8x32xf32> to vector<8x32xf32>
    %174 = vector.shape_cast %171 : vector<8x32xf32> to vector<1x8x32xf32>
    tpu.vector_store %arg18[%c0_84, %c0_85, %c0_86], %174 {strides = array<i32>} : memref<1x8x32xf32, #tpu.memory_space<vmem>>, vector<1x8x32xf32>,
    return
  }
  func.func @transform_0(%arg0: i32, %arg1: i32) -> (i32, i32, i32) {
    %c0_i32 = arith.constant 0 : i32
    %c0_i32_0 = arith.constant 0 : i32
    %c0_i32_1 = arith.constant 0 : i32
    return %arg0, %c0_i32, %c0_i32_0 : i32, i32, i32
  }
  func.func @transform_1(%arg0: i32, %arg1: i32) -> (i32, i32, i32) {
    %c0_i32 = arith.constant 0 : i32
    %c0_i32_0 = arith.constant 0 : i32
    %c0_i32_1 = arith.constant 0 : i32
    return %arg0, %c0_i32, %c0_i32_0 : i32, i32, i32
  }
  func.func @transform_2(%arg0: i32, %arg1: i32) -> (i32, i32) {
    %c0_i32 = arith.constant 0 : i32
    %c0_i32_0 = arith.constant 0 : i32
    %c0_i32_1 = arith.constant 0 : i32
    return %c0_i32, %c0_i32_0 : i32, i32
  }
  func.func @transform_3(%arg0: i32, %arg1: i32) -> (i32, i32) {
    %c0_i32 = arith.constant 0 : i32
    %c0_i32_0 = arith.constant 0 : i32
    %c0_i32_1 = arith.constant 0 : i32
    return %c0_i32, %c0_i32_0 : i32, i32
  }
  func.func @transform_4(%arg0: i32, %arg1: i32) -> (i32, i32) {
    %c0_i32 = arith.constant 0 : i32
    %c0_i32_0 = arith.constant 0 : i32
    %c0_i32_1 = arith.constant 0 : i32
    return %c0_i32, %c0_i32_0 : i32, i32
  }
  func.func @transform_5(%arg0: i32, %arg1: i32) -> (i32, i32) {
    %c0_i32 = arith.constant 0 : i32
    %c0_i32_0 = arith.constant 0 : i32
    %c0_i32_1 = arith.constant 0 : i32
    return %c0_i32, %c0_i32_0 : i32, i32
  }
  func.func @transform_6(%arg0: i32, %arg1: i32) -> (i32, i32) {
    %c0_i32 = arith.constant 0 : i32
    %c0_i32_0 = arith.constant 0 : i32
    %c0_i32_1 = arith.constant 0 : i32
    return %c0_i32, %c0_i32_0 : i32, i32
  }
  func.func @transform_7(%arg0: i32, %arg1: i32) -> (i32, i32) {
    %c0_i32 = arith.constant 0 : i32
    %c0_i32_0 = arith.constant 0 : i32
    %c0_i32_1 = arith.constant 0 : i32
    return %c0_i32, %c0_i32_0 : i32, i32
  }
  func.func @transform_8(%arg0: i32, %arg1: i32) -> (i32, i32) {
    %c0_i32 = arith.constant 0 : i32
    %c0_i32_0 = arith.constant 0 : i32
    %c0_i32_1 = arith.constant 0 : i32
    return %c0_i32, %c0_i32_0 : i32, i32
  }
  func.func @transform_9(%arg0: i32, %arg1: i32) -> (i32, i32) {
    %c0_i32 = arith.constant 0 : i32
    %c0_i32_0 = arith.constant 0 : i32
    %c0_i32_1 = arith.constant 0 : i32
    return %c0_i32, %c0_i32_0 : i32, i32
  }
  func.func @transform_10(%arg0: i32, %arg1: i32) -> (i32, i32) {
    %c0_i32 = arith.constant 0 : i32
    %c0_i32_0 = arith.constant 0 : i32
    %c0_i32_1 = arith.constant 0 : i32
    return %c0_i32, %c0_i32_0 : i32, i32
  }
  func.func @transform_11(%arg0: i32, %arg1: i32) -> (i32, i32) {
    %c0_i32 = arith.constant 0 : i32
    %c0_i32_0 = arith.constant 0 : i32
    %c0_i32_1 = arith.constant 0 : i32
    return %c0_i32, %c0_i32_0 : i32, i32
  }
  func.func @transform_12(%arg0: i32, %arg1: i32) -> (i32, i32) {
    %c0_i32 = arith.constant 0 : i32
    %c0_i32_0 = arith.constant 0 : i32
    %c0_i32_1 = arith.constant 0 : i32
    return %c0_i32, %c0_i32_0 : i32, i32
  }
  func.func @transform_13(%arg0: i32, %arg1: i32) -> (i32, i32) {
    %c0_i32 = arith.constant 0 : i32
    %c0_i32_0 = arith.constant 0 : i32
    %c0_i32_1 = arith.constant 0 : i32
    return %c0_i32, %c0_i32_0 : i32, i32
  }
  func.func @transform_14(%arg0: i32, %arg1: i32) -> (i32, i32) {
    %c0_i32 = arith.constant 0 : i32
    %c0_i32_0 = arith.constant 0 : i32
    %c0_i32_1 = arith.constant 0 : i32
    return %c0_i32, %c0_i32_0 : i32, i32
  }
  func.func @transform_15(%arg0: i32, %arg1: i32) -> (i32, i32) {
    %c0_i32 = arith.constant 0 : i32
    %c0_i32_0 = arith.constant 0 : i32
    %c0_i32_1 = arith.constant 0 : i32
    return %c0_i32, %c0_i32_0 : i32, i32
  }
  func.func @transform_16(%arg0: i32, %arg1: i32) -> (i32, i32, i32) {
    %c0_i32 = arith.constant 0 : i32
    %c0_i32_0 = arith.constant 0 : i32
    return %arg0, %arg1, %c0_i32 : i32, i32, i32
  }
}

</mosaic_0001>

<bundles_post_ra>
// kernel: tpu_custom_call.1
= control target key start
LH: loop header
LB: loop body
LE: loop exit
PB: predicated region body
PF: predicated region fallthrough
CT: control target
= control target key end

     0   :  { %s3755_s0 = inlined_call_operand.hbm [shape: f32[2,8,32], index: 0, kind: input, shape index: {}]   ;;  %s3756_s1 = inlined_call_operand.hbm [shape: f32[2,1,8], index: 1, kind: input, shape index: {}]   ;;  %s3757_s2 = inlined_call_operand.hbm [shape: bf16[32,32], index: 2, kind: input, shape index: {}]   ;;  %s3758_s3 = inlined_call_operand.hbm [shape: f32[1,32], index: 3, kind: input, shape index: {}]   ;;  %s3759_s4 = inlined_call_operand.hbm [shape: bf16[32,64], index: 4, kind: input, shape index: {}]   ;;  %s3760_s5 = inlined_call_operand.hbm [shape: f32[1,64], index: 5, kind: input, shape index: {}]   ;;  %s3761_s6 = inlined_call_operand.hbm [shape: bf16[32,32], index: 6, kind: input, shape index: {}]   ;;  %s3762_s7 = inlined_call_operand.hbm [shape: f32[1,32], index: 7, kind: input, shape index: {}]   ;;  %s3763_s8 = inlined_call_operand.hbm [shape: f32[1,32], index: 8, kind: input, shape index: {}]   ;;  %s3764_s9 = inlined_call_operand.hbm [shape: f32[1,32], index: 9, kind: input, shape index: {}]   ;;  %s3765_s10 = inlined_call_operand.hbm [shape: bf16[32,64], index: 10, kind: input, shape index: {}]   ;;  %s3766_s11 = inlined_call_operand.hbm [shape: f32[1,64], index: 11, kind: input, shape index: {}]   ;;  %s3767_s12 = inlined_call_operand.hbm [shape: bf16[64,32], index: 12, kind: input, shape index: {}]   ;;  %s3768_s13 = inlined_call_operand.hbm [shape: f32[1,32], index: 13, kind: input, shape index: {}]   ;;  %s3769_s14 = inlined_call_operand.hbm [shape: f32[1,32], index: 14, kind: input, shape index: {}]   ;;  %s3770_s15 = inlined_call_operand.hbm [shape: f32[1,32], index: 15, kind: input, shape index: {}]   ;;  %s3771_s16 = inlined_call_operand.hbm [shape: f32[2,8,32], index: 16, kind: output, shape index: {}]  }
   0x1   :  { %3788 = sst [smem:[#allocation50_spill]] %s3755_s0 }
   0x2   :  { %3789 = sst [smem:[#allocation51_spill]] %s3756_s1 }
   0x3   :  { %3790 = sst [smem:[#allocation52_spill]] %s3757_s2 }
   0x4   :  { %3791 = sst [smem:[#allocation53_spill]] %s3758_s3 }
   0x5   :  { %3792 = sst [smem:[#allocation54_spill]] %s3759_s4 }
   0x6   :  { %3793 = sst [smem:[#allocation55_spill]] %s3760_s5 }
   0x7   :  { %3794 = sst [smem:[#allocation56_spill]] %s3761_s6 }
   0x8   :  { %3795 = sst [smem:[#allocation57_spill]] %s3762_s7 }
   0x9   :  { %3796 = sst [smem:[#allocation58_spill]] %s3763_s8 }
   0xa   :  { %3797 = sst [smem:[#allocation59_spill]] %s3771_s16 }
   0xb   :  { %21 = vsyncpa [#allocation6], 0 }
   0xc   :  { %23 = vsyncpa [#allocation6 + $0x1], 0 }
   0xd   :  { %24 = vsyncpa [#allocation9], 0 }
   0xe   :  { %26 = vsyncpa [#allocation9 + $0x1], 0 }
   0xf   :  { %27 = vsyncpa [#allocation12], 0 }
  0x10   :  { %28 = vsyncpa [#allocation15], 0 }
  0x11   :  { %29 = vsyncpa [#allocation18], 0 }
  0x12   :  { %30 = vsyncpa [#allocation21], 0 }
  0x13   :  { %31 = vsyncpa [#allocation24], 0 }
  0x14   :  { %32 = vsyncpa [#allocation27], 0 }
  0x15   :  { %33 = vsyncpa [#allocation30], 0 }
  0x16   :  { %34 = vsyncpa [#allocation7], 0 }
  0x17   :  { %36 = vsyncpa [#allocation7 + $0x1], 0  ;;  %s3100_s21 = smov 0   ;;  %s3102_s22 = smov 0  }
  0x18   :  { %s3104_s23 = smov 0   ;;  %s3106_s24 = smov 0  }
  0x19   :  { %s3108_s25 = smov 0   ;;  %s3110_s26 = smov 0  }
  0x1a LB: > { %3798 = sst [smem:[#allocation43_spill]] %s2965_s21  ;;  %s3131_s27 = sadd.s32 4294967295, %s2985_s26   ;;  %s2985_s26 = sphi %s3110_s26, %s42_s26   ;;  %s2981_s25 = sphi %s3108_s25, %s3863_s25   ;;  %s2977_s24 = sphi %s3106_s24, %s3861_s24   ;;  %s2973_s23 = sphi %s3104_s23, %s3862_s23   ;;  %s2969_s22 = sphi %s3102_s22, %s3860_s22   ;;  %s2965_s21 = sphi %s3100_s21, %s3859_s21  }
  0x1b   : > { %3799 = sst [smem:[#allocation44_spill]] %s2969_s22  ;;  %p1950_p0 = scmp.ge.s32.totalorder %s2985_s26, 1 }
  0x1c   : > { %3800 = sst [smem:[#allocation45_spill]] %s2973_s23  ;;  %p3782_p1 = scmp.eq.s32.totalorder %s3131_s27, 0 }
  0x1d   : > { %3801 = sst [smem:[#allocation46_spill]] %s2977_s24  ;;  %p433_p2 = scmp.lt.s32.totalorder %s2985_s26, 3 }
  0x1e   : > { %3802 = sst [smem:[#allocation47_spill]] %s2981_s25  ;;  %s2987_s29 = smov [#allocation10]  }
  0x1f   : > { %3803 = sst [smem:[#allocation48_spill]] %s3131_s27  ;;  %p3136_p3 = pnand %p1950_p0, %p433_p2 }
  0x20   : > { %s445_s30 = sshll.u32 %s2987_s29, 4  ;;  %s2988_s17 = smov [#allocation11]   ;;  %s3140_s30 = int_to_ptr.vmem [resolvable:$true] %s445_s30 }
  0x21   : > { %s3804_s28 = scalar_select %p3136_p3, 1, 0 }
  0x22   : > { %p2220_p4 = pneg %p3136_p3  ;;  %s459_s18 = sshll.u32 %s2988_s17, 4  ;;  %s3151_s18 = int_to_ptr.vmem [resolvable:$true] %s459_s18 }
  0x23   : > { %3805 = sst [smem:[#allocation49_spill]] %s3804_s28  ;;  %s2989_s19 = smov [#allocation14]  }
  0x24   : > { %p3147_p6 = pnand %p2220_p4, %p3782_p1  ;;  %s3153_s20 = sshll.u32 %s2989_s19, 4  ;;  %s484_s20 = int_to_ptr.vmem [resolvable:$true] %s3153_s20 }
  0x25   : > { %s3807_s2 = sld [smem:[#allocation52_spill]] }
  0x26   : > { %p3163_p8 = pneg %p3147_p6 }
  0x2b   : > { %s2415_s24 = scalar_lea.hbm %s3807_s2, 256 }
  0x2c   : > { %p2416_p7 = scmp.ne.s32.totalorder %s3807_s2, %s2415_s24  ;;  %p2422_p11 = scmp.lt.u32.totalorder %s2415_s24, %s3807_s2 }
  0x2e   : > { %p2418_p9 = pnand %p3163_p8, %p2416_p7 }
  0x30   : > { %p2419_p10 = pneg %p2418_p9 }
  0x32   : > { %p2424_p12 = pnand %p2422_p11, %p2419_p10 }
  0x34   : > { %2427 = shalt.err (!%p2424_p12)
}
  0x35   : > { %s2428_s1 = scalar_lea.vmem %s3140_s30, 256  ;;  %p2436_p4 = scmp.lt.s32.totalorder %s3140_s30, %s3140_s30 }
  0x36   : > { %p2429_p13 = scmp.ne.s32.totalorder %s3140_s30, %s2428_s1  ;;  %p2437_p5 = scmp.lt.s32.totalorder %s2428_s1, %s2428_s1 }
  0x38   : > { %p2431_p0 = pnand %p2429_p13, %p3163_p8  ;;  %p2438_p7 = por %p2437_p5, %p2436_p4 }
  0x3a   : > { %p2432_p2 = pneg %p2431_p0 }
  0x3c   : > { %p2439_p9 = pnand %p2438_p7, %p2432_p2 }
  0x3e   : > { %2442 = shalt.err (!%p2439_p9)
}
  0x3f   : > { %s3784_s16 = smov 64   ;;  %s2991_s24 = smov 4  }
  0x40   : > { %2223 = dma.hbm_to_vmem [thread:$0]  (!%p3147_p6), %s3807_s2, 256, %s3140_s30, [#allocation9], %s3784_s16, %s3784_s16, %s2991_s24  }
  0x41   : > { %s3809_s3 = sld [smem:[#allocation53_spill]] }
  0x47   : > { %s2443_s1 = scalar_lea.hbm %s3809_s3, 16 }
  0x48   : > { %p2444_p5 = scmp.ne.s32.totalorder %s3809_s3, %s2443_s1  ;;  %p2450_p12 = scmp.lt.u32.totalorder %s2443_s1, %s3809_s3 }
  0x4a   : > { %p2446_p10 = pnand %p2444_p5, %p3163_p8 }
  0x4c   : > { %p2447_p11 = pneg %p2446_p10 }
  0x4e   : > { %p2452_p13 = pnand %p2450_p12, %p2447_p11 }
  0x50   : > { %2455 = shalt.err (!%p2452_p13)
}
  0x51   : > { %s2456_s30 = scalar_lea.vmem %s3151_s18, 16  ;;  %s2463_s21 = scalar_lea.vmem %s3151_s18, 32 }
  0x52   : > { %p2457_p0 = scmp.ne.s32.totalorder %s3151_s18, %s2456_s30  ;;  %p2464_p7 = scmp.lt.s32.totalorder %s3151_s18, %s3151_s18 }
  0x53   : > { %p2465_p9 = scmp.lt.s32.totalorder %s2463_s21, %s2456_s30 }
  0x54   : > { %p2459_p2 = pnand %p2457_p0, %p3163_p8 }
  0x55   : > { %p2466_p5 = por %p2465_p9, %p2464_p7 }
  0x56   : > { %p2460_p4 = pneg %p2459_p2 }
  0x58   : > { %p2467_p10 = pnand %p2466_p5, %p2460_p4 }
  0x5a   : > { %2470 = shalt.err (!%p2467_p10)
}
  0x5b   : > { %2226 = dma.hbm_to_vmem [thread:$0]  (!%p3147_p6), %s3809_s3, 16, %s3151_s18, [#allocation12]  }
  0x5c   : > { %s3810_s5 = sld [smem:[#allocation55_spill]] }
  0x62   : > { %s2471_s29 = scalar_lea.hbm %s3810_s5, 16 }
  0x63   : > { %p2472_p11 = scmp.ne.s32.totalorder %s3810_s5, %s2471_s29  ;;  %p2478_p0 = scmp.lt.u32.totalorder %s2471_s29, %s3810_s5 }
  0x65   : > { %p2474_p12 = pnand %p2472_p11, %p3163_p8 }
  0x67   : > { %p2475_p13 = pneg %p2474_p12 }
  0x69   : > { %p2480_p2 = pnand %p2478_p0, %p2475_p13 }
  0x6b   : > { %2483 = shalt.err (!%p2480_p2)
}
  0x6c   : > { %s2484_s21 = scalar_lea.vmem %s484_s20, 16  ;;  %s2491_s18 = scalar_lea.vmem %s484_s20, 32 }
  0x6d   : > { %p2485_p4 = scmp.ne.s32.totalorder %s484_s20, %s2484_s21  ;;  %p2492_p5 = scmp.lt.s32.totalorder %s484_s20, %s484_s20 }
  0x6e   : > { %p2493_p10 = scmp.lt.s32.totalorder %s2491_s18, %s2484_s21 }
  0x6f   : > { %p2487_p7 = pnand %p2485_p4, %p3163_p8 }
  0x70   : > { %p2494_p1 = por %p2493_p10, %p2492_p5 }
  0x71   : > { %p2488_p9 = pneg %p2487_p7 }
  0x73   : > { %p2495_p3 = pnand %p2494_p1, %p2488_p9 }
  0x75   : > { %2498 = shalt.err (!%p2495_p3)
}
  0x76   : > { %2232 = dma.hbm_to_vmem [thread:$0]  (!%p3147_p6), %s3810_s5, 16, %s484_s20, [#allocation15]  }
  0x77   : > { %s2992_s25 = smov [#allocation17]   ;;  %s2993_s29 = smov [#allocation20]  }
  0x78   : > { %s507_s28 = sshll.u32 %s2992_s25, 4  ;;  %s529_s17 = sshll.u32 %s2993_s29, 4  ;;  %s508_s28 = int_to_ptr.vmem [resolvable:$true] %s507_s28  ;;  %s530_s17 = int_to_ptr.vmem [resolvable:$true] %s529_s17 }
  0x79   : > { %s3811_s7 = sld [smem:[#allocation57_spill]] }
  0x7f   : > { %s2499_s30 = scalar_lea.hbm %s3811_s7, 16 }
  0x80   : > { %p2500_p1 = scmp.ne.s32.totalorder %s3811_s7, %s2499_s30  ;;  %p2506_p12 = scmp.lt.u32.totalorder %s2499_s30, %s3811_s7 }
  0x82   : > { %p2502_p3 = pnand %p2500_p1, %p3163_p8 }
  0x84   : > { %p2503_p11 = pneg %p2502_p3 }
  0x86   : > { %p2508_p13 = pnand %p2506_p12, %p2503_p11 }
  0x88   : > { %2511 = shalt.err (!%p2508_p13)
}
  0x89   : > { %s2512_s20 = scalar_lea.vmem %s508_s28, 16  ;;  %s2519_s23 = scalar_lea.vmem %s508_s28, 32 }
  0x8a   : > { %p2513_p0 = scmp.ne.s32.totalorder %s508_s28, %s2512_s20  ;;  %p2520_p7 = scmp.lt.s32.totalorder %s508_s28, %s508_s28 }
  0x8b   : > { %p2521_p9 = scmp.lt.s32.totalorder %s2519_s23, %s2512_s20 }
  0x8c   : > { %p2515_p2 = pnand %p2513_p0, %p3163_p8 }
  0x8d   : > { %p2522_p5 = por %p2521_p9, %p2520_p7 }
  0x8e   : > { %p2516_p4 = pneg %p2515_p2 }
  0x90   : > { %p2523_p10 = pnand %p2522_p5, %p2516_p4 }
  0x92   : > { %2526 = shalt.err (!%p2523_p10)
}
  0x93   : > { %2238 = dma.hbm_to_vmem [thread:$0]  (!%p3147_p6), %s3811_s7, 16, %s508_s28, [#allocation18]  }
  0x94   : > { %s2527_s1 = scalar_lea.hbm %s3764_s9, 16 }
  0x95   : > { %p2528_p1 = scmp.ne.s32.totalorder %s3764_s9, %s2527_s1  ;;  %p2534_p12 = scmp.lt.u32.totalorder %s2527_s1, %s3764_s9 }
  0x97   : > { %p2530_p3 = pnand %p2528_p1, %p3163_p8 }
  0x99   : > { %p2531_p11 = pneg %p2530_p3 }
  0x9b   : > { %p2536_p13 = pnand %p2534_p12, %p2531_p11 }
  0x9d   : > { %2539 = shalt.err (!%p2536_p13)
}
  0x9e   : > { %s2540_s20 = scalar_lea.vmem %s530_s17, 16  ;;  %s2547_s28 = scalar_lea.vmem %s530_s17, 32 }
  0x9f   : > { %p2541_p0 = scmp.ne.s32.totalorder %s530_s17, %s2540_s20  ;;  %p2548_p7 = scmp.lt.s32.totalorder %s530_s17, %s530_s17 }
  0xa0   : > { %p2549_p9 = scmp.lt.s32.totalorder %s2547_s28, %s2540_s20 }
  0xa1   : > { %p2543_p2 = pnand %p2541_p0, %p3163_p8 }
  0xa2   : > { %p2550_p5 = por %p2549_p9, %p2548_p7 }
  0xa3   : > { %p2544_p4 = pneg %p2543_p2 }
  0xa5   : > { %p2551_p10 = pnand %p2550_p5, %p2544_p4 }
  0xa7   : > { %2554 = shalt.err (!%p2551_p10)
}
  0xa8   : > { %2244 = dma.hbm_to_vmem [thread:$0]  (!%p3147_p6), %s3764_s9, 16, %s530_s17, [#allocation21]  }
  0xa9   : > { %s2994_s29 = smov [#allocation23]   ;;  %s2995_s19 = smov [#allocation26]  }
  0xaa   : > { %s553_s16 = sshll.u32 %s2994_s29, 4  ;;  %s577_s1 = sshll.u32 %s2995_s19, 4  ;;  %s554_s16 = int_to_ptr.vmem [resolvable:$true] %s553_s16  ;;  %s578_s1 = int_to_ptr.vmem [resolvable:$true] %s577_s1 }
  0xab   : > { %s2555_s18 = scalar_lea.hbm %s3766_s11, 16 }
  0xac   : > { %p2556_p1 = scmp.ne.s32.totalorder %s3766_s11, %s2555_s18  ;;  %p2562_p12 = scmp.lt.u32.totalorder %s2555_s18, %s3766_s11 }
  0xae   : > { %p2558_p3 = pnand %p2556_p1, %p3163_p8 }
  0xb0   : > { %p2559_p11 = pneg %p2558_p3 }
  0xb2   : > { %p2564_p13 = pnand %p2562_p12, %p2559_p11 }
  0xb4   : > { %2567 = shalt.err (!%p2564_p13)
}
  0xb5   : > { %s2568_s17 = scalar_lea.vmem %s554_s16, 16  ;;  %s2575_s25 = scalar_lea.vmem %s554_s16, 32 }
  0xb6   : > { %p2569_p0 = scmp.ne.s32.totalorder %s554_s16, %s2568_s17  ;;  %p2576_p7 = scmp.lt.s32.totalorder %s554_s16, %s554_s16 }
  0xb7   : > { %p2577_p9 = scmp.lt.s32.totalorder %s2575_s25, %s2568_s17 }
  0xb8   : > { %p2571_p2 = pnand %p2569_p0, %p3163_p8 }
  0xb9   : > { %p2578_p5 = por %p2577_p9, %p2576_p7 }
  0xba   : > { %p2572_p4 = pneg %p2571_p2 }
  0xbc   : > { %p2579_p10 = pnand %p2578_p5, %p2572_p4 }
  0xbe   : > { %2582 = shalt.err (!%p2579_p10)
}
  0xbf   : > { %2250 = dma.hbm_to_vmem [thread:$0]  (!%p3147_p6), %s3766_s11, 16, %s554_s16, [#allocation24]  }
  0xc0   : > { %s2583_s18 = scalar_lea.hbm %s3768_s13, 16 }
  0xc1   : > { %p2584_p1 = scmp.ne.s32.totalorder %s3768_s13, %s2583_s18  ;;  %p2590_p12 = scmp.lt.u32.totalorder %s2583_s18, %s3768_s13 }
  0xc3   : > { %p2586_p3 = pnand %p2584_p1, %p3163_p8 }
  0xc5   : > { %p2587_p11 = pneg %p2586_p3 }
  0xc7   : > { %p2592_p13 = pnand %p2590_p12, %p2587_p11 }
  0xc9   : > { %2595 = shalt.err (!%p2592_p13)
}
  0xca   : > { %s2596_s17 = scalar_lea.vmem %s578_s1, 16  ;;  %s2603_s16 = scalar_lea.vmem %s578_s1, 32 }
  0xcb   : > { %p2597_p0 = scmp.ne.s32.totalorder %s578_s1, %s2596_s17  ;;  %p2604_p7 = scmp.lt.s32.totalorder %s578_s1, %s578_s1 }
  0xcc   : > { %p2605_p9 = scmp.lt.s32.totalorder %s2603_s16, %s2596_s17 }
  0xcd   : > { %p2599_p2 = pnand %p2597_p0, %p3163_p8 }
  0xce   : > { %p2606_p5 = por %p2605_p9, %p2604_p7 }
  0xcf   : > { %p2600_p4 = pneg %p2599_p2 }
  0xd1   : > { %p2607_p10 = pnand %p2606_p5, %p2600_p4 }
  0xd3   : > { %2610 = shalt.err (!%p2607_p10)
}
  0xd4   : > { %2256 = dma.hbm_to_vmem [thread:$0]  (!%p3147_p6), %s3768_s13, 16, %s578_s1, [#allocation27]  }
  0xd5   : > { %s2996_s19 = smov [#allocation13]   ;;  %s2997_s21 = smov [#allocation16]  }
  0xd6   : > { %s469_s30 = sshll.u32 %s2996_s19, 4  ;;  %s493_s18 = sshll.u32 %s2997_s21, 4  ;;  %s470_s30 = int_to_ptr.vmem [resolvable:$true] %s469_s30  ;;  %s494_s18 = int_to_ptr.vmem [resolvable:$true] %s493_s18 }
  0xd7   : > { %s3812_s4 = sld [smem:[#allocation54_spill]] }
  0xdd   : > { %s2611_s28 = scalar_lea.hbm %s3812_s4, 256 }
  0xde   : > { %p2612_p1 = scmp.ne.s32.totalorder %s3812_s4, %s2611_s28  ;;  %p2618_p12 = scmp.lt.u32.totalorder %s2611_s28, %s3812_s4 }
  0xe0   : > { %p2614_p3 = pnand %p2612_p1, %p3163_p8 }
  0xe2   : > { %p2615_p11 = pneg %p2614_p3 }
  0xe4   : > { %p2620_p13 = pnand %p2618_p12, %p2615_p11 }
  0xe6   : > { %2623 = shalt.err (!%p2620_p13)
}
  0xe7   : > { %s2624_s1 = scalar_lea.vmem %s470_s30, 256  ;;  %p2632_p7 = scmp.lt.s32.totalorder %s470_s30, %s470_s30 }
  0xe8   : > { %p2625_p0 = scmp.ne.s32.totalorder %s470_s30, %s2624_s1  ;;  %p2633_p9 = scmp.lt.s32.totalorder %s2624_s1, %s2624_s1 }
  0xea   : > { %p2627_p2 = pnand %p2625_p0, %p3163_p8  ;;  %p2634_p5 = por %p2633_p9, %p2632_p7 }
  0xec   : > { %p2628_p4 = pneg %p2627_p2 }
  0xee   : > { %p2635_p10 = pnand %p2634_p5, %p2628_p4 }
  0xf0   : > { %2638 = shalt.err (!%p2635_p10)
}
  0xf1   : > { %s3813_s29 = smov 64   ;;  %s3814_s6 = sld [smem:[#allocation56_spill]] }
  0xf2   : > { %2229 = dma.hbm_to_vmem [thread:$0]  (!%p3147_p6), %s3812_s4, 256, %s470_s30, [#allocation12], %s3813_s29, %s3813_s29, %s2991_s24  }
  0xf7   : > { %s2639_s28 = scalar_lea.hbm %s3814_s6, 256 }
  0xf8   : > { %p2640_p1 = scmp.ne.s32.totalorder %s3814_s6, %s2639_s28  ;;  %p2646_p12 = scmp.lt.u32.totalorder %s2639_s28, %s3814_s6 }
  0xfa   : > { %p2642_p3 = pnand %p2640_p1, %p3163_p8 }
  0xfc   : > { %p2643_p11 = pneg %p2642_p3 }
  0xfe   : > { %p2648_p13 = pnand %p2646_p12, %p2643_p11 }
 0x100   : > { %2651 = shalt.err (!%p2648_p13)
}
 0x101   : > { %s2652_s1 = scalar_lea.vmem %s494_s18, 256  ;;  %p2660_p7 = scmp.lt.s32.totalorder %s494_s18, %s494_s18 }
 0x102   : > { %p2653_p0 = scmp.ne.s32.totalorder %s494_s18, %s2652_s1  ;;  %p2661_p9 = scmp.lt.s32.totalorder %s2652_s1, %s2652_s1 }
 0x104   : > { %p2655_p2 = pnand %p2653_p0, %p3163_p8  ;;  %p2662_p5 = por %p2661_p9, %p2660_p7 }
 0x106   : > { %p2656_p4 = pneg %p2655_p2 }
 0x108   : > { %p2663_p10 = pnand %p2662_p5, %p2656_p4 }
 0x10a   : > { %2666 = shalt.err (!%p2663_p10)
}
 0x10b   : > { %2235 = dma.hbm_to_vmem [thread:$0]  (!%p3147_p6), %s3814_s6, 256, %s494_s18, [#allocation15], %s3813_s29, %s3813_s29, %s2991_s24  }
 0x10c   : > { %s2998_s21 = smov [#allocation19]   ;;  %s2999_s20 = smov [#allocation22]  }
 0x10d   : > { %s518_s22 = sshll.u32 %s2998_s21, 4  ;;  %s539_s28 = sshll.u32 %s2999_s20, 4  ;;  %s519_s22 = int_to_ptr.vmem [resolvable:$true] %s518_s22  ;;  %s540_s28 = int_to_ptr.vmem [resolvable:$true] %s539_s28 }
 0x10e   : > { %s3815_s8 = sld [smem:[#allocation58_spill]] }
 0x114   : > { %s2667_s16 = scalar_lea.hbm %s3815_s8, 16 }
 0x115   : > { %p2668_p1 = scmp.ne.s32.totalorder %s3815_s8, %s2667_s16  ;;  %p2674_p12 = scmp.lt.u32.totalorder %s2667_s16, %s3815_s8 }
 0x117   : > { %p2670_p3 = pnand %p2668_p1, %p3163_p8 }
 0x119   : > { %p2671_p11 = pneg %p2670_p3 }
 0x11b   : > { %p2676_p13 = pnand %p2674_p12, %p2671_p11 }
 0x11d   : > { %2679 = shalt.err (!%p2676_p13)
}
 0x11e   : > { %s2680_s18 = scalar_lea.vmem %s519_s22, 16  ;;  %s2687_s19 = scalar_lea.vmem %s519_s22, 32 }
 0x11f   : > { %p2681_p0 = scmp.ne.s32.totalorder %s519_s22, %s2680_s18  ;;  %p2688_p7 = scmp.lt.s32.totalorder %s519_s22, %s519_s22 }
 0x120   : > { %p2689_p9 = scmp.lt.s32.totalorder %s2687_s19, %s2680_s18 }
 0x121   : > { %p2683_p2 = pnand %p2681_p0, %p3163_p8 }
 0x122   : > { %p2690_p5 = por %p2689_p9, %p2688_p7 }
 0x123   : > { %p2684_p4 = pneg %p2683_p2 }
 0x125   : > { %p2691_p10 = pnand %p2690_p5, %p2684_p4 }
 0x127   : > { %2694 = shalt.err (!%p2691_p10)
}
 0x128   : > { %2241 = dma.hbm_to_vmem [thread:$0]  (!%p3147_p6), %s3815_s8, 16, %s519_s22, [#allocation18]  }
 0x129   : > { %s2695_s17 = scalar_lea.hbm %s3765_s10, 256 }
 0x12a   : > { %p2696_p1 = scmp.ne.s32.totalorder %s3765_s10, %s2695_s17  ;;  %p2702_p12 = scmp.lt.u32.totalorder %s2695_s17, %s3765_s10 }
 0x12c   : > { %p2698_p3 = pnand %p2696_p1, %p3163_p8 }
 0x12e   : > { %p2699_p11 = pneg %p2698_p3 }
 0x130   : > { %p2704_p13 = pnand %p2702_p12, %p2699_p11 }
 0x132   : > { %2707 = shalt.err (!%p2704_p13)
}
 0x133   : > { %s2708_s18 = scalar_lea.vmem %s540_s28, 256  ;;  %p2716_p7 = scmp.lt.s32.totalorder %s540_s28, %s540_s28 }
 0x134   : > { %p2709_p0 = scmp.ne.s32.totalorder %s540_s28, %s2708_s18  ;;  %p2717_p9 = scmp.lt.s32.totalorder %s2708_s18, %s2708_s18 }
 0x136   : > { %p2711_p2 = pnand %p2709_p0, %p3163_p8  ;;  %p2718_p5 = por %p2717_p9, %p2716_p7 }
 0x138   : > { %p2712_p4 = pneg %p2711_p2 }
 0x13a   : > { %p2719_p10 = pnand %p2718_p5, %p2712_p4 }
 0x13c   : > { %2722 = shalt.err (!%p2719_p10)
}
 0x13d   : > { %2247 = dma.hbm_to_vmem [thread:$0]  (!%p3147_p6), %s3765_s10, 256, %s540_s28, [#allocation21], %s3813_s29, %s3813_s29, %s2991_s24  }
 0x13e   : > { %s3000_s21 = smov [#allocation25]   ;;  %s3001_s2 = smov [#allocation28]  }
 0x13f   : > { %s563_s20 = sshll.u32 %s3000_s21, 4  ;;  %s588_s23 = sshll.u32 %s3001_s2, 4  ;;  %s564_s20 = int_to_ptr.vmem [resolvable:$true] %s563_s20  ;;  %s589_s23 = int_to_ptr.vmem [resolvable:$true] %s588_s23 }
 0x140   : > { %s2723_s25 = scalar_lea.hbm %s3767_s12, 512 }
 0x141   : > { %p2724_p1 = scmp.ne.s32.totalorder %s3767_s12, %s2723_s25  ;;  %p2730_p12 = scmp.lt.u32.totalorder %s2723_s25, %s3767_s12 }
 0x143   : > { %p2726_p3 = pnand %p2724_p1, %p3163_p8 }
 0x145   : > { %p2727_p11 = pneg %p2726_p3 }
 0x147   : > { %p2732_p13 = pnand %p2730_p12, %p2727_p11 }
 0x149   : > { %2735 = shalt.err (!%p2732_p13)
}
 0x14a   : > { %s2736_s28 = scalar_lea.vmem %s564_s20, 512  ;;  %p2744_p7 = scmp.lt.s32.totalorder %s564_s20, %s564_s20 }
 0x14b   : > { %p2737_p0 = scmp.ne.s32.totalorder %s564_s20, %s2736_s28  ;;  %p2745_p9 = scmp.lt.s32.totalorder %s2736_s28, %s2736_s28 }
 0x14d   : > { %p2739_p2 = pnand %p2737_p0, %p3163_p8  ;;  %p2746_p5 = por %p2745_p9, %p2744_p7 }
 0x14f   : > { %p2740_p4 = pneg %p2739_p2 }
 0x151   : > { %p2747_p10 = pnand %p2746_p5, %p2740_p4 }
 0x153   : > { %2750 = shalt.err (!%p2747_p10)
}
 0x154   : > { %2253 = dma.hbm_to_vmem [thread:$0]  (!%p3147_p6), %s3767_s12, 512, %s564_s20, [#allocation24], %s3813_s29, %s3813_s29, %s2991_s24  }
 0x155   : > { %s2751_s16 = scalar_lea.hbm %s3769_s14, 16 }
 0x156   : > { %p2752_p1 = scmp.ne.s32.totalorder %s3769_s14, %s2751_s16  ;;  %p2758_p12 = scmp.lt.u32.totalorder %s2751_s16, %s3769_s14 }
 0x158   : > { %p2754_p3 = pnand %p2752_p1, %p3163_p8 }
 0x15a   : > { %p2755_p11 = pneg %p2754_p3 }
 0x15c   : > { %p2760_p13 = pnand %p2758_p12, %p2755_p11 }
 0x15e   : > { %2763 = shalt.err (!%p2760_p13)
}
 0x15f   : > { %s2764_s22 = scalar_lea.vmem %s589_s23, 16  ;;  %s2771_s24 = scalar_lea.vmem %s589_s23, 32 }
 0x160   : > { %p2765_p0 = scmp.ne.s32.totalorder %s589_s23, %s2764_s22  ;;  %p2772_p7 = scmp.lt.s32.totalorder %s589_s23, %s589_s23 }
 0x161   : > { %p2773_p9 = scmp.lt.s32.totalorder %s2771_s24, %s2764_s22 }
 0x162   : > { %p2767_p2 = pnand %p2765_p0, %p3163_p8 }
 0x163   : > { %p2774_p5 = por %p2773_p9, %p2772_p7 }
 0x164   : > { %p2768_p4 = pneg %p2767_p2 }
 0x166   : > { %p2775_p10 = pnand %p2774_p5, %p2768_p4 }
 0x168   : > { %2778 = shalt.err (!%p2775_p10)
}
 0x169   : > { %2259 = dma.hbm_to_vmem [thread:$0]  (!%p3147_p6), %s3769_s14, 16, %s589_s23, [#allocation27]  }
 0x16a   : > { %s3002_s28 = smov [#allocation29]   ;;  %s2779_s17 = scalar_lea.hbm %s3770_s15, 16 }
 0x16b   : > { %s599_s19 = sshll.u32 %s3002_s28, 4  ;;  %p2780_p1 = scmp.ne.s32.totalorder %s3770_s15, %s2779_s17  ;;  %s600_s19 = int_to_ptr.vmem [resolvable:$true] %s599_s19 }
 0x16c   : > { %p2786_p12 = scmp.lt.u32.totalorder %s2779_s17, %s3770_s15 }
 0x16d   : > { %p2782_p3 = pnand %p2780_p1, %p3163_p8 }
 0x16f   : > { %p2783_p11 = pneg %p2782_p3 }
 0x171   : > { %p2788_p13 = pnand %p2786_p12, %p2783_p11 }
 0x173   : > { %2791 = shalt.err (!%p2788_p13)
}
 0x174   : > { %s2792_s23 = scalar_lea.vmem %s600_s19, 16  ;;  %s2799_s18 = scalar_lea.vmem %s600_s19, 32 }
 0x175   : > { %p2793_p0 = scmp.ne.s32.totalorder %s600_s19, %s2792_s23  ;;  %p2800_p7 = scmp.lt.s32.totalorder %s600_s19, %s600_s19 }
 0x176   : > { %p2801_p9 = scmp.lt.s32.totalorder %s2799_s18, %s2792_s23 }
 0x177   : > { %p2795_p2 = pnand %p2793_p0, %p3163_p8 }
 0x178   : > { %p2802_p5 = por %p2801_p9, %p2800_p7 }
 0x179   : > { %p2796_p4 = pneg %p2795_p2 }
 0x17b   : > { %p2803_p10 = pnand %p2802_p5, %p2796_p4 }
 0x17d   : > { %2806 = shalt.err (!%p2803_p10)
}
 0x17e   : > { %s3816_s29 = sld [smem:[#allocation47_spill]]  ;;  %s3817_s20 = sld [smem:[#allocation45_spill]] }
 0x17f   : > { %s3818_s28 = sld [smem:[#allocation44_spill]]  ;;  %s3819_s27 = sld [smem:[#allocation43_spill]] }
 0x180   : > { %s3820_s21 = sld [smem:[#allocation48_spill]]  ;;  %s1949_s2 = sadd.s32 4294967294, %s2985_s26  }
 0x181   : > { %2262 = dma.hbm_to_vmem [thread:$0]  (!%p3147_p6), %s3770_s15, 16, %s600_s19, [#allocation30]  }
 0x182   : > { %p69_p3 = scmp.eq.s32.totalorder %s2985_s26, 0  ;;  %p426_p7 = scmp.eq.s32.totalorder %s1949_s2, 1 }
 0x183   : > { %p2288_p5 = scmp.lt.s32.totalorder %s2985_s26, 2 }
 0x184   : > { %s54_s17 = sadd.s32 1, %s3816_s29  ;;  %s61_s0 = sadd.s32 1, %s3817_s20 }
 0x185   : > { %p56_p8 = scmp.ge.s32.totalorder %s54_s17, 2  ;;  %p68_p1 = scmp.ne.s32.totalorder %s3817_s20, %s3818_s28 }
 0x186   : > { %p74_p12 = scmp.ne.s32.totalorder %s3818_s28, %s3819_s27  ;;  %p420_p6 = scmp.eq.s32.totalorder %s3820_s21, 1 }
 0x187   : > { %s3865_s17 = smov (%p56_p8, %s54_s17), 0  ;;  %p3448_p11 = por %p69_p3, %p68_p1 }
 0x188   : > { %s58_s19 = ssub.s32 %s3816_s29, %s3865_s17  ;;  %p3822_p0 = scmp.eq.s32.totalorder %s3820_s21, 0 }
 0x189   : > { %p59_p13 = scmp.eq.s32.totalorder %s58_s19, 0  ;;  %p3463_p4 = por %p420_p6, %p68_p1 }
 0x18a   : > { %p3459_p2 = por %p3822_p0, %p74_p12  ;;  %p3470_p9 = por %p426_p7, %p74_p12 }
 0x18b   : > { %s3824_s1 = scalar_select %p3463_p4, 1, 0 }
 0x18c   : > { %s3823_s25 = scalar_select %p3459_p2, 1, 0 }
 0x18d   : > { %s3468_s30 = scalar_select %p59_p13, %s3817_s20, %s61_s0  }
 0x18e   : > { %s3825_s23 = scalar_select %p3470_p9, 1, 0 }
 0x18f   : > { %s3476_s18 = sand.u32 1, %s3817_s20   ;;  %s1967_s22 = sshll.u32 %s3816_s29, 7 }
 0x190   : > { %s1966_s24 = sshll.u32 %s3476_s18, 3  ;;  %s3826_s21 = sld [smem:[#allocation50_spill]] }
 0x191   : > { %s614_s2 = scalar_lea.vmem [#allocation5], %s1966_s24  ;;  %p3487_p10 = pnand %p2288_p5, %p3448_p11 }
 0x192   : > { %s621_s0 = sshll.u32 %s614_s2, 4  ;;  %s611_s5 = scalar_lea.sflag [#allocation6], %s3476_s18  ;;  %s3491_s0 = int_to_ptr.vmem [resolvable:$true] %s621_s0 }
 0x193   : > { %p2809_p1 = pneg %p3487_p10 }
 0x196   : > { %s3827_s19 = smov %s3826_s21  ;;  %s3483_s3 = scalar_lea.hbm %s3826_s21, %s1967_s22 }
 0x197   : > { %s2807_s28 = scalar_lea.hbm %s3483_s3, 128  ;;  %s2812_s24 = scalar_lea.hbm %s3827_s19, 256 }
 0x198   : > { %p2808_p8 = scmp.ne.s32.totalorder %s3483_s3, %s2807_s28  ;;  %p2813_p11 = scmp.lt.u32.totalorder %s3483_s3, %s3827_s19 }
 0x199   : > { %p2814_p6 = scmp.lt.u32.totalorder %s2812_s24, %s2807_s28  ;;  %p2816_p0 = scmp.lt.u32.totalorder %s2807_s28, %s3483_s3 }
 0x19a   : > { %p2810_p3 = pnand %p2809_p1, %p2808_p8 }
 0x19b   : > { %p2815_p13 = por %p2814_p6, %p2813_p11 }
 0x19c   : > { %p2811_p12 = pneg %p2810_p3 }
 0x19d   : > { %p2817_p7 = por %p2816_p0, %p2815_p13 }
 0x19f   : > { %p2818_p5 = pnand %p2817_p7, %p2811_p12 }
 0x1a1   : > { %2821 = shalt.err (!%p2818_p5)
}
 0x1a2   : > { %s2822_s2 = scalar_lea.vmem %s3491_s0, 128  ;;  %s3003_s22 = smov [#allocation5]  }
 0x1a3   : > { %p2823_p8 = scmp.ne.s32.totalorder %s3491_s0, %s2822_s2  ;;  %s2827_s16 = sshll.u32 %s3003_s22, 4  ;;  %s2828_s16 = int_to_ptr.vmem [resolvable:$false] %s2827_s16 }
 0x1a4   : > { %s2829_s27 = scalar_lea.vmem %s2828_s16, 256  ;;  %p2830_p4 = scmp.lt.s32.totalorder %s3491_s0, %s2828_s16 }
 0x1a5   : > { %p2825_p3 = pnand %p2823_p8, %p2809_p1  ;;  %p2831_p11 = scmp.lt.s32.totalorder %s2829_s27, %s2822_s2 }
 0x1a7   : > { %p2826_p9 = pneg %p2825_p3  ;;  %p2832_p6 = por %p2831_p11, %p2830_p4 }
 0x1a9   : > { %p2833_p13 = pnand %p2832_p6, %p2826_p9 }
 0x1ab   : > { %2836 = shalt.err (!%p2833_p13)
}
 0x1ac   : > { %2266 = dma.hbm_to_vmem [thread:$0]  (!%p3487_p10), %s3483_s3, 128, %s3491_s0, %s611_s5  }
 0x1ad   : > { %s1968_s28 = sshll.u32 %s3816_s29, 4  ;;  %s3829_s22 = sld [smem:[#allocation51_spill]] }
 0x1ae   : > { %s631_s2 = scalar_lea.vmem [#allocation8], %s3476_s18  ;;  %s3831_s27 = sand.u32 1, %s2985_s26  }
 0x1af   : > { %s638_s16 = sshll.u32 %s631_s2, 4  ;;  %s629_s7 = scalar_lea.sflag [#allocation9], %s3831_s27  ;;  %s639_s16 = int_to_ptr.vmem [resolvable:$true] %s638_s16 }
 0x1b3   : > { %s3830_s20 = smov %s3829_s22  ;;  %s3524_s6 = scalar_lea.hbm %s3829_s22, %s1968_s28 }
 0x1b4   : > { %s2837_s8 = scalar_lea.hbm %s3524_s6, 16  ;;  %s2842_s29 = scalar_lea.hbm %s3830_s20, 32 }
 0x1b5   : > { %p2838_p4 = scmp.ne.s32.totalorder %s3524_s6, %s2837_s8  ;;  %p2843_p0 = scmp.lt.u32.totalorder %s3524_s6, %s3830_s20 }
 0x1b6   : > { %p2844_p7 = scmp.lt.u32.totalorder %s2842_s29, %s2837_s8  ;;  %p2846_p8 = scmp.lt.u32.totalorder %s2837_s8, %s3524_s6 }
 0x1b7   : > { %p2840_p9 = pnand %p2838_p4, %p2809_p1 }
 0x1b8   : > { %p2845_p5 = por %p2844_p7, %p2843_p0 }
 0x1b9   : > { %p2841_p12 = pneg %p2840_p9 }
 0x1ba   : > { %p2847_p3 = por %p2846_p8, %p2845_p5 }
 0x1bc   : > { %p2848_p11 = pnand %p2847_p3, %p2841_p12 }
 0x1be   : > { %2851 = shalt.err (!%p2848_p11)
}
 0x1bf   : > { %s2852_s18 = scalar_lea.vmem %s639_s16, 16  ;;  %s3004_s24 = smov [#allocation8]  }
 0x1c0   : > { %p2853_p6 = scmp.ne.s32.totalorder %s639_s16, %s2852_s18  ;;  %s2857_s21 = sshll.u32 %s3004_s24, 4  ;;  %s2858_s21 = int_to_ptr.vmem [resolvable:$false] %s2857_s21 }
 0x1c1   : > { %s2859_s22 = scalar_lea.vmem %s2858_s21, 32  ;;  %p2860_p9 = scmp.lt.s32.totalorder %s639_s16, %s2858_s21 }
 0x1c2   : > { %p2855_p13 = pnand %p2853_p6, %p2809_p1  ;;  %p2861_p2 = scmp.lt.s32.totalorder %s2859_s22, %s2852_s18 }
 0x1c4   : > { %p2856_p4 = pneg %p2855_p13  ;;  %p2862_p0 = por %p2861_p2, %p2860_p9 }
 0x1c6   : > { %p2863_p7 = pnand %p2862_p0, %p2856_p4 }
 0x1c8   : > { %2866 = shalt.err (!%p2863_p7)
}
 0x1c9   : > { %2269 = dma.hbm_to_vmem [thread:$0]  (!%p3487_p10), %s3524_s6, 16, %s639_s16, %s629_s7  }
 0x1ca   : > { %s3832_s8 = sld [smem:[#allocation49_spill]] }
 0x1d0   : > { %p3833_p12 = scmp.ne.s32.totalorder %s3832_s8, 0 }
 0x1d1   : > { %s3834_s2 = sld [smem:[#allocation44_spill]] (!%p3833_p12)  ;;  %p3835_p2 = scmp.ne.s32.totalorder (!%p3833_p12), %s3823_s25, 0 }
 0x1d2   : > { %647 = sbr.rel (%p3833_p12) target bundleno = 2889 (0xb49), region = 84 }
 0x1d7   : > { %s3551_s27 = sand.u32 (!%p3833_p12), 1, %s3834_s2  }
 0x1d8   : > { %s1970_s3 = sshll.u32 (!%p3833_p12), %s3551_s27, 3  ;;  %s650_s5 = scalar_lea.sflag (!%p3833_p12), [#allocation6], %s3551_s27 }
 0x1d9   : > { %s3557_s29 = scalar_lea.vmem [#allocation5], %s1970_s3 }
 0x1da   : > { %2920 = dma.done.wait (%p3835_p2), %s650_s5, 128  }
 0x1db   : > { %2922 = vsyncadd (%p3835_p2), %s650_s5, 4294967168  ;;  %s3836_s4 = sld [smem:[#allocation48_spill]]  ;;  %s661_s16 = scalar_lea.vmem [#allocation8], %s3551_s27 }
 0x1e1   : > { %s658_s6 = sand.u32 1, %s3836_s4  }
 0x1e2   : > { %s659_s7 = scalar_lea.sflag [#allocation9], %s658_s6 }
 0x1e3   : > { %2924 = dma.done.wait (%p3835_p2), %s659_s7, 16  }
 0x1e4   : > { %2926 = vsyncadd (%p3835_p2), %s659_s7, 4294967280  ;;  %p3837_p10 = scmp.eq.s32.totalorder %s3836_s4, 0 }
 0x1e6   : > { %2928 = dma.done.wait (%p3837_p10), [#allocation9], 256   ;;  %p3838_p1 = pmov %p3837_p10 }
 0x1e8   : > { %2930 = vsyncadd (%p3838_p1), [#allocation9], 4294967040  ;;  %p3839_p5 = pmov %p3838_p1 }
 0x1e9   : > { %p3840_p8 = pmov %p3838_p1 }
 0x1ea   : > { %2932 = dma.done.wait (%p3839_p5), [#allocation12], 272  }
 0x1eb   : > { %2934 = vsyncadd (%p3840_p8), [#allocation12], 4294967024  ;;  %p3841_p3 = pmov %p3838_p1 }
 0x1ec   : > { %p3842_p11 = pmov %p3838_p1 }
 0x1ed   : > { %2936 = dma.done.wait (%p3841_p3), [#allocation15], 272  }
 0x1ee   : > { %2938 = vsyncadd (%p3842_p11), [#allocation15], 4294967024  ;;  %p3843_p6 = pmov %p3838_p1 }
 0x1ef   : > { %p3844_p13 = pmov %p3838_p1 }
 0x1f0   : > { %2940 = dma.done.wait (%p3843_p6), [#allocation18], 32  }
 0x1f1   : > { %2942 = vsyncadd (%p3844_p13), [#allocation18], 4294967264  ;;  %p3845_p4 = pmov %p3838_p1 }
 0x1f2   : > { %p3846_p9 = pmov %p3838_p1 }
 0x1f3   : > { %2944 = dma.done.wait (%p3845_p4), [#allocation21], 272  }
 0x1f4   : > { %2946 = vsyncadd (%p3846_p9), [#allocation21], 4294967024  ;;  %p3847_p0 = pmov %p3838_p1 }
 0x1f6   : > { %2948 = dma.done.wait (%p3847_p0), [#allocation24], 528   ;;  %p3848_p7 = pmov %p3847_p0 }
 0x1f7   : > { %p3849_p12 = pmov %p3847_p0 }
 0x1f8   : > { %2950 = vsyncadd (%p3848_p7), [#allocation24], 4294966768 }
 0x1f9   : > { %2952 = dma.done.wait (%p3849_p12), [#allocation27], 32   ;;  %p3850_p2 = pmov %p3847_p0 }
 0x1fa   : > { %p3851_p10 = pmov %p3847_p0 }
 0x1fb   : > { %2954 = vsyncadd (%p3850_p2), [#allocation27], 4294967264 }
 0x1fc   : > { %2956 = dma.done.wait (%p3851_p10), [#allocation30], 16   ;;  %p3852_p1 = pmov %p3847_p0 }
 0x1fd   : > { %v3005_v0 = vmov 0.0   ;;  %vm3006_vm0 = vmmov 0   ;;  %v2377_v1 = vld [vmem:[#allocation13] sm:$0xff]   ;;  %v2378_v2 = vld [vmem:[#allocation13 + $0x8] sm:$0xff]   ;;  %vm803_vm1 = vcmask 261120   ;;  %v2380_v6 = vld [vmem:[#allocation10 + $0x8] sm:$0xff]   ;;  %v931_v38 = vlaneseq }
 0x1fe   : > { %2958 = vsyncadd (%p3852_p1), [#allocation30], 4294967280  ;;  %2066 = vmatprep.subr.bf16.mxu1 %v3005_v0  ;;  %2070 = vmatprep.mubr.msk.bf16.mxu1 %vm3006_vm0, %v3005_v0  ;;  %v3608_v3 = vld [vmem:[%s3557_s29] sm:$0xff]  ;;  %v2379_v4 = vld [vmem:[#allocation10] sm:$0xff]   ;;  %vm848_vm2 = vcmask 257024   ;;  %vm936_vm3 = vcmask 64512  }
 0x1ff   : > { %2082 = vmatprep.subr.bf16.mxu0 %v3005_v0  ;;  %2084 = vmatprep.mubr.msk.bf16.mxu0 %vm3006_vm0, %v3005_v0  ;;  %v779_v5 = vpack.c.bf16 %v3608_v3, %v3608_v3  ;;  %v1987_v7 = vld [vmem:[#allocation14] ss:$0 sm:$0xff]  ;;  %v1992_v14 = vld [vmem:[#allocation11] ss:$0 sm:$0xff]  ;;  %s3007_s25 = smov 112   ;;  %s3008_s0 = smov 120  }
 0x200   : > { %2067 = vmatpush3.bf16.msra.mxu1 %v2377_v1  ;;  %s3009_s28 = smov 104   ;;  %s3010_s18 = smov 96   ;;  %vm997_vm4 = vcmask 1043456   ;;  %v771_v39 = vld [vmem:[%s661_s16] sm:$0x1]  ;;  %v932_v41 = vshrl.u32 %v931_v38, 7 }
 0x201   : > { %2068 = vmatprep.subr.bf16.mxu1 %v3005_v0  ;;  %v1986_v40 = vadd.f32 -1.0, %v771_v39  ;;  %s3011_s24 = smov 8   ;;  %s3012_s21 = smov 16   ;;  %vm1167_vm5 = vcmask 130112   ;;  %vm1291_vm6 = vcmask 195712   ;;  %vm1415_vm7 = vcmask 261312  }
 0x202   : > { %v933_v43 = vsub.s32 0, %v932_v41  ;;  %s3013_s22 = smov 24   ;;  %vm1624_vm8 = vcmask 523264   ;;  %s3853_s8 = sld [smem:[#allocation46_spill]] }
 0x203   : > { %v773_v42 = vmul.f32 1e+09, %v1986_v40  ;;  %s769_s5 = scalar_lea.vmem [#allocation31], %s1970_s3  ;;  %s3854_s7 = sld [smem:[#allocation59_spill]] }
 0x204   : > { %2069 = vmatpush3.bf16.msra.mxu1 %v2378_v2  ;;  %s1714_s29 = sshll.u32 %s769_s5, 4  ;;  %p3855_p8 = scmp.ne.s32.totalorder %s3824_s1, 0  ;;  %s3707_s29 = int_to_ptr.vmem [resolvable:$true] %s1714_s29 }
 0x205   : > { %2074 = vmatprep.subr.bf16.mxu1 %v3005_v0  ;;  %v934_v44 = vrot.slane %v773_v42, %v933_v43  ;;  %s3014_s3 = smov [#allocation31]  }
 0x207   : > { %2071 = vmatmul.mubr.msk.bf16.vlgmr.msra.gmra.mrb[0].mxu1 %vm803_vm1, %v779_v5 }
 0x208   : > { %2075 = vmatpush3.bf16.msra.mxu1 %v2379_v4  ;;  %2078 = vmatprep.mubr.msk.bf16.mxu1 %vm3006_vm0, %v3005_v0  ;;  %s2029_s2 = sshll.u32 %s3853_s8, 7 }
 0x209   : > { %2076 = vmatprep.subr.bf16.mxu1 %v3005_v0  ;;  %s3705_s16 = scalar_lea.hbm %s3854_s7, %s2029_s2 }
 0x20c   : > { %2077 = vmatpush3.bf16.msra.mxu1 %v2380_v6 }
 0x20d   : > { %2088 = vmatprep.subr.bf16.mxu1 %v3005_v0 }
 0x20f   : > { %2079 = vmatmul.mubr.msk.bf16.vlgmr.msra.gmra.mrb[4].mxu1 %vm803_vm1, %v779_v5 }
 0x210   : > { %2090 = vmatprep.mubr.msk.bf16.mxu1 %vm3006_vm0, %v3005_v0 }
 0x2da   : > { %v841_v8 = vpop.f32.mrb[0].mxu1 }
 0x2db   : > { %v842_v9 = vadd.f32 %v1987_v7, %v841_v8  ;;  %v2072_v10 = vpop.f32.mrb[1].mxu1 }
 0x2dc   : > { %v844_v11 = vpop.f32.mrb[2].mxu1 }
 0x2dd   : > { %v847_v12 = vpack.c.bf16 %v842_v9, %v842_v9  ;;  %v2073_v13 = vpop.f32.mrb[3].mxu1 }
 0x2df   : > { %849 = vst.msk [vmem:[#allocation2] sm:$0xf] %vm848_vm2, %v847_v12 }
 0x2e2   : > { %v922_v15 = vpop.f32.mrb[4].mxu1 }
 0x2e3   : > { %v2080_v16 = vpop.f32.mrb[5].mxu1  ;;  %v923_v17 = vadd.f32 %v1992_v14, %v922_v15 }
 0x2e4   : > { %v925_v18 = vpop.f32.mrb[6].mxu1 }
 0x2e5   : > { %v2081_v19 = vpop.f32.mrb[7].mxu1  ;;  %v928_v24 = vpack.c.bf16 %v923_v17, %v923_v17 }
 0x2e6   : > { %v929_v20 = vld [vmem:[#allocation2] sm:$0xf] }
 0x2e7   : > { %v2381_v21 = vld [vmem:[#allocation2] ss:$0 sps:$4 sm:$0xff]   ;;  %v941_v22 = vsel %vm936_vm3, %v929_v20, 0 }
 0x2e8   : > { %v2382_v23 = vld [vmem:[#allocation2] ss:$0 sps:$4 sm:$0xff]   ;;  %2083 = vmatpush3.bf16.xpose.msra.mxu0 %v941_v22  ;;  %1175 = vrot.lane.b32.xlu1 %v2381_v21, %s3007_s25 }
 0x2e9   : > { %1051 = vrot.lane.b32.xlu0 %v2382_v23, %s3008_s0  ;;  %2094 = vmatprep.subr.bf16.mxu0 %v3005_v0  ;;  %v2383_v25 = vld [vmem:[#allocation2] ss:$0 sps:$4 sm:$0xff]  }
 0x2ec   : > { %1170 = vrot.lane.b32.xlu1 %v928_v24, %s3007_s25 }
 0x2ed   : > { %1046 = vrot.lane.b32.xlu0 %v928_v24, %s3008_s0 }
 0x2ef   : > { %2085 = vmatmul.mubr.msk.bf16.vlgmr.msra.gmra.mrb[0].mxu0 %vm936_vm3, %v928_v24 }
 0x2f0   : > { %1294 = vrot.lane.b32.xlu1 %v928_v24, %s3009_s28  ;;  %2096 = vmatprep.mubr.msk.bf16.mxu0 %vm3006_vm0, %v3005_v0 }
 0x2f1   : > { %1299 = vrot.lane.b32.xlu0 %v2383_v25, %s3009_s28 }
 0x2f5   : > { %853 = vrot.lane.b32.xlu0 %v847_v12, %s3010_s18 }
 0x35a   : > { %v1176_v29 = vpop.permute.xlu1 %1175 }
 0x35b   : > { %v1052_v26 = vpop.permute.xlu0 %1051  ;;  %v1181_v31 = vsel %vm936_vm3, %v1176_v29, 0 }
 0x35c   : > { %v1057_v27 = vsel %vm936_vm3, %v1052_v26, 0 }
 0x35d   : > { %2095 = vmatpush3.bf16.xpose.msra.mxu0 %v1057_v27 }
 0x35e   : > { %2106 = vmatprep.subr.bf16.mxu0 %v3005_v0  ;;  %v1171_v33 = vpop.permute.xlu1 %1170 }
 0x35f   : > { %v1047_v28 = vpop.permute.xlu0 %1046 }
 0x362   : > { %v1295_v37 = vpop.permute.xlu1 %1294 }
 0x363   : > { %v1300_v30 = vpop.permute.xlu0 %1299 }
 0x364   : > { %2097 = vmatmul.mubr.msk.bf16.vlgmr.msra.gmra.mrb[4].mxu0 %vm936_vm3, %v1047_v28  ;;  %v1305_v34 = vsel %vm936_vm3, %v1300_v30, 0 }
 0x365   : > { %2107 = vmatpush3.bf16.xpose.msra.mxu0 %v1181_v31  ;;  %2108 = vmatprep.mubr.msk.bf16.mxu0 %vm3006_vm0, %v3005_v0 }
 0x366   : > { %2118 = vmatprep.subr.bf16.mxu0 %v3005_v0 }
 0x367   : > { %v854_v32 = vpop.permute.xlu0 %853 }
 0x368   : > { %856 = vst.msk [vmem:[#allocation3] sm:$0xf] %vm848_vm2, %v854_v32 }
 0x36c   : > { %2109 = vmatmul.mubr.msk.bf16.vlgmr.msra.gmra.mrb[8].mxu0 %vm936_vm3, %v1171_v33 }
 0x36d   : > { %2119 = vmatpush3.bf16.xpose.msra.mxu0 %v1305_v34  ;;  %2120 = vmatprep.mubr.msk.bf16.mxu0 %vm3006_vm0, %v3005_v0 }
 0x36e   : > { %2130 = vmatprep.subr.bf16.mxu0 %v3005_v0 }
 0x36f   : > { %v993_v35 = vld [vmem:[#allocation3] sm:$0xf] }
 0x370   : > { %v999_v36 = vsel %vm997_vm4, %v993_v35, 0  ;;  %v2384_v51 = vld [vmem:[#allocation3] ss:$0 sps:$4 sm:$0xff]  }
 0x371   : > { %2089 = vmatpush3.bf16.msra.mxu1 %v999_v36  ;;  %v2385_v11 = vld [vmem:[#allocation3] ss:$0 sps:$4 sm:$0xff]  }
 0x372   : > { %2100 = vmatprep.subr.bf16.mxu1 %v3005_v0  ;;  %v2386_v12 = vld [vmem:[#allocation3] ss:$0 sps:$4 sm:$0xff]  }
 0x374   : > { %2121 = vmatmul.mubr.msk.bf16.vlgmr.msra.gmra.mrb[12].mxu0 %vm936_vm3, %v1295_v37 }
 0x375   : > { %2134 = vmatprep.mubr.msk.bf16.mxu0 %vm3006_vm0, %v3005_v0 }
 0x3c2   : > { %v977_v45 = vpop.f32.mrb[0].mxu0 }
 0x3c3   : > { %v978_v46 = vadd.f32 %v977_v45, %v934_v44  ;;  %v2086_v47 = vpop.f32.mrb[1].mxu0 }
 0x3c4   : > { %v980_v48 = vpop.f32.mrb[2].mxu0 }
 0x3c5   : > { %v2087_v49 = vpop.f32.mrb[3].mxu0  ;;  %v983_v50 = vsel %vm936_vm3, %v978_v46, -inf }
 0x3c6   : > { %984 = vmax.xlane.f32.xlu1 %v983_v50 }
 0x3d7   : > { %1237 = vrot.lane.b32.xlu1 %v2384_v51, %s3007_s25  ;;  %s1700_s25 = scalar_lea.sflag [#allocation7], %s3551_s27 }
 0x437   : > { %v1093_v52 = vpop.f32.mrb[4].mxu0 }
 0x438   : > { %v1094_v53 = vadd.f32 %v1093_v52, %v934_v44  ;;  %v2098_v54 = vpop.f32.mrb[5].mxu0 }
 0x439   : > { %v1096_v55 = vpop.f32.mrb[6].mxu0 }
 0x43a   : > { %v2099_v56 = vpop.f32.mrb[7].mxu0  ;;  %v1099_v57 = vsel %vm936_vm3, %v1094_v53, -inf }
 0x43b   : > { %1100 = vmax.xlane.f32.xlu0 %v1099_v57  ;;  %v2387_v56 = vld [vmem:[#allocation16] sm:$0xff]  }
 0x43c   : > { %2131 = vmatpush3.bf16.msra.mxu0 %v2387_v56 }
 0x43d   : > { %2132 = vmatprep.subr.bf16.mxu0 %v3005_v0 }
 0x43f   : > { %v1217_v58 = vpop.f32.mrb[8].mxu0 }
 0x440   : > { %v1218_v59 = vadd.f32 %v1217_v58, %v934_v44  ;;  %v2110_v60 = vpop.f32.mrb[9].mxu0 }
 0x441   : > { %v1220_v61 = vpop.f32.mrb[10].mxu0 }
 0x442   : > { %v2111_v62 = vpop.f32.mrb[11].mxu0  ;;  %v1223_v63 = vsel %vm936_vm3, %v1218_v59, -inf }
 0x443   : > { %1224 = vmax.xlane.f32.xlu0 %v1223_v63 }
 0x447   : > { %v1341_v1 = vpop.f32.mrb[12].mxu0 }
 0x448   : > { %v1342_v2 = vadd.f32 %v1341_v1, %v934_v44  ;;  %v2122_v4 = vpop.f32.mrb[13].mxu0 }
 0x449   : > { %v1344_v5 = vpop.f32.mrb[14].mxu0 }
 0x44a   : > { %v2123_v6 = vpop.f32.mrb[15].mxu0  ;;  %v1347_v7 = vsel %vm936_vm3, %v1342_v2, -inf }
 0x44b   : > { %1348 = vmax.xlane.f32.xlu1 %v1347_v7 }
 0x453   : > { %v985_v8 = vpop.xlane.xlu1 %984 }
 0x454   : > { %v986_v9 = vsub.f32 %v978_v46, %v985_v8 }
 0x456   : > { %v987_v10 = vmul.f32 1.442695, %v986_v9 }
 0x457   : > { %v1238_v21 = vpop.permute.xlu1 %1237 }
 0x458   : > { %2395 = vpow2.f32 %v987_v10  ;;  %v1243_v29 = vsel %vm997_vm4, %v1238_v21, 0 }
 0x459   : > { %1113 = vrot.lane.b32.xlu0 %v2385_v11, %s3008_s0  ;;  %s2867_s0 = scalar_lea.vmem %s3707_s29, 128 }
 0x45a   : > { %p2868_p5 = scmp.ne.s32.totalorder %s3707_s29, %s2867_s0 }
 0x45c   : > { %1361 = vrot.lane.b32.xlu1 %v2386_v12, %s3009_s28  ;;  %p2869_p3 = pnand %p2868_p5, %p3855_p8  ;;  %s2871_s28 = sshll.u32 %s3014_s3, 4  ;;  %s2872_s28 = int_to_ptr.vmem [resolvable:$false] %s2871_s28 }
 0x45d   : > { %s2873_s18 = scalar_lea.vmem %s2872_s28, 256  ;;  %p2874_p6 = scmp.lt.s32.totalorder %s3707_s29, %s2872_s28 }
 0x45e   : > { %p2870_p11 = pneg %p2869_p3  ;;  %p2875_p13 = scmp.lt.s32.totalorder %s2873_s18, %s2867_s0 }
 0x460   : > { %p2876_p4 = por %p2875_p13, %p2874_p6 }
 0x462   : > { %v2396_v13 = vpop.eup %2395  ;;  %p2877_p9 = pnand %p2876_p4, %p2870_p11 }
 0x463   : > { %v992_v14 = vpack.c.bf16 %v2396_v13, %v2396_v13  ;;  %v989_v39 = vsel %vm936_vm3, %v2396_v13, 0.0  ;;  %v2010_v13 = vld [vmem:[#allocation17] ss:$0 sm:$0xff] }
 0x465   : > { %2091 = vmatmul.mubr.msk.bf16.vlgmr.msra.gmra.mrb[8].mxu1 %vm936_vm3, %v992_v14 }
 0x466   : > { %2102 = vmatprep.mubr.msk.bf16.mxu1 %vm3006_vm0, %v3005_v0 }
 0x4c8   : > { %v1101_v15 = vpop.xlane.xlu0 %1100 }
 0x4c9   : > { %v1102_v16 = vsub.f32 %v1094_v53, %v1101_v15 }
 0x4cb   : > { %v1103_v17 = vmul.f32 1.442695, %v1102_v16 }
 0x4cd   : > { %2397 = vpow2.f32 %v1103_v17 }
 0x4d0   : > { %v1225_v18 = vpop.xlane.xlu0 %1224 }
 0x4d1   : > { %v1226_v19 = vsub.f32 %v1218_v59, %v1225_v18  ;;  %v2388_v59 = vld [vmem:[#allocation16 + $0x8] sm:$0xff]  }
 0x4d2   : > { %2133 = vmatpush3.bf16.msra.mxu0 %v2388_v59 }
 0x4d3   : > { %v1227_v20 = vmul.f32 1.442695, %v1226_v19  ;;  %2146 = vmatprep.subr.bf16.mxu0 %v3005_v0 }
 0x4d4   : > { %v1114_v22 = vpop.permute.xlu0 %1113 }
 0x4d5   : > { %2399 = vpow2.f32 %v1227_v20  ;;  %v1119_v23 = vsel %vm997_vm4, %v1114_v22, 0 }
 0x4d6   : > { %2101 = vmatpush3.bf16.msra.mxu1 %v1119_v23 }
 0x4d7   : > { %v2398_v24 = vpop.eup %2397  ;;  %2112 = vmatprep.subr.bf16.mxu1 %v3005_v0 }
 0x4d8   : > { %v1349_v25 = vpop.xlane.xlu1 %1348  ;;  %v1105_v26 = vsel %vm936_vm3, %v2398_v24, 0.0  ;;  %v1108_v27 = vpack.c.bf16 %v2398_v24, %v2398_v24 }
 0x4d9   : > { %v1350_v28 = vsub.f32 %v1342_v2, %v1349_v25  ;;  %1106 = vadd.xlane.f32.xlu0 %v1105_v26  ;;  %v2389_v26 = vld [vmem:[#allocation22] sm:$0xff]  }
 0x4da   : > { %2103 = vmatmul.mubr.msk.bf16.vlgmr.msra.gmra.mrb[12].mxu1 %vm936_vm3, %v1108_v27  ;;  %v2390_v27 = vld [vmem:[#allocation22 + $0x8] sm:$0xff]  }
 0x4db   : > { %v1351_v30 = vmul.f32 1.442695, %v1350_v28  ;;  %2113 = vmatpush3.bf16.msra.mxu1 %v1243_v29  ;;  %2114 = vmatprep.mubr.msk.bf16.mxu1 %vm3006_vm0, %v3005_v0  ;;  %v2391_v28 = vld [vmem:[#allocation25] sm:$0xff]   ;;  %v2392_v29 = vld [vmem:[#allocation25 + $0x8] sm:$0xff]  }
 0x4dc   : > { %2124 = vmatprep.subr.bf16.mxu1 %v3005_v0  ;;  %v1362_v32 = vpop.permute.xlu1 %1361 }
 0x4dd   : > { %2401 = vpow2.f32 %v1351_v30  ;;  %v1367_v35 = vsel %vm997_vm4, %v1362_v32, 0 }
 0x4df   : > { %v2400_v31 = vpop.eup %2399 }
 0x4e0   : > { %v1229_v33 = vsel %vm936_vm3, %v2400_v31, 0.0  ;;  %v1232_v34 = vpack.c.bf16 %v2400_v31, %v2400_v31 }
 0x4e1   : > { %1230 = vadd.xlane.f32.xlu1 %v1229_v33  ;;  %v2014_v33 = vld [vmem:[#allocation19] ss:$0 sm:$0xff] }
 0x4e2   : > { %2115 = vmatmul.mubr.msk.bf16.vlgmr.msra.gmra.mrb[16].mxu1 %vm936_vm3, %v1232_v34 }
 0x4e3   : > { %2125 = vmatpush3.bf16.msra.mxu1 %v1367_v35  ;;  %2126 = vmatprep.mubr.msk.bf16.mxu1 %vm3006_vm0, %v3005_v0  ;;  %v2015_v35 = vld [vmem:[#allocation20] ss:$0 sm:$0xff] }
 0x4e4   : > { %2138 = vmatprep.subr.bf16.mxu1 %v3005_v0 }
 0x4e7   : > { %v2402_v36 = vpop.eup %2401 }
 0x4e8   : > { %v1353_v37 = vsel %vm936_vm3, %v2402_v36, 0.0  ;;  %v1356_v38 = vpack.c.bf16 %v2402_v36, %v2402_v36 }
 0x4e9   : > { %1354 = vadd.xlane.f32.xlu0 %v1353_v37 }
 0x4ea   : > { %2127 = vmatmul.mubr.msk.bf16.vlgmr.msra.gmra.mrb[20].mxu1 %vm936_vm3, %v1356_v38 }
 0x4eb   : > { %2142 = vmatprep.mubr.msk.bf16.mxu1 %vm3006_vm0, %v3005_v0  ;;  %2139 = vmatpush3.bf16.msra.mxu1 %v2389_v26 }
 0x4ec   : > { %2140 = vmatprep.subr.bf16.mxu1 %v3005_v0 }
 0x4ed   : > { %990 = vadd.xlane.f32.xlu0 %v989_v39  ;;  %v2393_v39 = vld [vmem:[#allocation25 + $0x10] sm:$0xff]  }
 0x4ef   : > { %2141 = vmatpush3.bf16.msra.mxu1 %v2390_v27 }
 0x538   : > { %v1035_v40 = vpop.f32.mrb[8].mxu1 }
 0x539   : > { %v2092_v41 = vpop.f32.mrb[9].mxu1 }
 0x53a   : > { %v1038_v42 = vpop.f32.mrb[10].mxu1  ;;  %v2016_v41 = vld [vmem:[#allocation23] ss:$0 sm:$0xff] }
 0x53b   : > { %v2093_v43 = vpop.f32.mrb[11].mxu1 }
 0x566   : > { %v1107_v44 = vpop.xlane.xlu0 %1106 }
 0x56e   : > { %v1231_v49 = vpop.xlane.xlu1 %1230 }
 0x576   : > { %v1355_v45 = vpop.xlane.xlu0 %1354 }
 0x57a   : > { %v991_v46 = vpop.xlane.xlu0 %990 }
 0x57b   : > { %2403 = vrcp.f32 %v991_v46 }
 0x57c   : > { %2405 = vrcp.f32 %v1107_v44 }
 0x57d   : > { %2407 = vrcp.f32 %v1231_v49  ;;  %v2020_v49 = vld [vmem:[#allocation26] ss:$0 sm:$0xff] }
 0x57e   : > { %2409 = vrcp.f32 %v1355_v45 }
 0x585   : > { %v2404_v47 = vpop.eup %2403 }
 0x586   : > { %v1042_v48 = vmul.f32 %v2404_v47, %v1035_v40  ;;  %v2406_v50 = vpop.eup %2405  ;;  %v2394_v40 = vld [vmem:[#allocation25 + $0x18] sm:$0xff]  }
 0x587   : > { %v2408_v57 = vpop.eup %2407 }
 0x588   : > { %1043 = vst.msk [vmem:[#allocation4] sm:$0xff] %vm936_vm3, %v1042_v48  ;;  %v2410_v1 = vpop.eup %2409 }
 0x5ad   : > { %v1155_v51 = vpop.f32.mrb[12].mxu1 }
 0x5ae   : > { %v1162_v52 = vmul.f32 %v2406_v50, %v1155_v51  ;;  %v2104_v53 = vpop.f32.mrb[13].mxu1 }
 0x5af   : > { %v1158_v54 = vpop.f32.mrb[14].mxu1 }
 0x5b0   : > { %1164 = vrot.lane.b32.xlu1 %v1162_v52, %s3011_s24  ;;  %v2105_v55 = vpop.f32.mrb[15].mxu1 }
 0x5b5   : > { %v1279_v58 = vpop.f32.mrb[16].mxu1 }
 0x5b6   : > { %v1286_v60 = vmul.f32 %v2408_v57, %v1279_v58  ;;  %v2116_v61 = vpop.f32.mrb[17].mxu1 }
 0x5b7   : > { %v1282_v62 = vpop.f32.mrb[18].mxu1 }
 0x5b8   : > { %v2117_v63 = vpop.f32.mrb[19].mxu1  ;;  %1288 = vrot.lane.b32.xlu0 %v1286_v60, %s3012_s21 }
 0x5bd   : > { %v1403_v2 = vpop.f32.mrb[20].mxu1 }
 0x5be   : > { %v1410_v4 = vmul.f32 %v2410_v1, %v1403_v2  ;;  %v2128_v5 = vpop.f32.mrb[21].mxu1  ;;  %v2026_v2 = vld [vmem:[#allocation28] ss:$0 sm:$0xff] }
 0x5bf   : > { %v1406_v6 = vpop.f32.mrb[22].mxu1  ;;  %v2027_v5 = vld [vmem:[#allocation29] ss:$0 sm:$0xff] }
 0x5c0   : > { %1412 = vrot.lane.b32.xlu1 %v1410_v4, %s3013_s22  ;;  %v2129_v7 = vpop.f32.mrb[23].mxu1 }
 0x622   : > { %v1165_v8 = vpop.permute.xlu1 %1164 }
 0x623   : > { %1168 = vst.msk [vmem:[#allocation4] sm:$0xff] %vm1167_vm5, %v1165_v8 }
 0x62a   : > { %v1289_v9 = vpop.permute.xlu0 %1288 }
 0x62b   : > { %1292 = vst.msk [vmem:[#allocation4] sm:$0xff] %vm1291_vm6, %v1289_v9 }
 0x632   : > { %v1413_v10 = vpop.permute.xlu1 %1412 }
 0x633   : > { %1416 = vst.msk [vmem:[#allocation4] sm:$0xff] %vm1415_vm7, %v1413_v10 }
 0x63a   : > { %v1417_v11 = vld [vmem:[#allocation4] sm:$0xff] }
 0x63b   : > { %v1418_v12 = vpack.c.bf16 %v1417_v11, %v1417_v11 }
 0x63d   : > { %2135 = vmatmul.mubr.msk.bf16.vlgmr.msra.gmra.mrb[16].mxu0 %vm803_vm1, %v1418_v12 }
 0x63e   : > { %2154 = vmatprep.mubr.msk.bf16.mxu0 %vm3006_vm0, %v3005_v0  ;;  %2147 = vmatpush3.bf16.msra.mxu0 %v2391_v28 }
 0x63f   : > { %2148 = vmatprep.subr.bf16.mxu0 %v3005_v0 }
 0x642   : > { %2149 = vmatpush3.bf16.msra.mxu0 %v2392_v29 }
 0x643   : > { %2150 = vmatprep.subr.bf16.mxu0 %v3005_v0 }
 0x646   : > { %2151 = vmatpush3.bf16.msra.mxu0 %v2393_v39 }
 0x647   : > { %2152 = vmatprep.subr.bf16.mxu0 %v3005_v0 }
 0x64a   : > { %2153 = vmatpush3.bf16.msra.mxu0 %v2394_v40 }
 0x710   : > { %v1479_v14 = vpop.f32.mrb[16].mxu0 }
 0x711   : > { %v1480_v15 = vadd.f32 %v2010_v13, %v1479_v14  ;;  %v2136_v16 = vpop.f32.mrb[17].mxu0 }
 0x712   : > { %v1482_v17 = vpop.f32.mrb[18].mxu0 }
 0x713   : > { %v2137_v18 = vpop.f32.mrb[19].mxu0  ;;  %v1485_v19 = vadd.f32 %v1480_v15, %v3608_v3 }
 0x715   : > { %v1488_v20 = vsel %vm803_vm1, %v1485_v19, 0.0 }
 0x716   : > { %1489 = vadd.xlane.f32.xlu1 %v1488_v20 }
 0x7a3   : > { %v1490_v21 = vpop.xlane.xlu1 %1489 }
 0x7a4   : > { %v1492_v22 = vmul.f32 0.03125, %v1490_v21 }
 0x7a6   : > { %v1493_v23 = vsub.f32 %v1485_v19, %v1492_v22 }
 0x7a8   : > { %v1494_v24 = vmul.f32 %v1493_v23, %v1493_v23 }
 0x7aa   : > { %v1495_v25 = vsel %vm803_vm1, %v1494_v24, 0.0 }
 0x7ab   : > { %1496 = vadd.xlane.f32.xlu0 %v1495_v25 }
 0x838   : > { %v1497_v3 = vpop.xlane.xlu0 %1496 }
 0x839   : > { %v1498_v30 = vmul.f32 0.03125, %v1497_v3 }
 0x83b   : > { %v1499_v31 = vadd.f32 1e-05, %v1498_v30 }
 0x83d   : > { %2411 = vrsqrt.f32 %v1499_v31 }
 0x847   : > { %v2412_v32 = vpop.eup %2411 }
 0x848   : > { %v1501_v34 = vmul.f32 %v2412_v32, %v1493_v23 }
 0x84a   : > { %v1508_v36 = vmul.f32 %v2014_v33, %v1501_v34 }
 0x84c   : > { %v1515_v37 = vadd.f32 %v2015_v35, %v1508_v36 }
 0x84e   : > { %v1516_v38 = vpack.c.bf16 %v1515_v37, %v1515_v37 }
 0x850   : > { %2143 = vmatmul.mubr.msk.bf16.vlgmr.msra.gmra.mrb[24].mxu1 %vm803_vm1, %v1516_v38 }
 0x923   : > { %v1577_v42 = vpop.f32.mrb[24].mxu1 }
 0x924   : > { %v1578_v43 = vadd.f32 %v2016_v41, %v1577_v42  ;;  %v2144_v44 = vpop.f32.mrb[25].mxu1 }
 0x925   : > { %v1580_v45 = vpop.f32.mrb[26].mxu1 }
 0x926   : > { %v1583_v46 = vmax.f32 %v1578_v43, 0.0  ;;  %v2145_v47 = vpop.f32.mrb[27].mxu1 }
 0x928   : > { %v1584_v48 = vpack.c.bf16 %v1583_v46, %v1583_v46 }
 0x92a   : > { %2155 = vmatmul.mubr.msk.bf16.vlgmr.msra.gmra.mrb[20].mxu0 %vm1624_vm8, %v1584_v48 }
 0x9fd   : > { %v1662_v50 = vpop.f32.mrb[20].mxu0 }
 0x9fe   : > { %v1663_v51 = vadd.f32 %v2020_v49, %v1662_v50  ;;  %v2156_v52 = vpop.f32.mrb[21].mxu0 }
 0x9ff   : > { %v1665_v53 = vpop.f32.mrb[22].mxu0 }
 0xa00   : > { %v2157_v54 = vpop.f32.mrb[23].mxu0  ;;  %v1668_v55 = vadd.f32 %v1663_v51, %v1515_v37 }
 0xa02   : > { %v1671_v0 = vsel %vm803_vm1, %v1668_v55, 0.0 }
 0xa03   : > { %1672 = vadd.xlane.f32.xlu0 %v1671_v0 }
 0xa90   : > { %v1673_v56 = vpop.xlane.xlu0 %1672 }
 0xa91   : > { %v1674_v57 = vmul.f32 0.03125, %v1673_v56 }
 0xa93   : > { %v1675_v58 = vsub.f32 %v1668_v55, %v1674_v57 }
 0xa95   : > { %v1676_v59 = vmul.f32 %v1675_v58, %v1675_v58 }
 0xa97   : > { %v1677_v60 = vsel %vm803_vm1, %v1676_v59, 0.0 }
 0xa98   : > { %1678 = vadd.xlane.f32.xlu1 %v1677_v60 }
 0xb25   : > { %v1679_v61 = vpop.xlane.xlu1 %1678 }
 0xb26   : > { %v1680_v62 = vmul.f32 0.03125, %v1679_v61 }
 0xb28   : > { %v1681_v63 = vadd.f32 1e-05, %v1680_v62 }
 0xb2a   : > { %2413 = vrsqrt.f32 %v1681_v63 }
 0xb34   : > { %v2414_v1 = vpop.eup %2413 }
 0xb35   : > { %v1683_v4 = vmul.f32 %v2414_v1, %v1675_v58 }
 0xb37   : > { %v1690_v6 = vmul.f32 %v2026_v2, %v1683_v4 }
 0xb39   : > { %v1697_v7 = vadd.f32 %v2027_v5, %v1690_v6 }
 0xb3b   : > { %1698 = vst.msk [vmem:[%s769_s5] sm:$0xff] %vm803_vm1, %v1697_v7 }
 0xb3c   : > { %2880 = shalt.err (!%p2877_p9)
}
 0xb3d   : > { %s2881_s27 = scalar_lea.hbm %s3705_s16, 128  ;;  %s2885_s22 = scalar_lea.hbm %s3854_s7, 256 }
 0xb3e   : > { %p2882_p0 = scmp.ne.s32.totalorder %s3705_s16, %s2881_s27  ;;  %p2886_p2 = scmp.lt.u32.totalorder %s3705_s16, %s3854_s7 }
 0xb3f   : > { %p2887_p10 = scmp.lt.u32.totalorder %s2885_s22, %s2881_s27  ;;  %p2889_p5 = scmp.lt.u32.totalorder %s2881_s27, %s3705_s16 }
 0xb40   : > { %p2883_p7 = pnand %p2882_p0, %p3855_p8 }
 0xb41   : > { %p2888_p1 = por %p2887_p10, %p2886_p2 }
 0xb42   : > { %p2884_p12 = pneg %p2883_p7 }
 0xb43   : > { %p2890_p3 = por %p2889_p5, %p2888_p1 }
 0xb45   : > { %p2891_p11 = pnand %p2890_p3, %p2884_p12 }
 0xb47   : > { %2894 = shalt.err (!%p2891_p11)
}
 0xb48   : > { %2218 = dma.vmem_to_hbm [thread:$0]  (%p3855_p8), %s3707_s29, 128, %s3705_s16, %s1700_s25  }
 0xb49 PF: > { %s3856_s5 = sld [smem:[#allocation43_spill]]  ;;  %p3857_p6 = scmp.ne.s32.totalorder %s3825_s23, 0 }
 0xb4a   : > { %p3858_p13 = scmp.ge.s32.totalorder %s2985_s26, 2 }
 0xb4c   : > { %p2271_p4 = pnand %p3858_p13, %p3857_p6 }
 0xb4f   : > { %s1726_s4 = sand.u32 1, %s3856_s5  }
 0xb50   : > { %s1727_s6 = scalar_lea.sflag [#allocation7], %s1726_s4 }
 0xb51   : > { %2960 = dma.done.wait (!%p2271_p4), %s1727_s6, 128  }
 0xb52   : > { %2962 = vsyncadd (!%p2271_p4), %s1727_s6, 4294967168  ;;  %s42_s26 = sadd.s32 1, %s2985_s26   ;;  %s3859_s21 = sld [smem:[#allocation44_spill]] }
 0xb53   : > { %p39_p9 = scmp.ge.s32.totalorder %s42_s26, 4   ;;  %s3860_s22 = sld [smem:[#allocation45_spill]] }
 0xb54   : > { %s3861_s24 = sld [smem:[#allocation47_spill]]  ;;  %s3862_s23 = smov %s3468_s30 }
 0xb55   : > { %s3863_s25 = smov %s3865_s17  ;;  %41 = sbr.rel (!%p39_p9) target bundleno = 26 (0x1a), region = 203 }
 0xb5c   :  { %1732 = vsyncpa [#allocation6], 1 }
 0xb5d   :  { %1734 = vsyncpa [#allocation6 + $0x1], 1 }
 0xb5e   :  { %1735 = vsyncpa [#allocation9], 1 }
 0xb5f   :  { %1737 = vsyncpa [#allocation9 + $0x1], 1 }
 0xb60   :  { %1738 = vsyncpa [#allocation12], 1 }
 0xb61   :  { %1739 = vsyncpa [#allocation15], 1 }
 0xb62   :  { %1740 = vsyncpa [#allocation18], 1 }
 0xb63   :  { %1741 = vsyncpa [#allocation21], 1 }
 0xb64   :  { %1742 = vsyncpa [#allocation24], 1 }
 0xb65   :  { %1743 = vsyncpa [#allocation27], 1 }
 0xb66   :  { %1744 = vsyncpa [#allocation30], 1 }
 0xb67   :  { %1745 = vsyncpa [#allocation7], 1 }
 0xb68   :  { %1747 = vsyncpa [#allocation7 + $0x1], 1 }

// kernel: tpu_custom_call.1
= control target key start
LH: loop header
LB: loop body
LE: loop exit
PB: predicated region body
PF: predicated region fallthrough
CT: control target
= control target key end

     0   :  { %s3755_s0 = inlined_call_operand.hbm [shape: f32[2,8,32], index: 0, kind: input, shape index: {}]   ;;  %s3756_s1 = inlined_call_operand.hbm [shape: f32[2,1,8], index: 1, kind: input, shape index: {}]   ;;  %s3757_s2 = inlined_call_operand.hbm [shape: bf16[32,32], index: 2, kind: input, shape index: {}]   ;;  %s3758_s3 = inlined_call_operand.hbm [shape: f32[1,32], index: 3, kind: input, shape index: {}]   ;;  %s3759_s4 = inlined_call_operand.hbm [shape: bf16[32,64], index: 4, kind: input, shape index: {}]   ;;  %s3760_s5 = inlined_call_operand.hbm [shape: f32[1,64], index: 5, kind: input, shape index: {}]   ;;  %s3761_s6 = inlined_call_operand.hbm [shape: bf16[32,32], index: 6, kind: input, shape index: {}]   ;;  %s3762_s7 = inlined_call_operand.hbm [shape: f32[1,32], index: 7, kind: input, shape index: {}]   ;;  %s3763_s8 = inlined_call_operand.hbm [shape: f32[1,32], index: 8, kind: input, shape index: {}]   ;;  %s3764_s9 = inlined_call_operand.hbm [shape: f32[1,32], index: 9, kind: input, shape index: {}]   ;;  %s3765_s10 = inlined_call_operand.hbm [shape: bf16[32,64], index: 10, kind: input, shape index: {}]   ;;  %s3766_s11 = inlined_call_operand.hbm [shape: f32[1,64], index: 11, kind: input, shape index: {}]   ;;  %s3767_s12 = inlined_call_operand.hbm [shape: bf16[64,32], index: 12, kind: input, shape index: {}]   ;;  %s3768_s13 = inlined_call_operand.hbm [shape: f32[1,32], index: 13, kind: input, shape index: {}]   ;;  %s3769_s14 = inlined_call_operand.hbm [shape: f32[1,32], index: 14, kind: input, shape index: {}]   ;;  %s3770_s15 = inlined_call_operand.hbm [shape: f32[1,32], index: 15, kind: input, shape index: {}]   ;;  %s3771_s16 = inlined_call_operand.hbm [shape: f32[2,8,32], index: 16, kind: output, shape index: {}]  }
   0x1   :  { %3788 = sst [smem:[#allocation50_spill]] %s3755_s0 }
   0x2   :  { %3789 = sst [smem:[#allocation51_spill]] %s3756_s1 }
   0x3   :  { %3790 = sst [smem:[#allocation52_spill]] %s3757_s2 }
   0x4   :  { %3791 = sst [smem:[#allocation53_spill]] %s3758_s3 }
   0x5   :  { %3792 = sst [smem:[#allocation54_spill]] %s3759_s4 }
   0x6   :  { %3793 = sst [smem:[#allocation55_spill]] %s3760_s5 }
   0x7   :  { %3794 = sst [smem:[#allocation56_spill]] %s3761_s6 }
   0x8   :  { %3795 = sst [smem:[#allocation57_spill]] %s3762_s7 }
   0x9   :  { %3796 = sst [smem:[#allocation58_spill]] %s3763_s8 }
   0xa   :  { %3797 = sst [smem:[#allocation59_spill]] %s3771_s16 }
   0xb   :  { %21 = vsyncpa [#allocation6], 0 }
   0xc   :  { %23 = vsyncpa [#allocation6 + $0x1], 0 }
   0xd   :  { %24 = vsyncpa [#allocation9], 0 }
   0xe   :  { %26 = vsyncpa [#allocation9 + $0x1], 0 }
   0xf   :  { %27 = vsyncpa [#allocation12], 0 }
  0x10   :  { %28 = vsyncpa [#allocation15], 0 }
  0x11   :  { %29 = vsyncpa [#allocation18], 0 }
  0x12   :  { %30 = vsyncpa [#allocation21], 0 }
  0x13   :  { %31 = vsyncpa [#allocation24], 0 }
  0x14   :  { %32 = vsyncpa [#allocation27], 0 }
  0x15   :  { %33 = vsyncpa [#allocation30], 0 }
  0x16   :  { %34 = vsyncpa [#allocation7], 0 }
  0x17   :  { %36 = vsyncpa [#allocation7 + $0x1], 0  ;;  %s3100_s21 = smov 0   ;;  %s3102_s22 = smov 0  }
  0x18   :  { %s3104_s23 = smov 0   ;;  %s3106_s24 = smov 0  }
  0x19   :  { %s3108_s25 = smov 0   ;;  %s3110_s26 = smov 0  }
  0x1a LB: > { %3798 = sst [smem:[#allocation43_spill]] %s2965_s21  ;;  %s3131_s27 = sadd.s32 4294967295, %s2985_s26   ;;  %s2985_s26 = sphi %s3110_s26, %s42_s26   ;;  %s2981_s25 = sphi %s3108_s25, %s3863_s25   ;;  %s2977_s24 = sphi %s3106_s24, %s3861_s24   ;;  %s2973_s23 = sphi %s3104_s23, %s3862_s23   ;;  %s2969_s22 = sphi %s3102_s22, %s3860_s22   ;;  %s2965_s21 = sphi %s3100_s21, %s3859_s21  }
  0x1b   : > { %3799 = sst [smem:[#allocation44_spill]] %s2969_s22  ;;  %p1950_p0 = scmp.ge.s32.totalorder %s2985_s26, 1 }
  0x1c   : > { %3800 = sst [smem:[#allocation45_spill]] %s2973_s23  ;;  %p3782_p1 = scmp.eq.s32.totalorder %s3131_s27, 0 }
  0x1d   : > { %3801 = sst [smem:[#allocation46_spill]] %s2977_s24  ;;  %p433_p2 = scmp.lt.s32.totalorder %s2985_s26, 3 }
  0x1e   : > { %3802 = sst [smem:[#allocation47_spill]] %s2981_s25  ;;  %s2987_s29 = smov [#allocation10]  }
  0x1f   : > { %3803 = sst [smem:[#allocation48_spill]] %s3131_s27  ;;  %p3136_p3 = pnand %p1950_p0, %p433_p2 }
  0x20   : > { %s445_s30 = sshll.u32 %s2987_s29, 4  ;;  %s2988_s17 = smov [#allocation11]   ;;  %s3140_s30 = int_to_ptr.vmem [resolvable:$true] %s445_s30 }
  0x21   : > { %s3804_s28 = scalar_select %p3136_p3, 1, 0 }
  0x22   : > { %p2220_p4 = pneg %p3136_p3  ;;  %s459_s18 = sshll.u32 %s2988_s17, 4  ;;  %s3151_s18 = int_to_ptr.vmem [resolvable:$true] %s459_s18 }
  0x23   : > { %3805 = sst [smem:[#allocation49_spill]] %s3804_s28  ;;  %s2989_s19 = smov [#allocation14]  }
  0x24   : > { %p3147_p6 = pnand %p2220_p4, %p3782_p1  ;;  %s3153_s20 = sshll.u32 %s2989_s19, 4  ;;  %s484_s20 = int_to_ptr.vmem [resolvable:$true] %s3153_s20 }
  0x25   : > { %s3807_s2 = sld [smem:[#allocation52_spill]] }
  0x26   : > { %p3163_p8 = pneg %p3147_p6 }
  0x2b   : > { %s2415_s24 = scalar_lea.hbm %s3807_s2, 256 }
  0x2c   : > { %p2416_p7 = scmp.ne.s32.totalorder %s3807_s2, %s2415_s24  ;;  %p2422_p11 = scmp.lt.u32.totalorder %s2415_s24, %s3807_s2 }
  0x2e   : > { %p2418_p9 = pnand %p3163_p8, %p2416_p7 }
  0x30   : > { %p2419_p10 = pneg %p2418_p9 }
  0x32   : > { %p2424_p12 = pnand %p2422_p11, %p2419_p10 }
  0x34   : > { %2427 = shalt.err (!%p2424_p12)
}
  0x35   : > { %s2428_s1 = scalar_lea.vmem %s3140_s30, 256  ;;  %p2436_p4 = scmp.lt.s32.totalorder %s3140_s30, %s3140_s30 }
  0x36   : > { %p2429_p13 = scmp.ne.s32.totalorder %s3140_s30, %s2428_s1  ;;  %p2437_p5 = scmp.lt.s32.totalorder %s2428_s1, %s2428_s1 }
  0x38   : > { %p2431_p0 = pnand %p2429_p13, %p3163_p8  ;;  %p2438_p7 = por %p2437_p5, %p2436_p4 }
  0x3a   : > { %p2432_p2 = pneg %p2431_p0 }
  0x3c   : > { %p2439_p9 = pnand %p2438_p7, %p2432_p2 }
  0x3e   : > { %2442 = shalt.err (!%p2439_p9)
}
  0x3f   : > { %s3784_s16 = smov 64   ;;  %s2991_s24 = smov 4  }
  0x40   : > { %2223 = dma.hbm_to_vmem [thread:$0]  (!%p3147_p6), %s3807_s2, 256, %s3140_s30, [#allocation9], %s3784_s16, %s3784_s16, %s2991_s24  }
  0x41   : > { %s3809_s3 = sld [smem:[#allocation53_spill]] }
  0x47   : > { %s2443_s1 = scalar_lea.hbm %s3809_s3, 16 }
  0x48   : > { %p2444_p5 = scmp.ne.s32.totalorder %s3809_s3, %s2443_s1  ;;  %p2450_p12 = scmp.lt.u32.totalorder %s2443_s1, %s3809_s3 }
  0x4a   : > { %p2446_p10 = pnand %p2444_p5, %p3163_p8 }
  0x4c   : > { %p2447_p11 = pneg %p2446_p10 }
  0x4e   : > { %p2452_p13 = pnand %p2450_p12, %p2447_p11 }
  0x50   : > { %2455 = shalt.err (!%p2452_p13)
}
  0x51   : > { %s2456_s30 = scalar_lea.vmem %s3151_s18, 16  ;;  %s2463_s21 = scalar_lea.vmem %s3151_s18, 32 }
  0x52   : > { %p2457_p0 = scmp.ne.s32.totalorder %s3151_s18, %s2456_s30  ;;  %p2464_p7 = scmp.lt.s32.totalorder %s3151_s18, %s3151_s18 }
  0x53   : > { %p2465_p9 = scmp.lt.s32.totalorder %s2463_s21, %s2456_s30 }
  0x54   : > { %p2459_p2 = pnand %p2457_p0, %p3163_p8 }
  0x55   : > { %p2466_p5 = por %p2465_p9, %p2464_p7 }
  0x56   : > { %p2460_p4 = pneg %p2459_p2 }
  0x58   : > { %p2467_p10 = pnand %p2466_p5, %p2460_p4 }
  0x5a   : > { %2470 = shalt.err (!%p2467_p10)
}
  0x5b   : > { %2226 = dma.hbm_to_vmem [thread:$0]  (!%p3147_p6), %s3809_s3, 16, %s3151_s18, [#allocation12]  }
  0x5c   : > { %s3810_s5 = sld [smem:[#allocation55_spill]] }
  0x62   : > { %s2471_s29 = scalar_lea.hbm %s3810_s5, 16 }
  0x63   : > { %p2472_p11 = scmp.ne.s32.totalorder %s3810_s5, %s2471_s29  ;;  %p2478_p0 = scmp.lt.u32.totalorder %s2471_s29, %s3810_s5 }
  0x65   : > { %p2474_p12 = pnand %p2472_p11, %p3163_p8 }
  0x67   : > { %p2475_p13 = pneg %p2474_p12 }
  0x69   : > { %p2480_p2 = pnand %p2478_p0, %p2475_p13 }
  0x6b   : > { %2483 = shalt.err (!%p2480_p2)
}
  0x6c   : > { %s2484_s21 = scalar_lea.vmem %s484_s20, 16  ;;  %s2491_s18 = scalar_lea.vmem %s484_s20, 32 }
  0x6d   : > { %p2485_p4 = scmp.ne.s32.totalorder %s484_s20, %s2484_s21  ;;  %p2492_p5 = scmp.lt.s32.totalorder %s484_s20, %s484_s20 }
  0x6e   : > { %p2493_p10 = scmp.lt.s32.totalorder %s2491_s18, %s2484_s21 }
  0x6f   : > { %p2487_p7 = pnand %p2485_p4, %p3163_p8 }
  0x70   : > { %p2494_p1 = por %p2493_p10, %p2492_p5 }
  0x71   : > { %p2488_p9 = pneg %p2487_p7 }
  0x73   : > { %p2495_p3 = pnand %p2494_p1, %p2488_p9 }
  0x75   : > { %2498 = shalt.err (!%p2495_p3)
}
  0x76   : > { %2232 = dma.hbm_to_vmem [thread:$0]  (!%p3147_p6), %s3810_s5, 16, %s484_s20, [#allocation15]  }
  0x77   : > { %s2992_s25 = smov [#allocation17]   ;;  %s2993_s29 = smov [#allocation20]  }
  0x78   : > { %s507_s28 = sshll.u32 %s2992_s25, 4  ;;  %s529_s17 = sshll.u32 %s2993_s29, 4  ;;  %s508_s28 = int_to_ptr.vmem [resolvable:$true] %s507_s28  ;;  %s530_s17 = int_to_ptr.vmem [resolvable:$true] %s529_s17 }
  0x79   : > { %s3811_s7 = sld [smem:[#allocation57_spill]] }
  0x7f   : > { %s2499_s30 = scalar_lea.hbm %s3811_s7, 16 }
  0x80   : > { %p2500_p1 = scmp.ne.s32.totalorder %s3811_s7, %s2499_s30  ;;  %p2506_p12 = scmp.lt.u32.totalorder %s2499_s30, %s3811_s7 }
  0x82   : > { %p2502_p3 = pnand %p2500_p1, %p3163_p8 }
  0x84   : > { %p2503_p11 = pneg %p2502_p3 }
  0x86   : > { %p2508_p13 = pnand %p2506_p12, %p2503_p11 }
  0x88   : > { %2511 = shalt.err (!%p2508_p13)
}
  0x89   : > { %s2512_s20 = scalar_lea.vmem %s508_s28, 16  ;;  %s2519_s23 = scalar_lea.vmem %s508_s28, 32 }
  0x8a   : > { %p2513_p0 = scmp.ne.s32.totalorder %s508_s28, %s2512_s20  ;;  %p2520_p7 = scmp.lt.s32.totalorder %s508_s28, %s508_s28 }
  0x8b   : > { %p2521_p9 = scmp.lt.s32.totalorder %s2519_s23, %s2512_s20 }
  0x8c   : > { %p2515_p2 = pnand %p2513_p0, %p3163_p8 }
  0x8d   : > { %p2522_p5 = por %p2521_p9, %p2520_p7 }
  0x8e   : > { %p2516_p4 = pneg %p2515_p2 }
  0x90   : > { %p2523_p10 = pnand %p2522_p5, %p2516_p4 }
  0x92   : > { %2526 = shalt.err (!%p2523_p10)
}
  0x93   : > { %2238 = dma.hbm_to_vmem [thread:$0]  (!%p3147_p6), %s3811_s7, 16, %s508_s28, [#allocation18]  }
  0x94   : > { %s2527_s1 = scalar_lea.hbm %s3764_s9, 16 }
  0x95   : > { %p2528_p1 = scmp.ne.s32.totalorder %s3764_s9, %s2527_s1  ;;  %p2534_p12 = scmp.lt.u32.totalorder %s2527_s1, %s3764_s9 }
  0x97   : > { %p2530_p3 = pnand %p2528_p1, %p3163_p8 }
  0x99   : > { %p2531_p11 = pneg %p2530_p3 }
  0x9b   : > { %p2536_p13 = pnand %p2534_p12, %p2531_p11 }
  0x9d   : > { %2539 = shalt.err (!%p2536_p13)
}
  0x9e   : > { %s2540_s20 = scalar_lea.vmem %s530_s17, 16  ;;  %s2547_s28 = scalar_lea.vmem %s530_s17, 32 }
  0x9f   : > { %p2541_p0 = scmp.ne.s32.totalorder %s530_s17, %s2540_s20  ;;  %p2548_p7 = scmp.lt.s32.totalorder %s530_s17, %s530_s17 }
  0xa0   : > { %p2549_p9 = scmp.lt.s32.totalorder %s2547_s28, %s2540_s20 }
  0xa1   : > { %p2543_p2 = pnand %p2541_p0, %p3163_p8 }
  0xa2   : > { %p2550_p5 = por %p2549_p9, %p2548_p7 }
  0xa3   : > { %p2544_p4 = pneg %p2543_p2 }
  0xa5   : > { %p2551_p10 = pnand %p2550_p5, %p2544_p4 }
  0xa7   : > { %2554 = shalt.err (!%p2551_p10)
}
  0xa8   : > { %2244 = dma.hbm_to_vmem [thread:$0]  (!%p3147_p6), %s3764_s9, 16, %s530_s17, [#allocation21]  }
  0xa9   : > { %s2994_s29 = smov [#allocation23]   ;;  %s2995_s19 = smov [#allocation26]  }
  0xaa   : > { %s553_s16 = sshll.u32 %s2994_s29, 4  ;;  %s577_s1 = sshll.u32 %s2995_s19, 4  ;;  %s554_s16 = int_to_ptr.vmem [resolvable:$true] %s553_s16  ;;  %s578_s1 = int_to_ptr.vmem [resolvable:$true] %s577_s1 }
  0xab   : > { %s2555_s18 = scalar_lea.hbm %s3766_s11, 16 }
  0xac   : > { %p2556_p1 = scmp.ne.s32.totalorder %s3766_s11, %s2555_s18  ;;  %p2562_p12 = scmp.lt.u32.totalorder %s2555_s18, %s3766_s11 }
  0xae   : > { %p2558_p3 = pnand %p2556_p1, %p3163_p8 }
  0xb0   : > { %p2559_p11 = pneg %p2558_p3 }
  0xb2   : > { %p2564_p13 = pnand %p2562_p12, %p2559_p11 }
  0xb4   : > { %2567 = shalt.err (!%p2564_p13)
}
  0xb5   : > { %s2568_s17 = scalar_lea.vmem %s554_s16, 16  ;;  %s2575_s25 = scalar_lea.vmem %s554_s16, 32 }
  0xb6   : > { %p2569_p0 = scmp.ne.s32.totalorder %s554_s16, %s2568_s17  ;;  %p2576_p7 = scmp.lt.s32.totalorder %s554_s16, %s554_s16 }
  0xb7   : > { %p2577_p9 = scmp.lt.s32.totalorder %s2575_s25, %s2568_s17 }
  0xb8   : > { %p2571_p2 = pnand %p2569_p0, %p3163_p8 }
  0xb9   : > { %p2578_p5 = por %p2577_p9, %p2576_p7 }
  0xba   : > { %p2572_p4 = pneg %p2571_p2 }
  0xbc   : > { %p2579_p10 = pnand %p2578_p5, %p2572_p4 }
  0xbe   : > { %2582 = shalt.err (!%p2579_p10)
}
  0xbf   : > { %2250 = dma.hbm_to_vmem [thread:$0]  (!%p3147_p6), %s3766_s11, 16, %s554_s16, [#allocation24]  }
  0xc0   : > { %s2583_s18 = scalar_lea.hbm %s3768_s13, 16 }
  0xc1   : > { %p2584_p1 = scmp.ne.s32.totalorder %s3768_s13, %s2583_s18  ;;  %p2590_p12 = scmp.lt.u32.totalorder %s2583_s18, %s3768_s13 }
  0xc3   : > { %p2586_p3 = pnand %p2584_p1, %p3163_p8 }
  0xc5   : > { %p2587_p11 = pneg %p2586_p3 }
  0xc7   : > { %p2592_p13 = pnand %p2590_p12, %p2587_p11 }
  0xc9   : > { %2595 = shalt.err (!%p2592_p13)
}
  0xca   : > { %s2596_s17 = scalar_lea.vmem %s578_s1, 16  ;;  %s2603_s16 = scalar_lea.vmem %s578_s1, 32 }
  0xcb   : > { %p2597_p0 = scmp.ne.s32.totalorder %s578_s1, %s2596_s17  ;;  %p2604_p7 = scmp.lt.s32.totalorder %s578_s1, %s578_s1 }
  0xcc   : > { %p2605_p9 = scmp.lt.s32.totalorder %s2603_s16, %s2596_s17 }
  0xcd   : > { %p2599_p2 = pnand %p2597_p0, %p3163_p8 }
  0xce   : > { %p2606_p5 = por %p2605_p9, %p2604_p7 }
  0xcf   : > { %p2600_p4 = pneg %p2599_p2 }
  0xd1   : > { %p2607_p10 = pnand %p2606_p5, %p2600_p4 }
  0xd3   : > { %2610 = shalt.err (!%p2607_p10)
}
  0xd4   : > { %2256 = dma.hbm_to_vmem [thread:$0]  (!%p3147_p6), %s3768_s13, 16, %s578_s1, [#allocation27]  }
  0xd5   : > { %s2996_s19 = smov [#allocation13]   ;;  %s2997_s21 = smov [#allocation16]  }
  0xd6   : > { %s469_s30 = sshll.u32 %s2996_s19, 4  ;;  %s493_s18 = sshll.u32 %s2997_s21, 4  ;;  %s470_s30 = int_to_ptr.vmem [resolvable:$true] %s469_s30  ;;  %s494_s18 = int_to_ptr.vmem [resolvable:$true] %s493_s18 }
  0xd7   : > { %s3812_s4 = sld [smem:[#allocation54_spill]] }
  0xdd   : > { %s2611_s28 = scalar_lea.hbm %s3812_s4, 256 }
  0xde   : > { %p2612_p1 = scmp.ne.s32.totalorder %s3812_s4, %s2611_s28  ;;  %p2618_p12 = scmp.lt.u32.totalorder %s2611_s28, %s3812_s4 }
  0xe0   : > { %p2614_p3 = pnand %p2612_p1, %p3163_p8 }
  0xe2   : > { %p2615_p11 = pneg %p2614_p3 }
  0xe4   : > { %p2620_p13 = pnand %p2618_p12, %p2615_p11 }
  0xe6   : > { %2623 = shalt.err (!%p2620_p13)
}
  0xe7   : > { %s2624_s1 = scalar_lea.vmem %s470_s30, 256  ;;  %p2632_p7 = scmp.lt.s32.totalorder %s470_s30, %s470_s30 }
  0xe8   : > { %p2625_p0 = scmp.ne.s32.totalorder %s470_s30, %s2624_s1  ;;  %p2633_p9 = scmp.lt.s32.totalorder %s2624_s1, %s2624_s1 }
  0xea   : > { %p2627_p2 = pnand %p2625_p0, %p3163_p8  ;;  %p2634_p5 = por %p2633_p9, %p2632_p7 }
  0xec   : > { %p2628_p4 = pneg %p2627_p2 }
  0xee   : > { %p2635_p10 = pnand %p2634_p5, %p2628_p4 }
  0xf0   : > { %2638 = shalt.err (!%p2635_p10)
}
  0xf1   : > { %s3813_s29 = smov 64   ;;  %s3814_s6 = sld [smem:[#allocation56_spill]] }
  0xf2   : > { %2229 = dma.hbm_to_vmem [thread:$0]  (!%p3147_p6), %s3812_s4, 256, %s470_s30, [#allocation12], %s3813_s29, %s3813_s29, %s2991_s24  }
  0xf7   : > { %s2639_s28 = scalar_lea.hbm %s3814_s6, 256 }
  0xf8   : > { %p2640_p1 = scmp.ne.s32.totalorder %s3814_s6, %s2639_s28  ;;  %p2646_p12 = scmp.lt.u32.totalorder %s2639_s28, %s3814_s6 }
  0xfa   : > { %p2642_p3 = pnand %p2640_p1, %p3163_p8 }
  0xfc   : > { %p2643_p11 = pneg %p2642_p3 }
  0xfe   : > { %p2648_p13 = pnand %p2646_p12, %p2643_p11 }
 0x100   : > { %2651 = shalt.err (!%p2648_p13)
}
 0x101   : > { %s2652_s1 = scalar_lea.vmem %s494_s18, 256  ;;  %p2660_p7 = scmp.lt.s32.totalorder %s494_s18, %s494_s18 }
 0x102   : > { %p2653_p0 = scmp.ne.s32.totalorder %s494_s18, %s2652_s1  ;;  %p2661_p9 = scmp.lt.s32.totalorder %s2652_s1, %s2652_s1 }
 0x104   : > { %p2655_p2 = pnand %p2653_p0, %p3163_p8  ;;  %p2662_p5 = por %p2661_p9, %p2660_p7 }
 0x106   : > { %p2656_p4 = pneg %p2655_p2 }
 0x108   : > { %p2663_p10 = pnand %p2662_p5, %p2656_p4 }
 0x10a   : > { %2666 = shalt.err (!%p2663_p10)
}
 0x10b   : > { %2235 = dma.hbm_to_vmem [thread:$0]  (!%p3147_p6), %s3814_s6, 256, %s494_s18, [#allocation15], %s3813_s29, %s3813_s29, %s2991_s24  }
 0x10c   : > { %s2998_s21 = smov [#allocation19]   ;;  %s2999_s20 = smov [#allocation22]  }
 0x10d   : > { %s518_s22 = sshll.u32 %s2998_s21, 4  ;;  %s539_s28 = sshll.u32 %s2999_s20, 4  ;;  %s519_s22 = int_to_ptr.vmem [resolvable:$true] %s518_s22  ;;  %s540_s28 = int_to_ptr.vmem [resolvable:$true] %s539_s28 }
 0x10e   : > { %s3815_s8 = sld [smem:[#allocation58_spill]] }
 0x114   : > { %s2667_s16 = scalar_lea.hbm %s3815_s8, 16 }
 0x115   : > { %p2668_p1 = scmp.ne.s32.totalorder %s3815_s8, %s2667_s16  ;;  %p2674_p12 = scmp.lt.u32.totalorder %s2667_s16, %s3815_s8 }
 0x117   : > { %p2670_p3 = pnand %p2668_p1, %p3163_p8 }
 0x119   : > { %p2671_p11 = pneg %p2670_p3 }
 0x11b   : > { %p2676_p13 = pnand %p2674_p12, %p2671_p11 }
 0x11d   : > { %2679 = shalt.err (!%p2676_p13)
}
 0x11e   : > { %s2680_s18 = scalar_lea.vmem %s519_s22, 16  ;;  %s2687_s19 = scalar_lea.vmem %s519_s22, 32 }
 0x11f   : > { %p2681_p0 = scmp.ne.s32.totalorder %s519_s22, %s2680_s18  ;;  %p2688_p7 = scmp.lt.s32.totalorder %s519_s22, %s519_s22 }
 0x120   : > { %p2689_p9 = scmp.lt.s32.totalorder %s2687_s19, %s2680_s18 }
 0x121   : > { %p2683_p2 = pnand %p2681_p0, %p3163_p8 }
 0x122   : > { %p2690_p5 = por %p2689_p9, %p2688_p7 }
 0x123   : > { %p2684_p4 = pneg %p2683_p2 }
 0x125   : > { %p2691_p10 = pnand %p2690_p5, %p2684_p4 }
 0x127   : > { %2694 = shalt.err (!%p2691_p10)
}
 0x128   : > { %2241 = dma.hbm_to_vmem [thread:$0]  (!%p3147_p6), %s3815_s8, 16, %s519_s22, [#allocation18]  }
 0x129   : > { %s2695_s17 = scalar_lea.hbm %s3765_s10, 256 }
 0x12a   : > { %p2696_p1 = scmp.ne.s32.totalorder %s3765_s10, %s2695_s17  ;;  %p2702_p12 = scmp.lt.u32.totalorder %s2695_s17, %s3765_s10 }
 0x12c   : > { %p2698_p3 = pnand %p2696_p1, %p3163_p8 }
 0x12e   : > { %p2699_p11 = pneg %p2698_p3 }
 0x130   : > { %p2704_p13 = pnand %p2702_p12, %p2699_p11 }
 0x132   : > { %2707 = shalt.err (!%p2704_p13)
}
 0x133   : > { %s2708_s18 = scalar_lea.vmem %s540_s28, 256  ;;  %p2716_p7 = scmp.lt.s32.totalorder %s540_s28, %s540_s28 }
 0x134   : > { %p2709_p0 = scmp.ne.s32.totalorder %s540_s28, %s2708_s18  ;;  %p2717_p9 = scmp.lt.s32.totalorder %s2708_s18, %s2708_s18 }
 0x136   : > { %p2711_p2 = pnand %p2709_p0, %p3163_p8  ;;  %p2718_p5 = por %p2717_p9, %p2716_p7 }
 0x138   : > { %p2712_p4 = pneg %p2711_p2 }
 0x13a   : > { %p2719_p10 = pnand %p2718_p5, %p2712_p4 }
 0x13c   : > { %2722 = shalt.err (!%p2719_p10)
}
 0x13d   : > { %2247 = dma.hbm_to_vmem [thread:$0]  (!%p3147_p6), %s3765_s10, 256, %s540_s28, [#allocation21], %s3813_s29, %s3813_s29, %s2991_s24  }
 0x13e   : > { %s3000_s21 = smov [#allocation25]   ;;  %s3001_s2 = smov [#allocation28]  }
 0x13f   : > { %s563_s20 = sshll.u32 %s3000_s21, 4  ;;  %s588_s23 = sshll.u32 %s3001_s2, 4  ;;  %s564_s20 = int_to_ptr.vmem [resolvable:$true] %s563_s20  ;;  %s589_s23 = int_to_ptr.vmem [resolvable:$true] %s588_s23 }
 0x140   : > { %s2723_s25 = scalar_lea.hbm %s3767_s12, 512 }
 0x141   : > { %p2724_p1 = scmp.ne.s32.totalorder %s3767_s12, %s2723_s25  ;;  %p2730_p12 = scmp.lt.u32.totalorder %s2723_s25, %s3767_s12 }
 0x143   : > { %p2726_p3 = pnand %p2724_p1, %p3163_p8 }
 0x145   : > { %p2727_p11 = pneg %p2726_p3 }
 0x147   : > { %p2732_p13 = pnand %p2730_p12, %p2727_p11 }
 0x149   : > { %2735 = shalt.err (!%p2732_p13)
}
 0x14a   : > { %s2736_s28 = scalar_lea.vmem %s564_s20, 512  ;;  %p2744_p7 = scmp.lt.s32.totalorder %s564_s20, %s564_s20 }
 0x14b   : > { %p2737_p0 = scmp.ne.s32.totalorder %s564_s20, %s2736_s28  ;;  %p2745_p9 = scmp.lt.s32.totalorder %s2736_s28, %s2736_s28 }
 0x14d   : > { %p2739_p2 = pnand %p2737_p0, %p3163_p8  ;;  %p2746_p5 = por %p2745_p9, %p2744_p7 }
 0x14f   : > { %p2740_p4 = pneg %p2739_p2 }
 0x151   : > { %p2747_p10 = pnand %p2746_p5, %p2740_p4 }
 0x153   : > { %2750 = shalt.err (!%p2747_p10)
}
 0x154   : > { %2253 = dma.hbm_to_vmem [thread:$0]  (!%p3147_p6), %s3767_s12, 512, %s564_s20, [#allocation24], %s3813_s29, %s3813_s29, %s2991_s24  }
 0x155   : > { %s2751_s16 = scalar_lea.hbm %s3769_s14, 16 }
 0x156   : > { %p2752_p1 = scmp.ne.s32.totalorder %s3769_s14, %s2751_s16  ;;  %p2758_p12 = scmp.lt.u32.totalorder %s2751_s16, %s3769_s14 }
 0x158   : > { %p2754_p3 = pnand %p2752_p1, %p3163_p8 }
 0x15a   : > { %p2755_p11 = pneg %p2754_p3 }
 0x15c   : > { %p2760_p13 = pnand %p2758_p12, %p2755_p11 }
 0x15e   : > { %2763 = shalt.err (!%p2760_p13)
}
 0x15f   : > { %s2764_s22 = scalar_lea.vmem %s589_s23, 16  ;;  %s2771_s24 = scalar_lea.vmem %s589_s23, 32 }
 0x160   : > { %p2765_p0 = scmp.ne.s32.totalorder %s589_s23, %s2764_s22  ;;  %p2772_p7 = scmp.lt.s32.totalorder %s589_s23, %s589_s23 }
 0x161   : > { %p2773_p9 = scmp.lt.s32.totalorder %s2771_s24, %s2764_s22 }
 0x162   : > { %p2767_p2 = pnand %p2765_p0, %p3163_p8 }
 0x163   : > { %p2774_p5 = por %p2773_p9, %p2772_p7 }
 0x164   : > { %p2768_p4 = pneg %p2767_p2 }
 0x166   : > { %p2775_p10 = pnand %p2774_p5, %p2768_p4 }
 0x168   : > { %2778 = shalt.err (!%p2775_p10)
}
 0x169   : > { %2259 = dma.hbm_to_vmem [thread:$0]  (!%p3147_p6), %s3769_s14, 16, %s589_s23, [#allocation27]  }
 0x16a   : > { %s3002_s28 = smov [#allocation29]   ;;  %s2779_s17 = scalar_lea.hbm %s3770_s15, 16 }
 0x16b   : > { %s599_s19 = sshll.u32 %s3002_s28, 4  ;;  %p2780_p1 = scmp.ne.s32.totalorder %s3770_s15, %s2779_s17  ;;  %s600_s19 = int_to_ptr.vmem [resolvable:$true] %s599_s19 }
 0x16c   : > { %p2786_p12 = scmp.lt.u32.totalorder %s2779_s17, %s3770_s15 }
 0x16d   : > { %p2782_p3 = pnand %p2780_p1, %p3163_p8 }
 0x16f   : > { %p2783_p11 = pneg %p2782_p3 }
 0x171   : > { %p2788_p13 = pnand %p2786_p12, %p2783_p11 }
 0x173   : > { %2791 = shalt.err (!%p2788_p13)
}
 0x174   : > { %s2792_s23 = scalar_lea.vmem %s600_s19, 16  ;;  %s2799_s18 = scalar_lea.vmem %s600_s19, 32 }
 0x175   : > { %p2793_p0 = scmp.ne.s32.totalorder %s600_s19, %s2792_s23  ;;  %p2800_p7 = scmp.lt.s32.totalorder %s600_s19, %s600_s19 }
 0x176   : > { %p2801_p9 = scmp.lt.s32.totalorder %s2799_s18, %s2792_s23 }
 0x177   : > { %p2795_p2 = pnand %p2793_p0, %p3163_p8 }
 0x178   : > { %p2802_p5 = por %p2801_p9, %p2800_p7 }
 0x179   : > { %p2796_p4 = pneg %p2795_p2 }
 0x17b   : > { %p2803_p10 = pnand %p2802_p5, %p2796_p4 }
 0x17d   : > { %2806 = shalt.err (!%p2803_p10)
}
 0x17e   : > { %s3816_s29 = sld [smem:[#allocation47_spill]]  ;;  %s3817_s20 = sld [smem:[#allocation45_spill]] }
 0x17f   : > { %s3818_s28 = sld [smem:[#allocation44_spill]]  ;;  %s3819_s27 = sld [smem:[#allocation43_spill]] }
 0x180   : > { %s3820_s21 = sld [smem:[#allocation48_spill]]  ;;  %s1949_s2 = sadd.s32 4294967294, %s2985_s26  }
 0x181   : > { %2262 = dma.hbm_to_vmem [thread:$0]  (!%p3147_p6), %s3770_s15, 16, %s600_s19, [#allocation30]  }
 0x182   : > { %p69_p3 = scmp.eq.s32.totalorder %s2985_s26, 0  ;;  %p426_p7 = scmp.eq.s32.totalorder %s1949_s2, 1 }
 0x183   : > { %p2288_p5 = scmp.lt.s32.totalorder %s2985_s26, 2 }
 0x184   : > { %s54_s17 = sadd.s32 1, %s3816_s29  ;;  %s61_s0 = sadd.s32 1, %s3817_s20 }
 0x185   : > { %p56_p8 = scmp.ge.s32.totalorder %s54_s17, 2  ;;  %p68_p1 = scmp.ne.s32.totalorder %s3817_s20, %s3818_s28 }
 0x186   : > { %p74_p12 = scmp.ne.s32.totalorder %s3818_s28, %s3819_s27  ;;  %p420_p6 = scmp.eq.s32.totalorder %s3820_s21, 1 }
 0x187   : > { %s3865_s17 = smov (%p56_p8, %s54_s17), 0  ;;  %p3448_p11 = por %p69_p3, %p68_p1 }
 0x188   : > { %s58_s19 = ssub.s32 %s3816_s29, %s3865_s17  ;;  %p3822_p0 = scmp.eq.s32.totalorder %s3820_s21, 0 }
 0x189   : > { %p59_p13 = scmp.eq.s32.totalorder %s58_s19, 0  ;;  %p3463_p4 = por %p420_p6, %p68_p1 }
 0x18a   : > { %p3459_p2 = por %p3822_p0, %p74_p12  ;;  %p3470_p9 = por %p426_p7, %p74_p12 }
 0x18b   : > { %s3824_s1 = scalar_select %p3463_p4, 1, 0 }
 0x18c   : > { %s3823_s25 = scalar_select %p3459_p2, 1, 0 }
 0x18d   : > { %s3468_s30 = scalar_select %p59_p13, %s3817_s20, %s61_s0  }
 0x18e   : > { %s3825_s23 = scalar_select %p3470_p9, 1, 0 }
 0x18f   : > { %s3476_s18 = sand.u32 1, %s3817_s20   ;;  %s1967_s22 = sshll.u32 %s3816_s29, 7 }
 0x190   : > { %s1966_s24 = sshll.u32 %s3476_s18, 3  ;;  %s3826_s21 = sld [smem:[#allocation50_spill]] }
 0x191   : > { %s614_s2 = scalar_lea.vmem [#allocation5], %s1966_s24  ;;  %p3487_p10 = pnand %p2288_p5, %p3448_p11 }
 0x192   : > { %s621_s0 = sshll.u32 %s614_s2, 4  ;;  %s611_s5 = scalar_lea.sflag [#allocation6], %s3476_s18  ;;  %s3491_s0 = int_to_ptr.vmem [resolvable:$true] %s621_s0 }
 0x193   : > { %p2809_p1 = pneg %p3487_p10 }
 0x196   : > { %s3827_s19 = smov %s3826_s21  ;;  %s3483_s3 = scalar_lea.hbm %s3826_s21, %s1967_s22 }
 0x197   : > { %s2807_s28 = scalar_lea.hbm %s3483_s3, 128  ;;  %s2812_s24 = scalar_lea.hbm %s3827_s19, 256 }
 0x198   : > { %p2808_p8 = scmp.ne.s32.totalorder %s3483_s3, %s2807_s28  ;;  %p2813_p11 = scmp.lt.u32.totalorder %s3483_s3, %s3827_s19 }
 0x199   : > { %p2814_p6 = scmp.lt.u32.totalorder %s2812_s24, %s2807_s28  ;;  %p2816_p0 = scmp.lt.u32.totalorder %s2807_s28, %s3483_s3 }
 0x19a   : > { %p2810_p3 = pnand %p2809_p1, %p2808_p8 }
 0x19b   : > { %p2815_p13 = por %p2814_p6, %p2813_p11 }
 0x19c   : > { %p2811_p12 = pneg %p2810_p3 }
 0x19d   : > { %p2817_p7 = por %p2816_p0, %p2815_p13 }
 0x19f   : > { %p2818_p5 = pnand %p2817_p7, %p2811_p12 }
 0x1a1   : > { %2821 = shalt.err (!%p2818_p5)
}
 0x1a2   : > { %s2822_s2 = scalar_lea.vmem %s3491_s0, 128  ;;  %s3003_s22 = smov [#allocation5]  }
 0x1a3   : > { %p2823_p8 = scmp.ne.s32.totalorder %s3491_s0, %s2822_s2  ;;  %s2827_s16 = sshll.u32 %s3003_s22, 4  ;;  %s2828_s16 = int_to_ptr.vmem [resolvable:$false] %s2827_s16 }
 0x1a4   : > { %s2829_s27 = scalar_lea.vmem %s2828_s16, 256  ;;  %p2830_p4 = scmp.lt.s32.totalorder %s3491_s0, %s2828_s16 }
 0x1a5   : > { %p2825_p3 = pnand %p2823_p8, %p2809_p1  ;;  %p2831_p11 = scmp.lt.s32.totalorder %s2829_s27, %s2822_s2 }
 0x1a7   : > { %p2826_p9 = pneg %p2825_p3  ;;  %p2832_p6 = por %p2831_p11, %p2830_p4 }
 0x1a9   : > { %p2833_p13 = pnand %p2832_p6, %p2826_p9 }
 0x1ab   : > { %2836 = shalt.err (!%p2833_p13)
}
 0x1ac   : > { %2266 = dma.hbm_to_vmem [thread:$0]  (!%p3487_p10), %s3483_s3, 128, %s3491_s0, %s611_s5  }
 0x1ad   : > { %s1968_s28 = sshll.u32 %s3816_s29, 4  ;;  %s3829_s22 = sld [smem:[#allocation51_spill]] }
 0x1ae   : > { %s631_s2 = scalar_lea.vmem [#allocation8], %s3476_s18  ;;  %s3831_s27 = sand.u32 1, %s2985_s26  }
 0x1af   : > { %s638_s16 = sshll.u32 %s631_s2, 4  ;;  %s629_s7 = scalar_lea.sflag [#allocation9], %s3831_s27  ;;  %s639_s16 = int_to_ptr.vmem [resolvable:$true] %s638_s16 }
 0x1b3   : > { %s3830_s20 = smov %s3829_s22  ;;  %s3524_s6 = scalar_lea.hbm %s3829_s22, %s1968_s28 }
 0x1b4   : > { %s2837_s8 = scalar_lea.hbm %s3524_s6, 16  ;;  %s2842_s29 = scalar_lea.hbm %s3830_s20, 32 }
 0x1b5   : > { %p2838_p4 = scmp.ne.s32.totalorder %s3524_s6, %s2837_s8  ;;  %p2843_p0 = scmp.lt.u32.totalorder %s3524_s6, %s3830_s20 }
 0x1b6   : > { %p2844_p7 = scmp.lt.u32.totalorder %s2842_s29, %s2837_s8  ;;  %p2846_p8 = scmp.lt.u32.totalorder %s2837_s8, %s3524_s6 }
 0x1b7   : > { %p2840_p9 = pnand %p2838_p4, %p2809_p1 }
 0x1b8   : > { %p2845_p5 = por %p2844_p7, %p2843_p0 }
 0x1b9   : > { %p2841_p12 = pneg %p2840_p9 }
 0x1ba   : > { %p2847_p3 = por %p2846_p8, %p2845_p5 }
 0x1bc   : > { %p2848_p11 = pnand %p2847_p3, %p2841_p12 }
 0x1be   : > { %2851 = shalt.err (!%p2848_p11)
}
 0x1bf   : > { %s2852_s18 = scalar_lea.vmem %s639_s16, 16  ;;  %s3004_s24 = smov [#allocation8]  }
 0x1c0   : > { %p2853_p6 = scmp.ne.s32.totalorder %s639_s16, %s2852_s18  ;;  %s2857_s21 = sshll.u32 %s3004_s24, 4  ;;  %s2858_s21 = int_to_ptr.vmem [resolvable:$false] %s2857_s21 }
 0x1c1   : > { %s2859_s22 = scalar_lea.vmem %s2858_s21, 32  ;;  %p2860_p9 = scmp.lt.s32.totalorder %s639_s16, %s2858_s21 }
 0x1c2   : > { %p2855_p13 = pnand %p2853_p6, %p2809_p1  ;;  %p2861_p2 = scmp.lt.s32.totalorder %s2859_s22, %s2852_s18 }
 0x1c4   : > { %p2856_p4 = pneg %p2855_p13  ;;  %p2862_p0 = por %p2861_p2, %p2860_p9 }
 0x1c6   : > { %p2863_p7 = pnand %p2862_p0, %p2856_p4 }
 0x1c8   : > { %2866 = shalt.err (!%p2863_p7)
}
 0x1c9   : > { %2269 = dma.hbm_to_vmem [thread:$0]  (!%p3487_p10), %s3524_s6, 16, %s639_s16, %s629_s7  }
 0x1ca   : > { %s3832_s8 = sld [smem:[#allocation49_spill]] }
 0x1d0   : > { %p3833_p12 = scmp.ne.s32.totalorder %s3832_s8, 0 }
 0x1d1   : > { %s3834_s2 = sld [smem:[#allocation44_spill]] (!%p3833_p12)  ;;  %p3835_p2 = scmp.ne.s32.totalorder (!%p3833_p12), %s3823_s25, 0 }
 0x1d2   : > { %647 = sbr.rel (%p3833_p12) target bundleno = 2889 (0xb49), region = 84 }
 0x1d7   : > { %s3551_s27 = sand.u32 (!%p3833_p12), 1, %s3834_s2  }
 0x1d8   : > { %s1970_s3 = sshll.u32 (!%p3833_p12), %s3551_s27, 3  ;;  %s650_s5 = scalar_lea.sflag (!%p3833_p12), [#allocation6], %s3551_s27 }
 0x1d9   : > { %s3557_s29 = scalar_lea.vmem [#allocation5], %s1970_s3 }
 0x1da   : > { %2920 = dma.done.wait (%p3835_p2), %s650_s5, 128  }
 0x1db   : > { %2922 = vsyncadd (%p3835_p2), %s650_s5, 4294967168  ;;  %s3836_s4 = sld [smem:[#allocation48_spill]]  ;;  %s661_s16 = scalar_lea.vmem [#allocation8], %s3551_s27 }
 0x1e1   : > { %s658_s6 = sand.u32 1, %s3836_s4  }
 0x1e2   : > { %s659_s7 = scalar_lea.sflag [#allocation9], %s658_s6 }
 0x1e3   : > { %2924 = dma.done.wait (%p3835_p2), %s659_s7, 16  }
 0x1e4   : > { %2926 = vsyncadd (%p3835_p2), %s659_s7, 4294967280  ;;  %p3837_p10 = scmp.eq.s32.totalorder %s3836_s4, 0 }
 0x1e6   : > { %2928 = dma.done.wait (%p3837_p10), [#allocation9], 256   ;;  %p3838_p1 = pmov %p3837_p10 }
 0x1e8   : > { %2930 = vsyncadd (%p3838_p1), [#allocation9], 4294967040  ;;  %p3839_p5 = pmov %p3838_p1 }
 0x1e9   : > { %p3840_p8 = pmov %p3838_p1 }
 0x1ea   : > { %2932 = dma.done.wait (%p3839_p5), [#allocation12], 272  }
 0x1eb   : > { %2934 = vsyncadd (%p3840_p8), [#allocation12], 4294967024  ;;  %p3841_p3 = pmov %p3838_p1 }
 0x1ec   : > { %p3842_p11 = pmov %p3838_p1 }
 0x1ed   : > { %2936 = dma.done.wait (%p3841_p3), [#allocation15], 272  }
 0x1ee   : > { %2938 = vsyncadd (%p3842_p11), [#allocation15], 4294967024  ;;  %p3843_p6 = pmov %p3838_p1 }
 0x1ef   : > { %p3844_p13 = pmov %p3838_p1 }
 0x1f0   : > { %2940 = dma.done.wait (%p3843_p6), [#allocation18], 32  }
 0x1f1   : > { %2942 = vsyncadd (%p3844_p13), [#allocation18], 4294967264  ;;  %p3845_p4 = pmov %p3838_p1 }
 0x1f2   : > { %p3846_p9 = pmov %p3838_p1 }
 0x1f3   : > { %2944 = dma.done.wait (%p3845_p4), [#allocation21], 272  }
 0x1f4   : > { %2946 = vsyncadd (%p3846_p9), [#allocation21], 4294967024  ;;  %p3847_p0 = pmov %p3838_p1 }
 0x1f6   : > { %2948 = dma.done.wait (%p3847_p0), [#allocation24], 528   ;;  %p3848_p7 = pmov %p3847_p0 }
 0x1f7   : > { %p3849_p12 = pmov %p3847_p0 }
 0x1f8   : > { %2950 = vsyncadd (%p3848_p7), [#allocation24], 4294966768 }
 0x1f9   : > { %2952 = dma.done.wait (%p3849_p12), [#allocation27], 32   ;;  %p3850_p2 = pmov %p3847_p0 }
 0x1fa   : > { %p3851_p10 = pmov %p3847_p0 }
 0x1fb   : > { %2954 = vsyncadd (%p3850_p2), [#allocation27], 4294967264 }
 0x1fc   : > { %2956 = dma.done.wait (%p3851_p10), [#allocation30], 16   ;;  %p3852_p1 = pmov %p3847_p0 }
 0x1fd   : > { %v3005_v0 = vmov 0.0   ;;  %vm3006_vm0 = vmmov 0   ;;  %v2377_v1 = vld [vmem:[#allocation13] sm:$0xff]   ;;  %v2378_v2 = vld [vmem:[#allocation13 + $0x8] sm:$0xff]   ;;  %vm803_vm1 = vcmask 261120   ;;  %v2380_v6 = vld [vmem:[#allocation10 + $0x8] sm:$0xff]   ;;  %v931_v38 = vlaneseq }
 0x1fe   : > { %2958 = vsyncadd (%p3852_p1), [#allocation30], 4294967280  ;;  %2066 = vmatprep.subr.bf16.mxu1 %v3005_v0  ;;  %2070 = vmatprep.mubr.msk.bf16.mxu1 %vm3006_vm0, %v3005_v0  ;;  %v3608_v3 = vld [vmem:[%s3557_s29] sm:$0xff]  ;;  %v2379_v4 = vld [vmem:[#allocation10] sm:$0xff]   ;;  %vm848_vm2 = vcmask 257024   ;;  %vm936_vm3 = vcmask 64512  }
 0x1ff   : > { %2082 = vmatprep.subr.bf16.mxu0 %v3005_v0  ;;  %2084 = vmatprep.mubr.msk.bf16.mxu0 %vm3006_vm0, %v3005_v0  ;;  %v779_v5 = vpack.c.bf16 %v3608_v3, %v3608_v3  ;;  %v1987_v7 = vld [vmem:[#allocation14] ss:$0 sm:$0xff]  ;;  %v1992_v14 = vld [vmem:[#allocation11] ss:$0 sm:$0xff]  ;;  %s3007_s25 = smov 112   ;;  %s3008_s0 = smov 120  }
 0x200   : > { %2067 = vmatpush3.bf16.msra.mxu1 %v2377_v1  ;;  %s3009_s28 = smov 104   ;;  %s3010_s18 = smov 96   ;;  %vm997_vm4 = vcmask 1043456   ;;  %v771_v39 = vld [vmem:[%s661_s16] sm:$0x1]  ;;  %v932_v41 = vshrl.u32 %v931_v38, 7 }
 0x201   : > { %2068 = vmatprep.subr.bf16.mxu1 %v3005_v0  ;;  %v1986_v40 = vadd.f32 -1.0, %v771_v39  ;;  %s3011_s24 = smov 8   ;;  %s3012_s21 = smov 16   ;;  %vm1167_vm5 = vcmask 130112   ;;  %vm1291_vm6 = vcmask 195712   ;;  %vm1415_vm7 = vcmask 261312  }
 0x202   : > { %v933_v43 = vsub.s32 0, %v932_v41  ;;  %s3013_s22 = smov 24   ;;  %vm1624_vm8 = vcmask 523264   ;;  %s3853_s8 = sld [smem:[#allocation46_spill]] }
 0x203   : > { %v773_v42 = vmul.f32 1e+09, %v1986_v40  ;;  %s769_s5 = scalar_lea.vmem [#allocation31], %s1970_s3  ;;  %s3854_s7 = sld [smem:[#allocation59_spill]] }
 0x204   : > { %2069 = vmatpush3.bf16.msra.mxu1 %v2378_v2  ;;  %s1714_s29 = sshll.u32 %s769_s5, 4  ;;  %p3855_p8 = scmp.ne.s32.totalorder %s3824_s1, 0  ;;  %s3707_s29 = int_to_ptr.vmem [resolvable:$true] %s1714_s29 }
 0x205   : > { %2074 = vmatprep.subr.bf16.mxu1 %v3005_v0  ;;  %v934_v44 = vrot.slane %v773_v42, %v933_v43  ;;  %s3014_s3 = smov [#allocation31]  }
 0x207   : > { %2071 = vmatmul.mubr.msk.bf16.vlgmr.msra.gmra.mrb[0].mxu1 %vm803_vm1, %v779_v5 }
 0x208   : > { %2075 = vmatpush3.bf16.msra.mxu1 %v2379_v4  ;;  %2078 = vmatprep.mubr.msk.bf16.mxu1 %vm3006_vm0, %v3005_v0  ;;  %s2029_s2 = sshll.u32 %s3853_s8, 7 }
 0x209   : > { %2076 = vmatprep.subr.bf16.mxu1 %v3005_v0  ;;  %s3705_s16 = scalar_lea.hbm %s3854_s7, %s2029_s2 }
 0x20c   : > { %2077 = vmatpush3.bf16.msra.mxu1 %v2380_v6 }
 0x20d   : > { %2088 = vmatprep.subr.bf16.mxu1 %v3005_v0 }
 0x20f   : > { %2079 = vmatmul.mubr.msk.bf16.vlgmr.msra.gmra.mrb[4].mxu1 %vm803_vm1, %v779_v5 }
 0x210   : > { %2090 = vmatprep.mubr.msk.bf16.mxu1 %vm3006_vm0, %v3005_v0 }
 0x2da   : > { %v841_v8 = vpop.f32.mrb[0].mxu1 }
 0x2db   : > { %v842_v9 = vadd.f32 %v1987_v7, %v841_v8  ;;  %v2072_v10 = vpop.f32.mrb[1].mxu1 }
 0x2dc   : > { %v844_v11 = vpop.f32.mrb[2].mxu1 }
 0x2dd   : > { %v847_v12 = vpack.c.bf16 %v842_v9, %v842_v9  ;;  %v2073_v13 = vpop.f32.mrb[3].mxu1 }
 0x2df   : > { %849 = vst.msk [vmem:[#allocation2] sm:$0xf] %vm848_vm2, %v847_v12 }
 0x2e2   : > { %v922_v15 = vpop.f32.mrb[4].mxu1 }
 0x2e3   : > { %v2080_v16 = vpop.f32.mrb[5].mxu1  ;;  %v923_v17 = vadd.f32 %v1992_v14, %v922_v15 }
 0x2e4   : > { %v925_v18 = vpop.f32.mrb[6].mxu1 }
 0x2e5   : > { %v2081_v19 = vpop.f32.mrb[7].mxu1  ;;  %v928_v24 = vpack.c.bf16 %v923_v17, %v923_v17 }
 0x2e6   : > { %v929_v20 = vld [vmem:[#allocation2] sm:$0xf] }
 0x2e7   : > { %v2381_v21 = vld [vmem:[#allocation2] ss:$0 sps:$4 sm:$0xff]   ;;  %v941_v22 = vsel %vm936_vm3, %v929_v20, 0 }
 0x2e8   : > { %v2382_v23 = vld [vmem:[#allocation2] ss:$0 sps:$4 sm:$0xff]   ;;  %2083 = vmatpush3.bf16.xpose.msra.mxu0 %v941_v22  ;;  %1175 = vrot.lane.b32.xlu1 %v2381_v21, %s3007_s25 }
 0x2e9   : > { %1051 = vrot.lane.b32.xlu0 %v2382_v23, %s3008_s0  ;;  %2094 = vmatprep.subr.bf16.mxu0 %v3005_v0  ;;  %v2383_v25 = vld [vmem:[#allocation2] ss:$0 sps:$4 sm:$0xff]  }
 0x2ec   : > { %1170 = vrot.lane.b32.xlu1 %v928_v24, %s3007_s25 }
 0x2ed   : > { %1046 = vrot.lane.b32.xlu0 %v928_v24, %s3008_s0 }
 0x2ef   : > { %2085 = vmatmul.mubr.msk.bf16.vlgmr.msra.gmra.mrb[0].mxu0 %vm936_vm3, %v928_v24 }
 0x2f0   : > { %1294 = vrot.lane.b32.xlu1 %v928_v24, %s3009_s28  ;;  %2096 = vmatprep.mubr.msk.bf16.mxu0 %vm3006_vm0, %v3005_v0 }
 0x2f1   : > { %1299 = vrot.lane.b32.xlu0 %v2383_v25, %s3009_s28 }
 0x2f5   : > { %853 = vrot.lane.b32.xlu0 %v847_v12, %s3010_s18 }
 0x35a   : > { %v1176_v29 = vpop.permute.xlu1 %1175 }
 0x35b   : > { %v1052_v26 = vpop.permute.xlu0 %1051  ;;  %v1181_v31 = vsel %vm936_vm3, %v1176_v29, 0 }
 0x35c   : > { %v1057_v27 = vsel %vm936_vm3, %v1052_v26, 0 }
 0x35d   : > { %2095 = vmatpush3.bf16.xpose.msra.mxu0 %v1057_v27 }
 0x35e   : > { %2106 = vmatprep.subr.bf16.mxu0 %v3005_v0  ;;  %v1171_v33 = vpop.permute.xlu1 %1170 }
 0x35f   : > { %v1047_v28 = vpop.permute.xlu0 %1046 }
 0x362   : > { %v1295_v37 = vpop.permute.xlu1 %1294 }
 0x363   : > { %v1300_v30 = vpop.permute.xlu0 %1299 }
 0x364   : > { %2097 = vmatmul.mubr.msk.bf16.vlgmr.msra.gmra.mrb[4].mxu0 %vm936_vm3, %v1047_v28  ;;  %v1305_v34 = vsel %vm936_vm3, %v1300_v30, 0 }
 0x365   : > { %2107 = vmatpush3.bf16.xpose.msra.mxu0 %v1181_v31  ;;  %2108 = vmatprep.mubr.msk.bf16.mxu0 %vm3006_vm0, %v3005_v0 }
 0x366   : > { %2118 = vmatprep.subr.bf16.mxu0 %v3005_v0 }
 0x367   : > { %v854_v32 = vpop.permute.xlu0 %853 }
 0x368   : > { %856 = vst.msk [vmem:[#allocation3] sm:$0xf] %vm848_vm2, %v854_v32 }
 0x36c   : > { %2109 = vmatmul.mubr.msk.bf16.vlgmr.msra.gmra.mrb[8].mxu0 %vm936_vm3, %v1171_v33 }
 0x36d   : > { %2119 = vmatpush3.bf16.xpose.msra.mxu0 %v1305_v34  ;;  %2120 = vmatprep.mubr.msk.bf16.mxu0 %vm3006_vm0, %v3005_v0 }
 0x36e   : > { %2130 = vmatprep.subr.bf16.mxu0 %v3005_v0 }
 0x36f   : > { %v993_v35 = vld [vmem:[#allocation3] sm:$0xf] }
 0x370   : > { %v999_v36 = vsel %vm997_vm4, %v993_v35, 0  ;;  %v2384_v51 = vld [vmem:[#allocation3] ss:$0 sps:$4 sm:$0xff]  }
 0x371   : > { %2089 = vmatpush3.bf16.msra.mxu1 %v999_v36  ;;  %v2385_v11 = vld [vmem:[#allocation3] ss:$0 sps:$4 sm:$0xff]  }
 0x372   : > { %2100 = vmatprep.subr.bf16.mxu1 %v3005_v0  ;;  %v2386_v12 = vld [vmem:[#allocation3] ss:$0 sps:$4 sm:$0xff]  }
 0x374   : > { %2121 = vmatmul.mubr.msk.bf16.vlgmr.msra.gmra.mrb[12].mxu0 %vm936_vm3, %v1295_v37 }
 0x375   : > { %2134 = vmatprep.mubr.msk.bf16.mxu0 %vm3006_vm0, %v3005_v0 }
 0x3c2   : > { %v977_v45 = vpop.f32.mrb[0].mxu0 }
 0x3c3   : > { %v978_v46 = vadd.f32 %v977_v45, %v934_v44  ;;  %v2086_v47 = vpop.f32.mrb[1].mxu0 }
 0x3c4   : > { %v980_v48 = vpop.f32.mrb[2].mxu0 }
 0x3c5   : > { %v2087_v49 = vpop.f32.mrb[3].mxu0  ;;  %v983_v50 = vsel %vm936_vm3, %v978_v46, -inf }
 0x3c6   : > { %984 = vmax.xlane.f32.xlu1 %v983_v50 }
 0x3d7   : > { %1237 = vrot.lane.b32.xlu1 %v2384_v51, %s3007_s25  ;;  %s1700_s25 = scalar_lea.sflag [#allocation7], %s3551_s27 }
 0x437   : > { %v1093_v52 = vpop.f32.mrb[4].mxu0 }
 0x438   : > { %v1094_v53 = vadd.f32 %v1093_v52, %v934_v44  ;;  %v2098_v54 = vpop.f32.mrb[5].mxu0 }
 0x439   : > { %v1096_v55 = vpop.f32.mrb[6].mxu0 }
 0x43a   : > { %v2099_v56 = vpop.f32.mrb[7].mxu0  ;;  %v1099_v57 = vsel %vm936_vm3, %v1094_v53, -inf }
 0x43b   : > { %1100 = vmax.xlane.f32.xlu0 %v1099_v57  ;;  %v2387_v56 = vld [vmem:[#allocation16] sm:$0xff]  }
 0x43c   : > { %2131 = vmatpush3.bf16.msra.mxu0 %v2387_v56 }
 0x43d   : > { %2132 = vmatprep.subr.bf16.mxu0 %v3005_v0 }
 0x43f   : > { %v1217_v58 = vpop.f32.mrb[8].mxu0 }
 0x440   : > { %v1218_v59 = vadd.f32 %v1217_v58, %v934_v44  ;;  %v2110_v60 = vpop.f32.mrb[9].mxu0 }
 0x441   : > { %v1220_v61 = vpop.f32.mrb[10].mxu0 }
 0x442   : > { %v2111_v62 = vpop.f32.mrb[11].mxu0  ;;  %v1223_v63 = vsel %vm936_vm3, %v1218_v59, -inf }
 0x443   : > { %1224 = vmax.xlane.f32.xlu0 %v1223_v63 }
 0x447   : > { %v1341_v1 = vpop.f32.mrb[12].mxu0 }
 0x448   : > { %v1342_v2 = vadd.f32 %v1341_v1, %v934_v44  ;;  %v2122_v4 = vpop.f32.mrb[13].mxu0 }
 0x449   : > { %v1344_v5 = vpop.f32.mrb[14].mxu0 }
 0x44a   : > { %v2123_v6 = vpop.f32.mrb[15].mxu0  ;;  %v1347_v7 = vsel %vm936_vm3, %v1342_v2, -inf }
 0x44b   : > { %1348 = vmax.xlane.f32.xlu1 %v1347_v7 }
 0x453   : > { %v985_v8 = vpop.xlane.xlu1 %984 }
 0x454   : > { %v986_v9 = vsub.f32 %v978_v46, %v985_v8 }
 0x456   : > { %v987_v10 = vmul.f32 1.442695, %v986_v9 }
 0x457   : > { %v1238_v21 = vpop.permute.xlu1 %1237 }
 0x458   : > { %2395 = vpow2.f32 %v987_v10  ;;  %v1243_v29 = vsel %vm997_vm4, %v1238_v21, 0 }
 0x459   : > { %1113 = vrot.lane.b32.xlu0 %v2385_v11, %s3008_s0  ;;  %s2867_s0 = scalar_lea.vmem %s3707_s29, 128 }
 0x45a   : > { %p2868_p5 = scmp.ne.s32.totalorder %s3707_s29, %s2867_s0 }
 0x45c   : > { %1361 = vrot.lane.b32.xlu1 %v2386_v12, %s3009_s28  ;;  %p2869_p3 = pnand %p2868_p5, %p3855_p8  ;;  %s2871_s28 = sshll.u32 %s3014_s3, 4  ;;  %s2872_s28 = int_to_ptr.vmem [resolvable:$false] %s2871_s28 }
 0x45d   : > { %s2873_s18 = scalar_lea.vmem %s2872_s28, 256  ;;  %p2874_p6 = scmp.lt.s32.totalorder %s3707_s29, %s2872_s28 }
 0x45e   : > { %p2870_p11 = pneg %p2869_p3  ;;  %p2875_p13 = scmp.lt.s32.totalorder %s2873_s18, %s2867_s0 }
 0x460   : > { %p2876_p4 = por %p2875_p13, %p2874_p6 }
 0x462   : > { %v2396_v13 = vpop.eup %2395  ;;  %p2877_p9 = pnand %p2876_p4, %p2870_p11 }
 0x463   : > { %v992_v14 = vpack.c.bf16 %v2396_v13, %v2396_v13  ;;  %v989_v39 = vsel %vm936_vm3, %v2396_v13, 0.0  ;;  %v2010_v13 = vld [vmem:[#allocation17] ss:$0 sm:$0xff] }
 0x465   : > { %2091 = vmatmul.mubr.msk.bf16.vlgmr.msra.gmra.mrb[8].mxu1 %vm936_vm3, %v992_v14 }
 0x466   : > { %2102 = vmatprep.mubr.msk.bf16.mxu1 %vm3006_vm0, %v3005_v0 }
 0x4c8   : > { %v1101_v15 = vpop.xlane.xlu0 %1100 }
 0x4c9   : > { %v1102_v16 = vsub.f32 %v1094_v53, %v1101_v15 }
 0x4cb   : > { %v1103_v17 = vmul.f32 1.442695, %v1102_v16 }
 0x4cd   : > { %2397 = vpow2.f32 %v1103_v17 }
 0x4d0   : > { %v1225_v18 = vpop.xlane.xlu0 %1224 }
 0x4d1   : > { %v1226_v19 = vsub.f32 %v1218_v59, %v1225_v18  ;;  %v2388_v59 = vld [vmem:[#allocation16 + $0x8] sm:$0xff]  }
 0x4d2   : > { %2133 = vmatpush3.bf16.msra.mxu0 %v2388_v59 }
 0x4d3   : > { %v1227_v20 = vmul.f32 1.442695, %v1226_v19  ;;  %2146 = vmatprep.subr.bf16.mxu0 %v3005_v0 }
 0x4d4   : > { %v1114_v22 = vpop.permute.xlu0 %1113 }
 0x4d5   : > { %2399 = vpow2.f32 %v1227_v20  ;;  %v1119_v23 = vsel %vm997_vm4, %v1114_v22, 0 }
 0x4d6   : > { %2101 = vmatpush3.bf16.msra.mxu1 %v1119_v23 }
 0x4d7   : > { %v2398_v24 = vpop.eup %2397  ;;  %2112 = vmatprep.subr.bf16.mxu1 %v3005_v0 }
 0x4d8   : > { %v1349_v25 = vpop.xlane.xlu1 %1348  ;;  %v1105_v26 = vsel %vm936_vm3, %v2398_v24, 0.0  ;;  %v1108_v27 = vpack.c.bf16 %v2398_v24, %v2398_v24 }
 0x4d9   : > { %v1350_v28 = vsub.f32 %v1342_v2, %v1349_v25  ;;  %1106 = vadd.xlane.f32.xlu0 %v1105_v26  ;;  %v2389_v26 = vld [vmem:[#allocation22] sm:$0xff]  }
 0x4da   : > { %2103 = vmatmul.mubr.msk.bf16.vlgmr.msra.gmra.mrb[12].mxu1 %vm936_vm3, %v1108_v27  ;;  %v2390_v27 = vld [vmem:[#allocation22 + $0x8] sm:$0xff]  }
 0x4db   : > { %v1351_v30 = vmul.f32 1.442695, %v1350_v28  ;;  %2113 = vmatpush3.bf16.msra.mxu1 %v1243_v29  ;;  %2114 = vmatprep.mubr.msk.bf16.mxu1 %vm3006_vm0, %v3005_v0  ;;  %v2391_v28 = vld [vmem:[#allocation25] sm:$0xff]   ;;  %v2392_v29 = vld [vmem:[#allocation25 + $0x8] sm:$0xff]  }
 0x4dc   : > { %2124 = vmatprep.subr.bf16.mxu1 %v3005_v0  ;;  %v1362_v32 = vpop.permute.xlu1 %1361 }
 0x4dd   : > { %2401 = vpow2.f32 %v1351_v30  ;;  %v1367_v35 = vsel %vm997_vm4, %v1362_v32, 0 }
 0x4df   : > { %v2400_v31 = vpop.eup %2399 }
 0x4e0   : > { %v1229_v33 = vsel %vm936_vm3, %v2400_v31, 0.0  ;;  %v1232_v34 = vpack.c.bf16 %v2400_v31, %v2400_v31 }
 0x4e1   : > { %1230 = vadd.xlane.f32.xlu1 %v1229_v33  ;;  %v2014_v33 = vld [vmem:[#allocation19] ss:$0 sm:$0xff] }
 0x4e2   : > { %2115 = vmatmul.mubr.msk.bf16.vlgmr.msra.gmra.mrb[16].mxu1 %vm936_vm3, %v1232_v34 }
 0x4e3   : > { %2125 = vmatpush3.bf16.msra.mxu1 %v1367_v35  ;;  %2126 = vmatprep.mubr.msk.bf16.mxu1 %vm3006_vm0, %v3005_v0  ;;  %v2015_v35 = vld [vmem:[#allocation20] ss:$0 sm:$0xff] }
 0x4e4   : > { %2138 = vmatprep.subr.bf16.mxu1 %v3005_v0 }
 0x4e7   : > { %v2402_v36 = vpop.eup %2401 }
 0x4e8   : > { %v1353_v37 = vsel %vm936_vm3, %v2402_v36, 0.0  ;;  %v1356_v38 = vpack.c.bf16 %v2402_v36, %v2402_v36 }
 0x4e9   : > { %1354 = vadd.xlane.f32.xlu0 %v1353_v37 }
 0x4ea   : > { %2127 = vmatmul.mubr.msk.bf16.vlgmr.msra.gmra.mrb[20].mxu1 %vm936_vm3, %v1356_v38 }
 0x4eb   : > { %2142 = vmatprep.mubr.msk.bf16.mxu1 %vm3006_vm0, %v3005_v0  ;;  %2139 = vmatpush3.bf16.msra.mxu1 %v2389_v26 }
 0x4ec   : > { %2140 = vmatprep.subr.bf16.mxu1 %v3005_v0 }
 0x4ed   : > { %990 = vadd.xlane.f32.xlu0 %v989_v39  ;;  %v2393_v39 = vld [vmem:[#allocation25 + $0x10] sm:$0xff]  }
 0x4ef   : > { %2141 = vmatpush3.bf16.msra.mxu1 %v2390_v27 }
 0x538   : > { %v1035_v40 = vpop.f32.mrb[8].mxu1 }
 0x539   : > { %v2092_v41 = vpop.f32.mrb[9].mxu1 }
 0x53a   : > { %v1038_v42 = vpop.f32.mrb[10].mxu1  ;;  %v2016_v41 = vld [vmem:[#allocation23] ss:$0 sm:$0xff] }
 0x53b   : > { %v2093_v43 = vpop.f32.mrb[11].mxu1 }
 0x566   : > { %v1107_v44 = vpop.xlane.xlu0 %1106 }
 0x56e   : > { %v1231_v49 = vpop.xlane.xlu1 %1230 }
 0x576   : > { %v1355_v45 = vpop.xlane.xlu0 %1354 }
 0x57a   : > { %v991_v46 = vpop.xlane.xlu0 %990 }
 0x57b   : > { %2403 = vrcp.f32 %v991_v46 }
 0x57c   : > { %2405 = vrcp.f32 %v1107_v44 }
 0x57d   : > { %2407 = vrcp.f32 %v1231_v49  ;;  %v2020_v49 = vld [vmem:[#allocation26] ss:$0 sm:$0xff] }
 0x57e   : > { %2409 = vrcp.f32 %v1355_v45 }
 0x585   : > { %v2404_v47 = vpop.eup %2403 }
 0x586   : > { %v1042_v48 = vmul.f32 %v2404_v47, %v1035_v40  ;;  %v2406_v50 = vpop.eup %2405  ;;  %v2394_v40 = vld [vmem:[#allocation25 + $0x18] sm:$0xff]  }
 0x587   : > { %v2408_v57 = vpop.eup %2407 }
 0x588   : > { %1043 = vst.msk [vmem:[#allocation4] sm:$0xff] %vm936_vm3, %v1042_v48  ;;  %v2410_v1 = vpop.eup %2409 }
 0x5ad   : > { %v1155_v51 = vpop.f32.mrb[12].mxu1 }
 0x5ae   : > { %v1162_v52 = vmul.f32 %v2406_v50, %v1155_v51  ;;  %v2104_v53 = vpop.f32.mrb[13].mxu1 }
 0x5af   : > { %v1158_v54 = vpop.f32.mrb[14].mxu1 }
 0x5b0   : > { %1164 = vrot.lane.b32.xlu1 %v1162_v52, %s3011_s24  ;;  %v2105_v55 = vpop.f32.mrb[15].mxu1 }
 0x5b5   : > { %v1279_v58 = vpop.f32.mrb[16].mxu1 }
 0x5b6   : > { %v1286_v60 = vmul.f32 %v2408_v57, %v1279_v58  ;;  %v2116_v61 = vpop.f32.mrb[17].mxu1 }
 0x5b7   : > { %v1282_v62 = vpop.f32.mrb[18].mxu1 }
 0x5b8   : > { %v2117_v63 = vpop.f32.mrb[19].mxu1  ;;  %1288 = vrot.lane.b32.xlu0 %v1286_v60, %s3012_s21 }
 0x5bd   : > { %v1403_v2 = vpop.f32.mrb[20].mxu1 }
 0x5be   : > { %v1410_v4 = vmul.f32 %v2410_v1, %v1403_v2  ;;  %v2128_v5 = vpop.f32.mrb[21].mxu1  ;;  %v2026_v2 = vld [vmem:[#allocation28] ss:$0 sm:$0xff] }
 0x5bf   : > { %v1406_v6 = vpop.f32.mrb[22].mxu1  ;;  %v2027_v5 = vld [vmem:[#allocation29] ss:$0 sm:$0xff] }
 0x5c0   : > { %1412 = vrot.lane.b32.xlu1 %v1410_v4, %s3013_s22  ;;  %v2129_v7 = vpop.f32.mrb[23].mxu1 }
 0x622   : > { %v1165_v8 = vpop.permute.xlu1 %1164 }
 0x623   : > { %1168 = vst.msk [vmem:[#allocation4] sm:$0xff] %vm1167_vm5, %v1165_v8 }
 0x62a   : > { %v1289_v9 = vpop.permute.xlu0 %1288 }
 0x62b   : > { %1292 = vst.msk [vmem:[#allocation4] sm:$0xff] %vm1291_vm6, %v1289_v9 }
 0x632   : > { %v1413_v10 = vpop.permute.xlu1 %1412 }
 0x633   : > { %1416 = vst.msk [vmem:[#allocation4] sm:$0xff] %vm1415_vm7, %v1413_v10 }
 0x63a   : > { %v1417_v11 = vld [vmem:[#allocation4] sm:$0xff] }
 0x63b   : > { %v1418_v12 = vpack.c.bf16 %v1417_v11, %v1417_v11 }
 0x63d   : > { %2135 = vmatmul.mubr.msk.bf16.vlgmr.msra.gmra.mrb[16].mxu0 %vm803_vm1, %v1418_v12 }
 0x63e   : > { %2154 = vmatprep.mubr.msk.bf16.mxu0 %vm3006_vm0, %v3005_v0  ;;  %2147 = vmatpush3.bf16.msra.mxu0 %v2391_v28 }
 0x63f   : > { %2148 = vmatprep.subr.bf16.mxu0 %v3005_v0 }
 0x642   : > { %2149 = vmatpush3.bf16.msra.mxu0 %v2392_v29 }
 0x643   : > { %2150 = vmatprep.subr.bf16.mxu0 %v3005_v0 }
 0x646   : > { %2151 = vmatpush3.bf16.msra.mxu0 %v2393_v39 }
 0x647   : > { %2152 = vmatprep.subr.bf16.mxu0 %v3005_v0 }
 0x64a   : > { %2153 = vmatpush3.bf16.msra.mxu0 %v2394_v40 }
 0x710   : > { %v1479_v14 = vpop.f32.mrb[16].mxu0 }
 0x711   : > { %v1480_v15 = vadd.f32 %v2010_v13, %v1479_v14  ;;  %v2136_v16 = vpop.f32.mrb[17].mxu0 }
 0x712   : > { %v1482_v17 = vpop.f32.mrb[18].mxu0 }
 0x713   : > { %v2137_v18 = vpop.f32.mrb[19].mxu0  ;;  %v1485_v19 = vadd.f32 %v1480_v15, %v3608_v3 }
 0x715   : > { %v1488_v20 = vsel %vm803_vm1, %v1485_v19, 0.0 }
 0x716   : > { %1489 = vadd.xlane.f32.xlu1 %v1488_v20 }
 0x7a3   : > { %v1490_v21 = vpop.xlane.xlu1 %1489 }
 0x7a4   : > { %v1492_v22 = vmul.f32 0.03125, %v1490_v21 }
 0x7a6   : > { %v1493_v23 = vsub.f32 %v1485_v19, %v1492_v22 }
 0x7a8   : > { %v1494_v24 = vmul.f32 %v1493_v23, %v1493_v23 }
 0x7aa   : > { %v1495_v25 = vsel %vm803_vm1, %v1494_v24, 0.0 }
 0x7ab   : > { %1496 = vadd.xlane.f32.xlu0 %v1495_v25 }
 0x838   : > { %v1497_v3 = vpop.xlane.xlu0 %1496 }
 0x839   : > { %v1498_v30 = vmul.f32 0.03125, %v1497_v3 }
 0x83b   : > { %v1499_v31 = vadd.f32 1e-05, %v1498_v30 }
 0x83d   : > { %2411 = vrsqrt.f32 %v1499_v31 }
 0x847   : > { %v2412_v32 = vpop.eup %2411 }
 0x848   : > { %v1501_v34 = vmul.f32 %v2412_v32, %v1493_v23 }
 0x84a   : > { %v1508_v36 = vmul.f32 %v2014_v33, %v1501_v34 }
 0x84c   : > { %v1515_v37 = vadd.f32 %v2015_v35, %v1508_v36 }
 0x84e   : > { %v1516_v38 = vpack.c.bf16 %v1515_v37, %v1515_v37 }
 0x850   : > { %2143 = vmatmul.mubr.msk.bf16.vlgmr.msra.gmra.mrb[24].mxu1 %vm803_vm1, %v1516_v38 }
 0x923   : > { %v1577_v42 = vpop.f32.mrb[24].mxu1 }
 0x924   : > { %v1578_v43 = vadd.f32 %v2016_v41, %v1577_v42  ;;  %v2144_v44 = vpop.f32.mrb[25].mxu1 }
 0x925   : > { %v1580_v45 = vpop.f32.mrb[26].mxu1 }
 0x926   : > { %v1583_v46 = vmax.f32 %v1578_v43, 0.0  ;;  %v2145_v47 = vpop.f32.mrb[27].mxu1 }
 0x928   : > { %v1584_v48 = vpack.c.bf16 %v1583_v46, %v1583_v46 }
 0x92a   : > { %2155 = vmatmul.mubr.msk.bf16.vlgmr.msra.gmra.mrb[20].mxu0 %vm1624_vm8, %v1584_v48 }
 0x9fd   : > { %v1662_v50 = vpop.f32.mrb[20].mxu0 }
 0x9fe   : > { %v1663_v51 = vadd.f32 %v2020_v49, %v1662_v50  ;;  %v2156_v52 = vpop.f32.mrb[21].mxu0 }
 0x9ff   : > { %v1665_v53 = vpop.f32.mrb[22].mxu0 }
 0xa00   : > { %v2157_v54 = vpop.f32.mrb[23].mxu0  ;;  %v1668_v55 = vadd.f32 %v1663_v51, %v1515_v37 }
 0xa02   : > { %v1671_v0 = vsel %vm803_vm1, %v1668_v55, 0.0 }
 0xa03   : > { %1672 = vadd.xlane.f32.xlu0 %v1671_v0 }
 0xa90   : > { %v1673_v56 = vpop.xlane.xlu0 %1672 }
 0xa91   : > { %v1674_v57 = vmul.f32 0.03125, %v1673_v56 }
 0xa93   : > { %v1675_v58 = vsub.f32 %v1668_v55, %v1674_v57 }
 0xa95   : > { %v1676_v59 = vmul.f32 %v1675_v58, %v1675_v58 }
 0xa97   : > { %v1677_v60 = vsel %vm803_vm1, %v1676_v59, 0.0 }
 0xa98   : > { %1678 = vadd.xlane.f32.xlu1 %v1677_v60 }
 0xb25   : > { %v1679_v61 = vpop.xlane.xlu1 %1678 }
 0xb26   : > { %v1680_v62 = vmul.f32 0.03125, %v1679_v61 }
 0xb28   : > { %v1681_v63 = vadd.f32 1e-05, %v1680_v62 }
 0xb2a   : > { %2413 = vrsqrt.f32 %v1681_v63 }
 0xb34   : > { %v2414_v1 = vpop.eup %2413 }
 0xb35   : > { %v1683_v4 = vmul.f32 %v2414_v1, %v1675_v58 }
 0xb37   : > { %v1690_v6 = vmul.f32 %v2026_v2, %v1683_v4 }
 0xb39   : > { %v1697_v7 = vadd.f32 %v2027_v5, %v1690_v6 }
 0xb3b   : > { %1698 = vst.msk [vmem:[%s769_s5] sm:$0xff] %vm803_vm1, %v1697_v7 }
 0xb3c   : > { %2880 = shalt.err (!%p2877_p9)
}
 0xb3d   : > { %s2881_s27 = scalar_lea.hbm %s3705_s16, 128  ;;  %s2885_s22 = scalar_lea.hbm %s3854_s7, 256 }
 0xb3e   : > { %p2882_p0 = scmp.ne.s32.totalorder %s3705_s16, %s2881_s27  ;;  %p2886_p2 = scmp.lt.u32.totalorder %s3705_s16, %s3854_s7 }
 0xb3f   : > { %p2887_p10 = scmp.lt.u32.totalorder %s2885_s22, %s2881_s27  ;;  %p2889_p5 = scmp.lt.u32.totalorder %s2881_s27, %s3705_s16 }
 0xb40   : > { %p2883_p7 = pnand %p2882_p0, %p3855_p8 }
 0xb41   : > { %p2888_p1 = por %p2887_p10, %p2886_p2 }
 0xb42   : > { %p2884_p12 = pneg %p2883_p7 }
 0xb43   : > { %p2890_p3 = por %p2889_p5, %p2888_p1 }
 0xb45   : > { %p2891_p11 = pnand %p2890_p3, %p2884_p12 }
 0xb47   : > { %2894 = shalt.err (!%p2891_p11)
}
 0xb48   : > { %2218 = dma.vmem_to_hbm [thread:$0]  (%p3855_p8), %s3707_s29, 128, %s3705_s16, %s1700_s25  }
 0xb49 PF: > { %s3856_s5 = sld [smem:[#allocation43_spill]]  ;;  %p3857_p6 = scmp.ne.s32.totalorder %s3825_s23, 0 }
 0xb4a   : > { %p3858_p13 = scmp.ge.s32.totalorder %s2985_s26, 2 }
 0xb4c   : > { %p2271_p4 = pnand %p3858_p13, %p3857_p6 }
 0xb4f   : > { %s1726_s4 = sand.u32 1, %s3856_s5  }
 0xb50   : > { %s1727_s6 = scalar_lea.sflag [#allocation7], %s1726_s4 }
 0xb51   : > { %2960 = dma.done.wait (!%p2271_p4), %s1727_s6, 128  }
 0xb52   : > { %2962 = vsyncadd (!%p2271_p4), %s1727_s6, 4294967168  ;;  %s42_s26 = sadd.s32 1, %s2985_s26   ;;  %s3859_s21 = sld [smem:[#allocation44_spill]] }
 0xb53   : > { %p39_p9 = scmp.ge.s32.totalorder %s42_s26, 4   ;;  %s3860_s22 = sld [smem:[#allocation45_spill]] }
 0xb54   : > { %s3861_s24 = sld [smem:[#allocation47_spill]]  ;;  %s3862_s23 = smov %s3468_s30 }
 0xb55   : > { %s3863_s25 = smov %s3865_s17  ;;  %41 = sbr.rel (!%p39_p9) target bundleno = 26 (0x1a), region = 203 }
 0xb5c   :  { %1732 = vsyncpa [#allocation6], 1 }
 0xb5d   :  { %1734 = vsyncpa [#allocation6 + $0x1], 1 }
 0xb5e   :  { %1735 = vsyncpa [#allocation9], 1 }
 0xb5f   :  { %1737 = vsyncpa [#allocation9 + $0x1], 1 }
 0xb60   :  { %1738 = vsyncpa [#allocation12], 1 }
 0xb61   :  { %1739 = vsyncpa [#allocation15], 1 }
 0xb62   :  { %1740 = vsyncpa [#allocation18], 1 }
 0xb63   :  { %1741 = vsyncpa [#allocation21], 1 }
 0xb64   :  { %1742 = vsyncpa [#allocation24], 1 }
 0xb65   :  { %1743 = vsyncpa [#allocation27], 1 }
 0xb66   :  { %1744 = vsyncpa [#allocation30], 1 }
 0xb67   :  { %1745 = vsyncpa [#allocation7], 1 }
 0xb68   :  { %1747 = vsyncpa [#allocation7 + $0x1], 1 }

</bundles_post_ra>
